<compile_context>
chip_gen: v5e
topology: v5e:2x2
jax: 0.10.0
libtpu: 0.0.40
codegen_flags: <defaults>
</compile_context>

<pallas_src>
import functools

import jax
import jax.numpy as jnp
from jax.experimental import pallas as pl
from jax.experimental.pallas import tpu as pltpu


def _round_up(x, m):
    return ((x + m - 1) // m) * m


# --------------------------- fused TextRNN kernel ----------------------------

def _make_textrnn_kernel(*, T, Bp, H, L, D, VPAD):
    """Build the fused TextRNN kernel for a static (T, Bp, H, L, D) config."""
    H4 = 4 * H
    DH = D * H
    DH4 = D * H4

    def kernel(*refs):
        # refs = (tok, proj0, b_0, [wx_1, b_1, ..., wx_{L-1}, b_{L-1}],
        #         wh, fc_w, fc_b,        inputs
        #         out,                   output
        #         seq_scr)               scratch
        tok_ref = refs[0]
        proj0_ref = refs[1]
        b_refs = [refs[2]]
        wx_refs = [None]                          # layer 0 uses proj0 directly
        idx = 3
        for _ in range(1, L):
            wx_refs.append(refs[idx]); idx += 1
            b_refs.append(refs[idx]); idx += 1
        wh_ref = refs[idx]; idx += 1              # (L, DH, DH4) bf16 block-diag
        fcw_ref = refs[idx]; idx += 1             # (DH, LPAD)  bf16
        fcb_ref = refs[idx]; idx += 1             # (1, LPAD)   f32
        out_ref = refs[idx]; idx += 1             # (Bp, LPAD)  f32
        seq_ref = refs[idx]                       # (T*Bp, DH)  f32 scratch

        # ---- embedding lookup fused as a one-hot MXU matmul (no gather) -----
        tok = tok_ref[...]                                       # (T*Bp, 1) i32
        lane = jax.lax.broadcasted_iota(jnp.int32, (T * Bp, VPAD), 1)
        onehot = (lane == tok).astype(jnp.float32).astype(jnp.bfloat16)

        h_last = None
        for l in range(L):
            # ---- hoisted input projection: ONE matmul over all timesteps ----
            if l == 0:
                # onehot @ (embedding @ Wx0)  ==  x @ Wx0   (proj0 pre-packed)
                gates = jnp.dot(onehot, proj0_ref[...],
                                preferred_element_type=jnp.float32)
            else:
                prev = seq_ref[...].astype(jnp.bfloat16)         # (T*Bp, DH)
                gates = jnp.dot(prev, wx_refs[l][...],
                                preferred_element_type=jnp.float32)
            gates = gates + b_refs[l][...]                       # (T*Bp, DH4)

            wh = wh_ref[l]                                       # (DH, DH4) bf16
            h = jnp.zeros((Bp, DH), jnp.float32)
            c = jnp.zeros((Bp, DH), jnp.float32)
            h_bwd_last = None

            # ---- serial recurrence: one fused bf16 matmul per step ----------
            for s in range(T):
                tf = s
                tb = T - 1 - s
                gx = gates[tf * Bp:(tf + 1) * Bp, 0:H4]          # fwd block
                if D == 2:
                    gx_b = gates[tb * Bp:(tb + 1) * Bp, H4:2 * H4]
                    gx = jnp.concatenate([gx, gx_b], axis=1)     # (Bp, DH4)
                if s == 0:
                    z = gx                                       # h == 0
                else:
                    z = gx + jnp.dot(h.astype(jnp.bfloat16), wh,
                                     preferred_element_type=jnp.float32)

                # full-vreg transcendentals, then 32-lane gate selections
                sig = jax.nn.sigmoid(z)
                th = jnp.tanh(z)
                c_parts, o_parts = [], []
                for d in range(D):
                    base = d * H4
                    i_g = sig[:, base + 0 * H: base + 1 * H]
                    f_g = sig[:, base + 1 * H: base + 2 * H]
                    g_g = th[:, base + 2 * H: base + 3 * H]
                    o_g = sig[:, base + 3 * H: base + 4 * H]
                    c_d = c[:, d * H:(d + 1) * H]
                    c_parts.append(f_g * c_d + i_g * g_g)
                    o_parts.append(o_g)
                c = jnp.concatenate(c_parts, axis=1) if D == 2 else c_parts[0]
                o_cat = jnp.concatenate(o_parts, axis=1) if D == 2 else o_parts[0]
                h = o_cat * jnp.tanh(c)                          # (Bp, DH) f32

                if l < L - 1:
                    # layer output needed by the next layer's projection
                    seq_ref[tf * Bp:(tf + 1) * Bp, 0:H] = h[:, 0:H]
                    if D == 2:
                        seq_ref[tb * Bp:(tb + 1) * Bp, H:DH] = h[:, H:DH]
                elif D == 2 and s == 0:
                    h_bwd_last = h[:, H:DH]                      # h_bwd(T-1)

            if l == L - 1:
                if D == 2:
                    h_last = jnp.concatenate([h[:, 0:H], h_bwd_last], axis=1)
                else:
                    h_last = h

        # ---- fused FC head on out[:, -1, :]; lane-dense 128-wide store ------
        logits = jnp.dot(h_last.astype(jnp.bfloat16), fcw_ref[...],
                         preferred_element_type=jnp.float32) + fcb_ref[...]
        out_ref[...] = logits

    return kernel


# ------------------------------ forward wrapper ------------------------------

@functools.partial(jax.jit, static_argnames=("bidirectional", "label_num"))
def textrnn_forward(tokens, kp, *, bidirectional=True, label_num=4):
    B, T = tokens.shape
    D = 2 if bidirectional else 1
    L, DH, _ = kp["wh"].shape
    H = DH // D
    VPAD = kp["proj0"].shape[0]
    LPAD = kp["fc_w"].shape[1]
    Bp = _round_up(max(B, 8), 8)                 # pad batch to f32 sublane tile

    # Time-major token column (row = t*Bp + b); only this tiny int op stays
    # outside the kernel.
    tok_tm = jnp.zeros((T, Bp), jnp.int32).at[:, :B].set(jnp.transpose(tokens))
    tok_tm = tok_tm.reshape(T * Bp, 1)

    kernel = _make_textrnn_kernel(T=T, Bp=Bp, H=H, L=L, D=D, VPAD=VPAD)
    args = [tok_tm, kp["proj0"], kp["b"][0]]
    for l in range(1, L):
        args += [kp["wx_rest"][l - 1], kp["b"][l]]
    args += [kp["wh"], kp["fc_w"], kp["fc_b"]]

    out = pl.pallas_call(
        kernel,
        out_shape=jax.ShapeDtypeStruct((Bp, LPAD), jnp.float32),
        scratch_shapes=[pltpu.VMEM((T * Bp, DH), jnp.float32)],
    )(*args)
    return out[:B, :label_num]


# ---------------------- one-time parameter packing ---------------------------

def pack_params(params, *, bidirectional):
    """Pack canonical f32 params into the kernel layout (done once at init)."""
    D = 2 if bidirectional else 1
    H = params["wh"].shape[1]
    H4 = 4 * H
    DH = D * H
    L = len(params["wx"])
    vocab, _ = params["embedding"].shape
    VPAD = _round_up(vocab, 128)
    label_num = params["fc_w"].shape[1]
    LPAD = _round_up(label_num, 128)
    hp = jax.lax.Precision.HIGHEST

    emb_pad = jnp.zeros((VPAD, params["embedding"].shape[1]),
                        jnp.float32).at[:vocab].set(params["embedding"])
    # embedding @ Wx0 pre-projected: the kernel's one-hot matmul then does both
    # the gather and layer-0 input projection in a single MXU pass.
    proj0 = jnp.dot(emb_pad, params["wx"][0], precision=hp).astype(jnp.bfloat16)

    wx_rest = [params["wx"][l].astype(jnp.bfloat16) for l in range(1, L)]
    b = [params["b"][l] for l in range(L)]                    # f32 (1, D*4H)

    wh_blocks = []
    for l in range(L):
        blk = jnp.zeros((DH, D * H4), jnp.float32)
        for d in range(D):
            blk = blk.at[d * H:(d + 1) * H,
                         d * H4:(d + 1) * H4].set(params["wh"][l * D + d])
        wh_blocks.append(blk)
    wh = jnp.stack(wh_blocks, axis=0).astype(jnp.bfloat16)     # (L, DH, D*4H)

    fc_w = jnp.zeros((DH, LPAD), jnp.float32).at[:, :label_num].set(
        params["fc_w"]).astype(jnp.bfloat16)
    fc_b = jnp.zeros((1, LPAD), jnp.float32).at[:, :label_num].set(params["fc_b"])

    return {"proj0": proj0, "wx_rest": wx_rest, "b": b, "wh": wh,
            "fc_w": fc_w, "fc_b": fc_b}


# ------------------------------ plain-JAX reference --------------------------

def textrnn_reference(tokens, params, *, bidirectional=True):
    """Pure-JAX f32 (HIGHEST) reference with identical semantics to PyTorch."""
    B, T = tokens.shape
    D = 2 if bidirectional else 1
    H = params["wh"].shape[1]
    H4 = 4 * H
    hp = jax.lax.Precision.HIGHEST

    x = jnp.take(params["embedding"], tokens, axis=0)          # (B, T, E)
    L = len(params["wx"])
    for l in range(L):
        wx, b = params["wx"][l], params["b"][l]
        dir_outs = []
        for d in range(D):
            wx_d = wx[:, d * H4:(d + 1) * H4]
            b_d = b[:, d * H4:(d + 1) * H4]
            wh_d = params["wh"][l * D + d]
            h = jnp.zeros((B, H), jnp.float32)
            c = jnp.zeros((B, H), jnp.float32)
            hs = [None] * T
            order = range(T) if d == 0 else range(T - 1, -1, -1)
            for t in order:
                z = (jnp.dot(x[:, t, :], wx_d, precision=hp) + b_d
                     + jnp.dot(h, wh_d, precision=hp))
                i_g = jax.nn.sigmoid(z[:, 0 * H:1 * H])
                f_g = jax.nn.sigmoid(z[:, 1 * H:2 * H])
                g_g = jnp.tanh(z[:, 2 * H:3 * H])
                o_g = jax.nn.sigmoid(z[:, 3 * H:4 * H])
                c = f_g * c + i_g * g_g
                h = o_g * jnp.tanh(c)
                hs[t] = h
            dir_outs.append(jnp.stack(hs, axis=1))              # (B, T, H)
        x = jnp.concatenate(dir_outs, axis=-1)                  # (B, T, D*H)
    last = x[:, -1, :]
    return jnp.dot(last, params["fc_w"], precision=hp) + params["fc_b"]


# --------------------------------- params ------------------------------------

def init_params(key, *, vocab_size, embedding_dim, hidden_size, layer_num,
                bidirectional, label_num):
    """Deterministic canonical f32 parameters (PyTorch-style layout)."""
    D = 2 if bidirectional else 1
    H = hidden_size
    H4 = 4 * H
    bound = 1.0 / (hidden_size ** 0.5)

    params = {}
    key, k_emb = jax.random.split(key)
    params["embedding"] = jax.random.normal(
        k_emb, (vocab_size, embedding_dim), jnp.float32)

    wx_list, b_list, wh_list = [], [], []
    for layer in range(layer_num):
        in_dim = embedding_dim if layer == 0 else D * H
        wx_dirs, b_dirs = [], []
        for _ in range(D):
            key, k1, k2, k3, k4 = jax.random.split(key, 5)
            wx = jax.random.uniform(k1, (in_dim, H4), jnp.float32, -bound, bound)
            wh = jax.random.uniform(k2, (H, H4), jnp.float32, -bound, bound)
            b_ih = jax.random.uniform(k3, (1, H4), jnp.float32, -bound, bound)
            b_hh = jax.random.uniform(k4, (1, H4), jnp.float32, -bound, bound)
            wx_dirs.append(wx)
            b_dirs.append(b_ih + b_hh)           # PyTorch adds both biases
            wh_list.append(wh)
        wx_list.append(jnp.concatenate(wx_dirs, axis=1))        # (in, D*4H)
        b_list.append(jnp.concatenate(b_dirs, axis=1))          # (1,  D*4H)
    params["wx"] = wx_list
    params["b"] = b_list
    params["wh"] = jnp.stack(wh_list, axis=0)                   # (L*D, H, 4H)

    fc_in = D * H
    fc_bound = 1.0 / (fc_in ** 0.5)
    key, k5, k6 = jax.random.split(key, 3)
    params["fc_w"] = jax.random.uniform(k5, (fc_in, label_num), jnp.float32,
                                        -fc_bound, fc_bound)
    params["fc_b"] = jax.random.uniform(k6, (1, label_num), jnp.float32,
                                        -fc_bound, fc_bound)
    return params


# ----------------------------------- main -------------------------------------

if __name__ == "__main__":
    # args equivalent: vocab_size=50, embedding_dim=32, hidden_size=32,
    #                  layer_num=2, bidirectional=True, label_num=4
    VOCAB, EMB, HID, LAYERS, LABELS = 50, 32, 32, 2, 4
    BIDIR = True
    B, T = 2, 8

    key = jax.random.PRNGKey(0)
    k_tok, k_param = jax.random.split(key)
    tokens = jax.random.randint(k_tok, (B, T), 0, VOCAB, dtype=jnp.int32)

    params = init_params(k_param, vocab_size=VOCAB, embedding_dim=EMB,
                         hidden_size=HID, layer_num=LAYERS,
                         bidirectional=BIDIR, label_num=LABELS)
    kp = pack_params(params, bidirectional=BIDIR)   # one-time kernel packing

    logits = textrnn_forward(tokens, kp, bidirectional=BIDIR, label_num=LABELS)
    jax.block_until_ready(logits)
    assert logits.shape == (B, LABELS), logits.shape

    # Correctness vs. f32 HIGHEST reference (kernel uses bf16 MXU operands with
    # f32 accumulation, hence the bf16-appropriate tolerance).
    ref = textrnn_reference(tokens, params, bidirectional=BIDIR)
    err = float(jnp.max(jnp.abs(logits - ref)))
    assert jnp.allclose(logits, ref, atol=5e-2, rtol=5e-2), err

    print("KERNEL_OK")
</pallas_src>

<mosaic_0001>
module attributes {stable_mosaic.version = 11 : i64} {
  func.func @kernel(%arg0: memref<64x1xi32, #tpu.memory_space<vmem>>, %arg1: memref<128x256xbf16, #tpu.memory_space<vmem>>, %arg2: memref<1x256xf32, #tpu.memory_space<vmem>>, %arg3: memref<64x256xbf16, #tpu.memory_space<vmem>>, %arg4: memref<1x256xf32, #tpu.memory_space<vmem>>, %arg5: memref<2x64x256xbf16, #tpu.memory_space<vmem>>, %arg6: memref<64x128xbf16, #tpu.memory_space<vmem>>, %arg7: memref<1x128xf32, #tpu.memory_space<vmem>>, %arg8: memref<8x128xf32, #tpu.memory_space<vmem>>, %arg9: memref<64x64xf32, #tpu.memory_space<vmem>>) attributes {dimension_semantics = [], scalar_prefetch = 0 : i64, scratch_operands = 1 : i64, tpu.core_type = #tpu.core_type<tc>} {
    %c0 = arith.constant 0 : index
    %c0_0 = arith.constant 0 : index
    %0 = vector.load %arg0[%c0, %c0_0] : memref<64x1xi32, #tpu.memory_space<vmem>>, vector<64x1xi32>
    %1 = tpu.iota {dimensions = array<i32: 1>} : vector<64x128xi32>
    %2 = vector.broadcast %0 : vector<64x1xi32> to vector<64x128xi32>
    %3 = arith.cmpi eq, %1, %2 : vector<64x128xi32>
    %4 = arith.extui %3 : vector<64x128xi1> to vector<64x128xi32>
    %5 = arith.sitofp %4 : vector<64x128xi32> to vector<64x128xf32>
    %6 = arith.truncf %5 : vector<64x128xf32> to vector<64x128xbf16>
    %c0_1 = arith.constant 0 : index
    %c0_2 = arith.constant 0 : index
    %7 = vector.load %arg1[%c0_1, %c0_2] : memref<128x256xbf16, #tpu.memory_space<vmem>>, vector<128x256xbf16>
    %cst = arith.constant dense<0.000000e+00> : vector<64x256xf32>
    %8 = tpu.matmul %6, %7, %cst {dimension_numbers = #tpu.dot_dimension_numbers<[1], [0], [0], [1], [0, 0, 1, 1], [], []>} : vector<64x128xbf16>, vector<128x256xbf16>, vector<64x256xf32> -> vector<64x256xf32>
    %c0_3 = arith.constant 0 : index
    %c0_4 = arith.constant 0 : index
    %9 = vector.load %arg2[%c0_3, %c0_4] : memref<1x256xf32, #tpu.memory_space<vmem>>, vector<1x256xf32>
    %10 = vector.broadcast %9 : vector<1x256xf32> to vector<64x256xf32>
    %11 = arith.addf %8, %10 : vector<64x256xf32>
    %c0_5 = arith.constant 0 : index
    %c0_6 = arith.constant 0 : index
    %c0_7 = arith.constant 0 : index
    %12 = vector.load %arg5[%c0_5, %c0_6, %c0_7] : memref<2x64x256xbf16, #tpu.memory_space<vmem>>, vector<1x64x256xbf16>
    %13 = vector.shape_cast %12 : vector<1x64x256xbf16> to vector<64x256xbf16>
    %cst_8 = arith.constant 0.000000e+00 : f32
    %14 = vector.broadcast %cst_8 : f32 to vector<8x64xf32>
    %15 = vector.extract_strided_slice %11 {offsets = [0, 0], sizes = [8, 128], strides = [1, 1]} : vector<64x256xf32> to vector<8x128xf32>
    %16 = vector.extract_strided_slice %11 {offsets = [56, 128], sizes = [8, 128], strides = [1, 1]} : vector<64x256xf32> to vector<8x128xf32>
    %17 = tpu.concatenate %15, %16 in 1 : vector<8x128xf32>, vector<8x128xf32> -> vector<8x256xf32>
    %18 = arith.negf %17 : vector<8x256xf32>
    %19 = math.exp %18 : vector<8x256xf32>
    %cst_9 = arith.constant 1.000000e+00 : f32
    %20 = vector.broadcast %cst_9 : f32 to vector<8x256xf32>
    %21 = arith.addf %20, %19 : vector<8x256xf32>
    %22 = arith.divf %20, %21 : vector<8x256xf32>
    %23 = math.tanh %17 : vector<8x256xf32>
    %24 = vector.extract_strided_slice %22 {offsets = [0, 0], sizes = [8, 32], strides = [1, 1]} : vector<8x256xf32> to vector<8x32xf32>
    %25 = vector.extract_strided_slice %22 {offsets = [0, 32], sizes = [8, 32], strides = [1, 1]} : vector<8x256xf32> to vector<8x32xf32>
    %26 = vector.extract_strided_slice %23 {offsets = [0, 64], sizes = [8, 32], strides = [1, 1]} : vector<8x256xf32> to vector<8x32xf32>
    %27 = vector.extract_strided_slice %22 {offsets = [0, 96], sizes = [8, 32], strides = [1, 1]} : vector<8x256xf32> to vector<8x32xf32>
    %28 = vector.extract_strided_slice %14 {offsets = [0, 0], sizes = [8, 32], strides = [1, 1]} : vector<8x64xf32> to vector<8x32xf32>
    %29 = arith.mulf %25, %28 : vector<8x32xf32>
    %30 = arith.mulf %24, %26 : vector<8x32xf32>
    %31 = arith.addf %29, %30 : vector<8x32xf32>
    %32 = vector.extract_strided_slice %22 {offsets = [0, 128], sizes = [8, 32], strides = [1, 1]} : vector<8x256xf32> to vector<8x32xf32>
    %33 = vector.extract_strided_slice %22 {offsets = [0, 160], sizes = [8, 32], strides = [1, 1]} : vector<8x256xf32> to vector<8x32xf32>
    %34 = vector.extract_strided_slice %23 {offsets = [0, 192], sizes = [8, 32], strides = [1, 1]} : vector<8x256xf32> to vector<8x32xf32>
    %35 = vector.extract_strided_slice %22 {offsets = [0, 224], sizes = [8, 32], strides = [1, 1]} : vector<8x256xf32> to vector<8x32xf32>
    %36 = vector.extract_strided_slice %14 {offsets = [0, 32], sizes = [8, 32], strides = [1, 1]} : vector<8x64xf32> to vector<8x32xf32>
    %37 = arith.mulf %33, %36 : vector<8x32xf32>
    %38 = arith.mulf %32, %34 : vector<8x32xf32>
    %39 = arith.addf %37, %38 : vector<8x32xf32>
    %40 = tpu.concatenate %31, %39 in 1 : vector<8x32xf32>, vector<8x32xf32> -> vector<8x64xf32>
    %41 = tpu.concatenate %27, %35 in 1 : vector<8x32xf32>, vector<8x32xf32> -> vector<8x64xf32>
    %42 = math.tanh %40 : vector<8x64xf32>
    %43 = arith.mulf %41, %42 : vector<8x64xf32>
    %44 = vector.extract_strided_slice %43 {offsets = [0, 0], sizes = [8, 32], strides = [1, 1]} : vector<8x64xf32> to vector<8x32xf32>
    %c0_10 = arith.constant 0 : index
    %c0_11 = arith.constant 0 : index
    %45 = vector.load %arg9[%c0_10, %c0_11] : memref<64x64xf32, #tpu.memory_space<vmem>>, vector<8x32xf32>
    tpu.vector_store %arg9[%c0_10, %c0_11], %44 {strides = array<i32>} : memref<64x64xf32, #tpu.memory_space<vmem>>, vector<8x32xf32>,
    %46 = vector.extract_strided_slice %43 {offsets = [0, 32], sizes = [8, 32], strides = [1, 1]} : vector<8x64xf32> to vector<8x32xf32>
    %c56 = arith.constant 56 : index
    %c32 = arith.constant 32 : index
    %47 = vector.load %arg9[%c56, %c32] : memref<64x64xf32, #tpu.memory_space<vmem>>, vector<8x32xf32>
    tpu.vector_store %arg9[%c56, %c32], %46 {strides = array<i32>} : memref<64x64xf32, #tpu.memory_space<vmem>>, vector<8x32xf32>,
    %48 = vector.extract_strided_slice %11 {offsets = [8, 0], sizes = [8, 128], strides = [1, 1]} : vector<64x256xf32> to vector<8x128xf32>
    %49 = vector.extract_strided_slice %11 {offsets = [48, 128], sizes = [8, 128], strides = [1, 1]} : vector<64x256xf32> to vector<8x128xf32>
    %50 = tpu.concatenate %48, %49 in 1 : vector<8x128xf32>, vector<8x128xf32> -> vector<8x256xf32>
    %51 = arith.truncf %43 : vector<8x64xf32> to vector<8x64xbf16>
    %cst_12 = arith.constant dense<0.000000e+00> : vector<8x256xf32>
    %52 = tpu.matmul %51, %13, %cst_12 {dimension_numbers = #tpu.dot_dimension_numbers<[1], [0], [0], [1], [0, 0, 1, 1], [], []>} : vector<8x64xbf16>, vector<64x256xbf16>, vector<8x256xf32> -> vector<8x256xf32>
    %53 = arith.addf %50, %52 : vector<8x256xf32>
    %54 = arith.negf %53 : vector<8x256xf32>
    %55 = math.exp %54 : vector<8x256xf32>
    %cst_13 = arith.constant 1.000000e+00 : f32
    %56 = vector.broadcast %cst_13 : f32 to vector<8x256xf32>
    %57 = arith.addf %56, %55 : vector<8x256xf32>
    %58 = arith.divf %56, %57 : vector<8x256xf32>
    %59 = math.tanh %53 : vector<8x256xf32>
    %60 = vector.extract_strided_slice %58 {offsets = [0, 0], sizes = [8, 32], strides = [1, 1]} : vector<8x256xf32> to vector<8x32xf32>
    %61 = vector.extract_strided_slice %58 {offsets = [0, 32], sizes = [8, 32], strides = [1, 1]} : vector<8x256xf32> to vector<8x32xf32>
    %62 = vector.extract_strided_slice %59 {offsets = [0, 64], sizes = [8, 32], strides = [1, 1]} : vector<8x256xf32> to vector<8x32xf32>
    %63 = vector.extract_strided_slice %58 {offsets = [0, 96], sizes = [8, 32], strides = [1, 1]} : vector<8x256xf32> to vector<8x32xf32>
    %64 = vector.extract_strided_slice %40 {offsets = [0, 0], sizes = [8, 32], strides = [1, 1]} : vector<8x64xf32> to vector<8x32xf32>
    %65 = arith.mulf %61, %64 : vector<8x32xf32>
    %66 = arith.mulf %60, %62 : vector<8x32xf32>
    %67 = arith.addf %65, %66 : vector<8x32xf32>
    %68 = vector.extract_strided_slice %58 {offsets = [0, 128], sizes = [8, 32], strides = [1, 1]} : vector<8x256xf32> to vector<8x32xf32>
    %69 = vector.extract_strided_slice %58 {offsets = [0, 160], sizes = [8, 32], strides = [1, 1]} : vector<8x256xf32> to vector<8x32xf32>
    %70 = vector.extract_strided_slice %59 {offsets = [0, 192], sizes = [8, 32], strides = [1, 1]} : vector<8x256xf32> to vector<8x32xf32>
    %71 = vector.extract_strided_slice %58 {offsets = [0, 224], sizes = [8, 32], strides = [1, 1]} : vector<8x256xf32> to vector<8x32xf32>
    %72 = vector.extract_strided_slice %40 {offsets = [0, 32], sizes = [8, 32], strides = [1, 1]} : vector<8x64xf32> to vector<8x32xf32>
    %73 = arith.mulf %69, %72 : vector<8x32xf32>
    %74 = arith.mulf %68, %70 : vector<8x32xf32>
    %75 = arith.addf %73, %74 : vector<8x32xf32>
    %76 = tpu.concatenate %67, %75 in 1 : vector<8x32xf32>, vector<8x32xf32> -> vector<8x64xf32>
    %77 = tpu.concatenate %63, %71 in 1 : vector<8x32xf32>, vector<8x32xf32> -> vector<8x64xf32>
    %78 = math.tanh %76 : vector<8x64xf32>
    %79 = arith.mulf %77, %78 : vector<8x64xf32>
    %80 = vector.extract_strided_slice %79 {offsets = [0, 0], sizes = [8, 32], strides = [1, 1]} : vector<8x64xf32> to vector<8x32xf32>
    %c8 = arith.constant 8 : index
    %c0_14 = arith.constant 0 : index
    %81 = vector.load %arg9[%c8, %c0_14] : memref<64x64xf32, #tpu.memory_space<vmem>>, vector<8x32xf32>
    tpu.vector_store %arg9[%c8, %c0_14], %80 {strides = array<i32>} : memref<64x64xf32, #tpu.memory_space<vmem>>, vector<8x32xf32>,
    %82 = vector.extract_strided_slice %79 {offsets = [0, 32], sizes = [8, 32], strides = [1, 1]} : vector<8x64xf32> to vector<8x32xf32>
    %c48 = arith.constant 48 : index
    %c32_15 = arith.constant 32 : index
    %83 = vector.load %arg9[%c48, %c32_15] : memref<64x64xf32, #tpu.memory_space<vmem>>, vector<8x32xf32>
    tpu.vector_store %arg9[%c48, %c32_15], %82 {strides = array<i32>} : memref<64x64xf32, #tpu.memory_space<vmem>>, vector<8x32xf32>,
    %84 = vector.extract_strided_slice %11 {offsets = [16, 0], sizes = [8, 128], strides = [1, 1]} : vector<64x256xf32> to vector<8x128xf32>
    %85 = vector.extract_strided_slice %11 {offsets = [40, 128], sizes = [8, 128], strides = [1, 1]} : vector<64x256xf32> to vector<8x128xf32>
    %86 = tpu.concatenate %84, %85 in 1 : vector<8x128xf32>, vector<8x128xf32> -> vector<8x256xf32>
    %87 = arith.truncf %79 : vector<8x64xf32> to vector<8x64xbf16>
    %cst_16 = arith.constant dense<0.000000e+00> : vector<8x256xf32>
    %88 = tpu.matmul %87, %13, %cst_16 {dimension_numbers = #tpu.dot_dimension_numbers<[1], [0], [0], [1], [0, 0, 1, 1], [], []>} : vector<8x64xbf16>, vector<64x256xbf16>, vector<8x256xf32> -> vector<8x256xf32>
    %89 = arith.addf %86, %88 : vector<8x256xf32>
    %90 = arith.negf %89 : vector<8x256xf32>
    %91 = math.exp %90 : vector<8x256xf32>
    %cst_17 = arith.constant 1.000000e+00 : f32
    %92 = vector.broadcast %cst_17 : f32 to vector<8x256xf32>
    %93 = arith.addf %92, %91 : vector<8x256xf32>
    %94 = arith.divf %92, %93 : vector<8x256xf32>
    %95 = math.tanh %89 : vector<8x256xf32>
    %96 = vector.extract_strided_slice %94 {offsets = [0, 0], sizes = [8, 32], strides = [1, 1]} : vector<8x256xf32> to vector<8x32xf32>
    %97 = vector.extract_strided_slice %94 {offsets = [0, 32], sizes = [8, 32], strides = [1, 1]} : vector<8x256xf32> to vector<8x32xf32>
    %98 = vector.extract_strided_slice %95 {offsets = [0, 64], sizes = [8, 32], strides = [1, 1]} : vector<8x256xf32> to vector<8x32xf32>
    %99 = vector.extract_strided_slice %94 {offsets = [0, 96], sizes = [8, 32], strides = [1, 1]} : vector<8x256xf32> to vector<8x32xf32>
    %100 = vector.extract_strided_slice %76 {offsets = [0, 0], sizes = [8, 32], strides = [1, 1]} : vector<8x64xf32> to vector<8x32xf32>
    %101 = arith.mulf %97, %100 : vector<8x32xf32>
    %102 = arith.mulf %96, %98 : vector<8x32xf32>
    %103 = arith.addf %101, %102 : vector<8x32xf32>
    %104 = vector.extract_strided_slice %94 {offsets = [0, 128], sizes = [8, 32], strides = [1, 1]} : vector<8x256xf32> to vector<8x32xf32>
    %105 = vector.extract_strided_slice %94 {offsets = [0, 160], sizes = [8, 32], strides = [1, 1]} : vector<8x256xf32> to vector<8x32xf32>
    %106 = vector.extract_strided_slice %95 {offsets = [0, 192], sizes = [8, 32], strides = [1, 1]} : vector<8x256xf32> to vector<8x32xf32>
    %107 = vector.extract_strided_slice %94 {offsets = [0, 224], sizes = [8, 32], strides = [1, 1]} : vector<8x256xf32> to vector<8x32xf32>
    %108 = vector.extract_strided_slice %76 {offsets = [0, 32], sizes = [8, 32], strides = [1, 1]} : vector<8x64xf32> to vector<8x32xf32>
    %109 = arith.mulf %105, %108 : vector<8x32xf32>
    %110 = arith.mulf %104, %106 : vector<8x32xf32>
    %111 = arith.addf %109, %110 : vector<8x32xf32>
    %112 = tpu.concatenate %103, %111 in 1 : vector<8x32xf32>, vector<8x32xf32> -> vector<8x64xf32>
    %113 = tpu.concatenate %99, %107 in 1 : vector<8x32xf32>, vector<8x32xf32> -> vector<8x64xf32>
    %114 = math.tanh %112 : vector<8x64xf32>
    %115 = arith.mulf %113, %114 : vector<8x64xf32>
    %116 = vector.extract_strided_slice %115 {offsets = [0, 0], sizes = [8, 32], strides = [1, 1]} : vector<8x64xf32> to vector<8x32xf32>
    %c16 = arith.constant 16 : index
    %c0_18 = arith.constant 0 : index
    %117 = vector.load %arg9[%c16, %c0_18] : memref<64x64xf32, #tpu.memory_space<vmem>>, vector<8x32xf32>
    tpu.vector_store %arg9[%c16, %c0_18], %116 {strides = array<i32>} : memref<64x64xf32, #tpu.memory_space<vmem>>, vector<8x32xf32>,
    %118 = vector.extract_strided_slice %115 {offsets = [0, 32], sizes = [8, 32], strides = [1, 1]} : vector<8x64xf32> to vector<8x32xf32>
    %c40 = arith.constant 40 : index
    %c32_19 = arith.constant 32 : index
    %119 = vector.load %arg9[%c40, %c32_19] : memref<64x64xf32, #tpu.memory_space<vmem>>, vector<8x32xf32>
    tpu.vector_store %arg9[%c40, %c32_19], %118 {strides = array<i32>} : memref<64x64xf32, #tpu.memory_space<vmem>>, vector<8x32xf32>,
    %120 = vector.extract_strided_slice %11 {offsets = [24, 0], sizes = [8, 128], strides = [1, 1]} : vector<64x256xf32> to vector<8x128xf32>
    %121 = vector.extract_strided_slice %11 {offsets = [32, 128], sizes = [8, 128], strides = [1, 1]} : vector<64x256xf32> to vector<8x128xf32>
    %122 = tpu.concatenate %120, %121 in 1 : vector<8x128xf32>, vector<8x128xf32> -> vector<8x256xf32>
    %123 = arith.truncf %115 : vector<8x64xf32> to vector<8x64xbf16>
    %cst_20 = arith.constant dense<0.000000e+00> : vector<8x256xf32>
    %124 = tpu.matmul %123, %13, %cst_20 {dimension_numbers = #tpu.dot_dimension_numbers<[1], [0], [0], [1], [0, 0, 1, 1], [], []>} : vector<8x64xbf16>, vector<64x256xbf16>, vector<8x256xf32> -> vector<8x256xf32>
    %125 = arith.addf %122, %124 : vector<8x256xf32>
    %126 = arith.negf %125 : vector<8x256xf32>
    %127 = math.exp %126 : vector<8x256xf32>
    %cst_21 = arith.constant 1.000000e+00 : f32
    %128 = vector.broadcast %cst_21 : f32 to vector<8x256xf32>
    %129 = arith.addf %128, %127 : vector<8x256xf32>
    %130 = arith.divf %128, %129 : vector<8x256xf32>
    %131 = math.tanh %125 : vector<8x256xf32>
    %132 = vector.extract_strided_slice %130 {offsets = [0, 0], sizes = [8, 32], strides = [1, 1]} : vector<8x256xf32> to vector<8x32xf32>
    %133 = vector.extract_strided_slice %130 {offsets = [0, 32], sizes = [8, 32], strides = [1, 1]} : vector<8x256xf32> to vector<8x32xf32>
    %134 = vector.extract_strided_slice %131 {offsets = [0, 64], sizes = [8, 32], strides = [1, 1]} : vector<8x256xf32> to vector<8x32xf32>
    %135 = vector.extract_strided_slice %130 {offsets = [0, 96], sizes = [8, 32], strides = [1, 1]} : vector<8x256xf32> to vector<8x32xf32>
    %136 = vector.extract_strided_slice %112 {offsets = [0, 0], sizes = [8, 32], strides = [1, 1]} : vector<8x64xf32> to vector<8x32xf32>
    %137 = arith.mulf %133, %136 : vector<8x32xf32>
    %138 = arith.mulf %132, %134 : vector<8x32xf32>
    %139 = arith.addf %137, %138 : vector<8x32xf32>
    %140 = vector.extract_strided_slice %130 {offsets = [0, 128], sizes = [8, 32], strides = [1, 1]} : vector<8x256xf32> to vector<8x32xf32>
    %141 = vector.extract_strided_slice %130 {offsets = [0, 160], sizes = [8, 32], strides = [1, 1]} : vector<8x256xf32> to vector<8x32xf32>
    %142 = vector.extract_strided_slice %131 {offsets = [0, 192], sizes = [8, 32], strides = [1, 1]} : vector<8x256xf32> to vector<8x32xf32>
    %143 = vector.extract_strided_slice %130 {offsets = [0, 224], sizes = [8, 32], strides = [1, 1]} : vector<8x256xf32> to vector<8x32xf32>
    %144 = vector.extract_strided_slice %112 {offsets = [0, 32], sizes = [8, 32], strides = [1, 1]} : vector<8x64xf32> to vector<8x32xf32>
    %145 = arith.mulf %141, %144 : vector<8x32xf32>
    %146 = arith.mulf %140, %142 : vector<8x32xf32>
    %147 = arith.addf %145, %146 : vector<8x32xf32>
    %148 = tpu.concatenate %139, %147 in 1 : vector<8x32xf32>, vector<8x32xf32> -> vector<8x64xf32>
    %149 = tpu.concatenate %135, %143 in 1 : vector<8x32xf32>, vector<8x32xf32> -> vector<8x64xf32>
    %150 = math.tanh %148 : vector<8x64xf32>
    %151 = arith.mulf %149, %150 : vector<8x64xf32>
    %152 = vector.extract_strided_slice %151 {offsets = [0, 0], sizes = [8, 32], strides = [1, 1]} : vector<8x64xf32> to vector<8x32xf32>
    %c24 = arith.constant 24 : index
    %c0_22 = arith.constant 0 : index
    %153 = vector.load %arg9[%c24, %c0_22] : memref<64x64xf32, #tpu.memory_space<vmem>>, vector<8x32xf32>
    tpu.vector_store %arg9[%c24, %c0_22], %152 {strides = array<i32>} : memref<64x64xf32, #tpu.memory_space<vmem>>, vector<8x32xf32>,
    %154 = vector.extract_strided_slice %151 {offsets = [0, 32], sizes = [8, 32], strides = [1, 1]} : vector<8x64xf32> to vector<8x32xf32>
    %c32_23 = arith.constant 32 : index
    %c32_24 = arith.constant 32 : index
    %155 = vector.load %arg9[%c32_23, %c32_24] : memref<64x64xf32, #tpu.memory_space<vmem>>, vector<8x32xf32>
    tpu.vector_store %arg9[%c32_23, %c32_24], %154 {strides = array<i32>} : memref<64x64xf32, #tpu.memory_space<vmem>>, vector<8x32xf32>,
    %156 = vector.extract_strided_slice %11 {offsets = [32, 0], sizes = [8, 128], strides = [1, 1]} : vector<64x256xf32> to vector<8x128xf32>
    %157 = vector.extract_strided_slice %11 {offsets = [24, 128], sizes = [8, 128], strides = [1, 1]} : vector<64x256xf32> to vector<8x128xf32>
    %158 = tpu.concatenate %156, %157 in 1 : vector<8x128xf32>, vector<8x128xf32> -> vector<8x256xf32>
    %159 = arith.truncf %151 : vector<8x64xf32> to vector<8x64xbf16>
    %cst_25 = arith.constant dense<0.000000e+00> : vector<8x256xf32>
    %160 = tpu.matmul %159, %13, %cst_25 {dimension_numbers = #tpu.dot_dimension_numbers<[1], [0], [0], [1], [0, 0, 1, 1], [], []>} : vector<8x64xbf16>, vector<64x256xbf16>, vector<8x256xf32> -> vector<8x256xf32>
    %161 = arith.addf %158, %160 : vector<8x256xf32>
    %162 = arith.negf %161 : vector<8x256xf32>
    %163 = math.exp %162 : vector<8x256xf32>
    %cst_26 = arith.constant 1.000000e+00 : f32
    %164 = vector.broadcast %cst_26 : f32 to vector<8x256xf32>
    %165 = arith.addf %164, %163 : vector<8x256xf32>
    %166 = arith.divf %164, %165 : vector<8x256xf32>
    %167 = math.tanh %161 : vector<8x256xf32>
    %168 = vector.extract_strided_slice %166 {offsets = [0, 0], sizes = [8, 32], strides = [1, 1]} : vector<8x256xf32> to vector<8x32xf32>
    %169 = vector.extract_strided_slice %166 {offsets = [0, 32], sizes = [8, 32], strides = [1, 1]} : vector<8x256xf32> to vector<8x32xf32>
    %170 = vector.extract_strided_slice %167 {offsets = [0, 64], sizes = [8, 32], strides = [1, 1]} : vector<8x256xf32> to vector<8x32xf32>
    %171 = vector.extract_strided_slice %166 {offsets = [0, 96], sizes = [8, 32], strides = [1, 1]} : vector<8x256xf32> to vector<8x32xf32>
    %172 = vector.extract_strided_slice %148 {offsets = [0, 0], sizes = [8, 32], strides = [1, 1]} : vector<8x64xf32> to vector<8x32xf32>
    %173 = arith.mulf %169, %172 : vector<8x32xf32>
    %174 = arith.mulf %168, %170 : vector<8x32xf32>
    %175 = arith.addf %173, %174 : vector<8x32xf32>
    %176 = vector.extract_strided_slice %166 {offsets = [0, 128], sizes = [8, 32], strides = [1, 1]} : vector<8x256xf32> to vector<8x32xf32>
    %177 = vector.extract_strided_slice %166 {offsets = [0, 160], sizes = [8, 32], strides = [1, 1]} : vector<8x256xf32> to vector<8x32xf32>
    %178 = vector.extract_strided_slice %167 {offsets = [0, 192], sizes = [8, 32], strides = [1, 1]} : vector<8x256xf32> to vector<8x32xf32>
    %179 = vector.extract_strided_slice %166 {offsets = [0, 224], sizes = [8, 32], strides = [1, 1]} : vector<8x256xf32> to vector<8x32xf32>
    %180 = vector.extract_strided_slice %148 {offsets = [0, 32], sizes = [8, 32], strides = [1, 1]} : vector<8x64xf32> to vector<8x32xf32>
    %181 = arith.mulf %177, %180 : vector<8x32xf32>
    %182 = arith.mulf %176, %178 : vector<8x32xf32>
    %183 = arith.addf %181, %182 : vector<8x32xf32>
    %184 = tpu.concatenate %175, %183 in 1 : vector<8x32xf32>, vector<8x32xf32> -> vector<8x64xf32>
    %185 = tpu.concatenate %171, %179 in 1 : vector<8x32xf32>, vector<8x32xf32> -> vector<8x64xf32>
    %186 = math.tanh %184 : vector<8x64xf32>
    %187 = arith.mulf %185, %186 : vector<8x64xf32>
    %188 = vector.extract_strided_slice %187 {offsets = [0, 0], sizes = [8, 32], strides = [1, 1]} : vector<8x64xf32> to vector<8x32xf32>
    %c32_27 = arith.constant 32 : index
    %c0_28 = arith.constant 0 : index
    %189 = vector.load %arg9[%c32_27, %c0_28] : memref<64x64xf32, #tpu.memory_space<vmem>>, vector<8x32xf32>
    tpu.vector_store %arg9[%c32_27, %c0_28], %188 {strides = array<i32>} : memref<64x64xf32, #tpu.memory_space<vmem>>, vector<8x32xf32>,
    %190 = vector.extract_strided_slice %187 {offsets = [0, 32], sizes = [8, 32], strides = [1, 1]} : vector<8x64xf32> to vector<8x32xf32>
    %c24_29 = arith.constant 24 : index
    %c32_30 = arith.constant 32 : index
    %191 = vector.load %arg9[%c24_29, %c32_30] : memref<64x64xf32, #tpu.memory_space<vmem>>, vector<8x32xf32>
    tpu.vector_store %arg9[%c24_29, %c32_30], %190 {strides = array<i32>} : memref<64x64xf32, #tpu.memory_space<vmem>>, vector<8x32xf32>,
    %192 = vector.extract_strided_slice %11 {offsets = [40, 0], sizes = [8, 128], strides = [1, 1]} : vector<64x256xf32> to vector<8x128xf32>
    %193 = vector.extract_strided_slice %11 {offsets = [16, 128], sizes = [8, 128], strides = [1, 1]} : vector<64x256xf32> to vector<8x128xf32>
    %194 = tpu.concatenate %192, %193 in 1 : vector<8x128xf32>, vector<8x128xf32> -> vector<8x256xf32>
    %195 = arith.truncf %187 : vector<8x64xf32> to vector<8x64xbf16>
    %cst_31 = arith.constant dense<0.000000e+00> : vector<8x256xf32>
    %196 = tpu.matmul %195, %13, %cst_31 {dimension_numbers = #tpu.dot_dimension_numbers<[1], [0], [0], [1], [0, 0, 1, 1], [], []>} : vector<8x64xbf16>, vector<64x256xbf16>, vector<8x256xf32> -> vector<8x256xf32>
    %197 = arith.addf %194, %196 : vector<8x256xf32>
    %198 = arith.negf %197 : vector<8x256xf32>
    %199 = math.exp %198 : vector<8x256xf32>
    %cst_32 = arith.constant 1.000000e+00 : f32
    %200 = vector.broadcast %cst_32 : f32 to vector<8x256xf32>
    %201 = arith.addf %200, %199 : vector<8x256xf32>
    %202 = arith.divf %200, %201 : vector<8x256xf32>
    %203 = math.tanh %197 : vector<8x256xf32>
    %204 = vector.extract_strided_slice %202 {offsets = [0, 0], sizes = [8, 32], strides = [1, 1]} : vector<8x256xf32> to vector<8x32xf32>
    %205 = vector.extract_strided_slice %202 {offsets = [0, 32], sizes = [8, 32], strides = [1, 1]} : vector<8x256xf32> to vector<8x32xf32>
    %206 = vector.extract_strided_slice %203 {offsets = [0, 64], sizes = [8, 32], strides = [1, 1]} : vector<8x256xf32> to vector<8x32xf32>
    %207 = vector.extract_strided_slice %202 {offsets = [0, 96], sizes = [8, 32], strides = [1, 1]} : vector<8x256xf32> to vector<8x32xf32>
    %208 = vector.extract_strided_slice %184 {offsets = [0, 0], sizes = [8, 32], strides = [1, 1]} : vector<8x64xf32> to vector<8x32xf32>
    %209 = arith.mulf %205, %208 : vector<8x32xf32>
    %210 = arith.mulf %204, %206 : vector<8x32xf32>
    %211 = arith.addf %209, %210 : vector<8x32xf32>
    %212 = vector.extract_strided_slice %202 {offsets = [0, 128], sizes = [8, 32], strides = [1, 1]} : vector<8x256xf32> to vector<8x32xf32>
    %213 = vector.extract_strided_slice %202 {offsets = [0, 160], sizes = [8, 32], strides = [1, 1]} : vector<8x256xf32> to vector<8x32xf32>
    %214 = vector.extract_strided_slice %203 {offsets = [0, 192], sizes = [8, 32], strides = [1, 1]} : vector<8x256xf32> to vector<8x32xf32>
    %215 = vector.extract_strided_slice %202 {offsets = [0, 224], sizes = [8, 32], strides = [1, 1]} : vector<8x256xf32> to vector<8x32xf32>
    %216 = vector.extract_strided_slice %184 {offsets = [0, 32], sizes = [8, 32], strides = [1, 1]} : vector<8x64xf32> to vector<8x32xf32>
    %217 = arith.mulf %213, %216 : vector<8x32xf32>
    %218 = arith.mulf %212, %214 : vector<8x32xf32>
    %219 = arith.addf %217, %218 : vector<8x32xf32>
    %220 = tpu.concatenate %211, %219 in 1 : vector<8x32xf32>, vector<8x32xf32> -> vector<8x64xf32>
    %221 = tpu.concatenate %207, %215 in 1 : vector<8x32xf32>, vector<8x32xf32> -> vector<8x64xf32>
    %222 = math.tanh %220 : vector<8x64xf32>
    %223 = arith.mulf %221, %222 : vector<8x64xf32>
    %224 = vector.extract_strided_slice %223 {offsets = [0, 0], sizes = [8, 32], strides = [1, 1]} : vector<8x64xf32> to vector<8x32xf32>
    %c40_33 = arith.constant 40 : index
    %c0_34 = arith.constant 0 : index
    %225 = vector.load %arg9[%c40_33, %c0_34] : memref<64x64xf32, #tpu.memory_space<vmem>>, vector<8x32xf32>
    tpu.vector_store %arg9[%c40_33, %c0_34], %224 {strides = array<i32>} : memref<64x64xf32, #tpu.memory_space<vmem>>, vector<8x32xf32>,
    %226 = vector.extract_strided_slice %223 {offsets = [0, 32], sizes = [8, 32], strides = [1, 1]} : vector<8x64xf32> to vector<8x32xf32>
    %c16_35 = arith.constant 16 : index
    %c32_36 = arith.constant 32 : index
    %227 = vector.load %arg9[%c16_35, %c32_36] : memref<64x64xf32, #tpu.memory_space<vmem>>, vector<8x32xf32>
    tpu.vector_store %arg9[%c16_35, %c32_36], %226 {strides = array<i32>} : memref<64x64xf32, #tpu.memory_space<vmem>>, vector<8x32xf32>,
    %228 = vector.extract_strided_slice %11 {offsets = [48, 0], sizes = [8, 128], strides = [1, 1]} : vector<64x256xf32> to vector<8x128xf32>
    %229 = vector.extract_strided_slice %11 {offsets = [8, 128], sizes = [8, 128], strides = [1, 1]} : vector<64x256xf32> to vector<8x128xf32>
    %230 = tpu.concatenate %228, %229 in 1 : vector<8x128xf32>, vector<8x128xf32> -> vector<8x256xf32>
    %231 = arith.truncf %223 : vector<8x64xf32> to vector<8x64xbf16>
    %cst_37 = arith.constant dense<0.000000e+00> : vector<8x256xf32>
    %232 = tpu.matmul %231, %13, %cst_37 {dimension_numbers = #tpu.dot_dimension_numbers<[1], [0], [0], [1], [0, 0, 1, 1], [], []>} : vector<8x64xbf16>, vector<64x256xbf16>, vector<8x256xf32> -> vector<8x256xf32>
    %233 = arith.addf %230, %232 : vector<8x256xf32>
    %234 = arith.negf %233 : vector<8x256xf32>
    %235 = math.exp %234 : vector<8x256xf32>
    %cst_38 = arith.constant 1.000000e+00 : f32
    %236 = vector.broadcast %cst_38 : f32 to vector<8x256xf32>
    %237 = arith.addf %236, %235 : vector<8x256xf32>
    %238 = arith.divf %236, %237 : vector<8x256xf32>
    %239 = math.tanh %233 : vector<8x256xf32>
    %240 = vector.extract_strided_slice %238 {offsets = [0, 0], sizes = [8, 32], strides = [1, 1]} : vector<8x256xf32> to vector<8x32xf32>
    %241 = vector.extract_strided_slice %238 {offsets = [0, 32], sizes = [8, 32], strides = [1, 1]} : vector<8x256xf32> to vector<8x32xf32>
    %242 = vector.extract_strided_slice %239 {offsets = [0, 64], sizes = [8, 32], strides = [1, 1]} : vector<8x256xf32> to vector<8x32xf32>
    %243 = vector.extract_strided_slice %238 {offsets = [0, 96], sizes = [8, 32], strides = [1, 1]} : vector<8x256xf32> to vector<8x32xf32>
    %244 = vector.extract_strided_slice %220 {offsets = [0, 0], sizes = [8, 32], strides = [1, 1]} : vector<8x64xf32> to vector<8x32xf32>
    %245 = arith.mulf %241, %244 : vector<8x32xf32>
    %246 = arith.mulf %240, %242 : vector<8x32xf32>
    %247 = arith.addf %245, %246 : vector<8x32xf32>
    %248 = vector.extract_strided_slice %238 {offsets = [0, 128], sizes = [8, 32], strides = [1, 1]} : vector<8x256xf32> to vector<8x32xf32>
    %249 = vector.extract_strided_slice %238 {offsets = [0, 160], sizes = [8, 32], strides = [1, 1]} : vector<8x256xf32> to vector<8x32xf32>
    %250 = vector.extract_strided_slice %239 {offsets = [0, 192], sizes = [8, 32], strides = [1, 1]} : vector<8x256xf32> to vector<8x32xf32>
    %251 = vector.extract_strided_slice %238 {offsets = [0, 224], sizes = [8, 32], strides = [1, 1]} : vector<8x256xf32> to vector<8x32xf32>
    %252 = vector.extract_strided_slice %220 {offsets = [0, 32], sizes = [8, 32], strides = [1, 1]} : vector<8x64xf32> to vector<8x32xf32>
    %253 = arith.mulf %249, %252 : vector<8x32xf32>
    %254 = arith.mulf %248, %250 : vector<8x32xf32>
    %255 = arith.addf %253, %254 : vector<8x32xf32>
    %256 = tpu.concatenate %247, %255 in 1 : vector<8x32xf32>, vector<8x32xf32> -> vector<8x64xf32>
    %257 = tpu.concatenate %243, %251 in 1 : vector<8x32xf32>, vector<8x32xf32> -> vector<8x64xf32>
    %258 = math.tanh %256 : vector<8x64xf32>
    %259 = arith.mulf %257, %258 : vector<8x64xf32>
    %260 = vector.extract_strided_slice %259 {offsets = [0, 0], sizes = [8, 32], strides = [1, 1]} : vector<8x64xf32> to vector<8x32xf32>
    %c48_39 = arith.constant 48 : index
    %c0_40 = arith.constant 0 : index
    %261 = vector.load %arg9[%c48_39, %c0_40] : memref<64x64xf32, #tpu.memory_space<vmem>>, vector<8x32xf32>
    tpu.vector_store %arg9[%c48_39, %c0_40], %260 {strides = array<i32>} : memref<64x64xf32, #tpu.memory_space<vmem>>, vector<8x32xf32>,
    %262 = vector.extract_strided_slice %259 {offsets = [0, 32], sizes = [8, 32], strides = [1, 1]} : vector<8x64xf32> to vector<8x32xf32>
    %c8_41 = arith.constant 8 : index
    %c32_42 = arith.constant 32 : index
    %263 = vector.load %arg9[%c8_41, %c32_42] : memref<64x64xf32, #tpu.memory_space<vmem>>, vector<8x32xf32>
    tpu.vector_store %arg9[%c8_41, %c32_42], %262 {strides = array<i32>} : memref<64x64xf32, #tpu.memory_space<vmem>>, vector<8x32xf32>,
    %264 = vector.extract_strided_slice %11 {offsets = [56, 0], sizes = [8, 128], strides = [1, 1]} : vector<64x256xf32> to vector<8x128xf32>
    %265 = vector.extract_strided_slice %11 {offsets = [0, 128], sizes = [8, 128], strides = [1, 1]} : vector<64x256xf32> to vector<8x128xf32>
    %266 = tpu.concatenate %264, %265 in 1 : vector<8x128xf32>, vector<8x128xf32> -> vector<8x256xf32>
    %267 = arith.truncf %259 : vector<8x64xf32> to vector<8x64xbf16>
    %cst_43 = arith.constant dense<0.000000e+00> : vector<8x256xf32>
    %268 = tpu.matmul %267, %13, %cst_43 {dimension_numbers = #tpu.dot_dimension_numbers<[1], [0], [0], [1], [0, 0, 1, 1], [], []>} : vector<8x64xbf16>, vector<64x256xbf16>, vector<8x256xf32> -> vector<8x256xf32>
    %269 = arith.addf %266, %268 : vector<8x256xf32>
    %270 = arith.negf %269 : vector<8x256xf32>
    %271 = math.exp %270 : vector<8x256xf32>
    %cst_44 = arith.constant 1.000000e+00 : f32
    %272 = vector.broadcast %cst_44 : f32 to vector<8x256xf32>
    %273 = arith.addf %272, %271 : vector<8x256xf32>
    %274 = arith.divf %272, %273 : vector<8x256xf32>
    %275 = math.tanh %269 : vector<8x256xf32>
    %276 = vector.extract_strided_slice %274 {offsets = [0, 0], sizes = [8, 32], strides = [1, 1]} : vector<8x256xf32> to vector<8x32xf32>
    %277 = vector.extract_strided_slice %274 {offsets = [0, 32], sizes = [8, 32], strides = [1, 1]} : vector<8x256xf32> to vector<8x32xf32>
    %278 = vector.extract_strided_slice %275 {offsets = [0, 64], sizes = [8, 32], strides = [1, 1]} : vector<8x256xf32> to vector<8x32xf32>
    %279 = vector.extract_strided_slice %274 {offsets = [0, 96], sizes = [8, 32], strides = [1, 1]} : vector<8x256xf32> to vector<8x32xf32>
    %280 = vector.extract_strided_slice %256 {offsets = [0, 0], sizes = [8, 32], strides = [1, 1]} : vector<8x64xf32> to vector<8x32xf32>
    %281 = arith.mulf %277, %280 : vector<8x32xf32>
    %282 = arith.mulf %276, %278 : vector<8x32xf32>
    %283 = arith.addf %281, %282 : vector<8x32xf32>
    %284 = vector.extract_strided_slice %274 {offsets = [0, 128], sizes = [8, 32], strides = [1, 1]} : vector<8x256xf32> to vector<8x32xf32>
    %285 = vector.extract_strided_slice %274 {offsets = [0, 160], sizes = [8, 32], strides = [1, 1]} : vector<8x256xf32> to vector<8x32xf32>
    %286 = vector.extract_strided_slice %275 {offsets = [0, 192], sizes = [8, 32], strides = [1, 1]} : vector<8x256xf32> to vector<8x32xf32>
    %287 = vector.extract_strided_slice %274 {offsets = [0, 224], sizes = [8, 32], strides = [1, 1]} : vector<8x256xf32> to vector<8x32xf32>
    %288 = vector.extract_strided_slice %256 {offsets = [0, 32], sizes = [8, 32], strides = [1, 1]} : vector<8x64xf32> to vector<8x32xf32>
    %289 = arith.mulf %285, %288 : vector<8x32xf32>
    %290 = arith.mulf %284, %286 : vector<8x32xf32>
    %291 = arith.addf %289, %290 : vector<8x32xf32>
    %292 = tpu.concatenate %283, %291 in 1 : vector<8x32xf32>, vector<8x32xf32> -> vector<8x64xf32>
    %293 = tpu.concatenate %279, %287 in 1 : vector<8x32xf32>, vector<8x32xf32> -> vector<8x64xf32>
    %294 = math.tanh %292 : vector<8x64xf32>
    %295 = arith.mulf %293, %294 : vector<8x64xf32>
    %296 = vector.extract_strided_slice %295 {offsets = [0, 0], sizes = [8, 32], strides = [1, 1]} : vector<8x64xf32> to vector<8x32xf32>
    %c56_45 = arith.constant 56 : index
    %c0_46 = arith.constant 0 : index
    %297 = vector.load %arg9[%c56_45, %c0_46] : memref<64x64xf32, #tpu.memory_space<vmem>>, vector<8x32xf32>
    tpu.vector_store %arg9[%c56_45, %c0_46], %296 {strides = array<i32>} : memref<64x64xf32, #tpu.memory_space<vmem>>, vector<8x32xf32>,
    %298 = vector.extract_strided_slice %295 {offsets = [0, 32], sizes = [8, 32], strides = [1, 1]} : vector<8x64xf32> to vector<8x32xf32>
    %c0_47 = arith.constant 0 : index
    %c32_48 = arith.constant 32 : index
    %299 = vector.load %arg9[%c0_47, %c32_48] : memref<64x64xf32, #tpu.memory_space<vmem>>, vector<8x32xf32>
    tpu.vector_store %arg9[%c0_47, %c32_48], %298 {strides = array<i32>} : memref<64x64xf32, #tpu.memory_space<vmem>>, vector<8x32xf32>,
    %c0_49 = arith.constant 0 : index
    %c0_50 = arith.constant 0 : index
    %300 = vector.load %arg9[%c0_49, %c0_50] : memref<64x64xf32, #tpu.memory_space<vmem>>, vector<64x64xf32>
    %301 = arith.truncf %300 : vector<64x64xf32> to vector<64x64xbf16>
    %c0_51 = arith.constant 0 : index
    %c0_52 = arith.constant 0 : index
    %302 = vector.load %arg3[%c0_51, %c0_52] : memref<64x256xbf16, #tpu.memory_space<vmem>>, vector<64x256xbf16>
    %cst_53 = arith.constant dense<0.000000e+00> : vector<64x256xf32>
    %303 = tpu.matmul %301, %302, %cst_53 {dimension_numbers = #tpu.dot_dimension_numbers<[1], [0], [0], [1], [0, 0, 1, 1], [], []>} : vector<64x64xbf16>, vector<64x256xbf16>, vector<64x256xf32> -> vector<64x256xf32>
    %c0_54 = arith.constant 0 : index
    %c0_55 = arith.constant 0 : index
    %304 = vector.load %arg4[%c0_54, %c0_55] : memref<1x256xf32, #tpu.memory_space<vmem>>, vector<1x256xf32>
    %305 = vector.broadcast %304 : vector<1x256xf32> to vector<64x256xf32>
    %306 = arith.addf %303, %305 : vector<64x256xf32>
    %c1 = arith.constant 1 : index
    %c0_56 = arith.constant 0 : index
    %c0_57 = arith.constant 0 : index
    %307 = vector.load %arg5[%c1, %c0_56, %c0_57] : memref<2x64x256xbf16, #tpu.memory_space<vmem>>, vector<1x64x256xbf16>
    %308 = vector.shape_cast %307 : vector<1x64x256xbf16> to vector<64x256xbf16>
    %cst_58 = arith.constant 0.000000e+00 : f32
    %309 = vector.broadcast %cst_58 : f32 to vector<8x64xf32>
    %310 = vector.extract_strided_slice %306 {offsets = [0, 0], sizes = [8, 128], strides = [1, 1]} : vector<64x256xf32> to vector<8x128xf32>
    %311 = vector.extract_strided_slice %306 {offsets = [56, 128], sizes = [8, 128], strides = [1, 1]} : vector<64x256xf32> to vector<8x128xf32>
    %312 = tpu.concatenate %310, %311 in 1 : vector<8x128xf32>, vector<8x128xf32> -> vector<8x256xf32>
    %313 = arith.negf %312 : vector<8x256xf32>
    %314 = math.exp %313 : vector<8x256xf32>
    %cst_59 = arith.constant 1.000000e+00 : f32
    %315 = vector.broadcast %cst_59 : f32 to vector<8x256xf32>
    %316 = arith.addf %315, %314 : vector<8x256xf32>
    %317 = arith.divf %315, %316 : vector<8x256xf32>
    %318 = math.tanh %312 : vector<8x256xf32>
    %319 = vector.extract_strided_slice %317 {offsets = [0, 0], sizes = [8, 32], strides = [1, 1]} : vector<8x256xf32> to vector<8x32xf32>
    %320 = vector.extract_strided_slice %317 {offsets = [0, 32], sizes = [8, 32], strides = [1, 1]} : vector<8x256xf32> to vector<8x32xf32>
    %321 = vector.extract_strided_slice %318 {offsets = [0, 64], sizes = [8, 32], strides = [1, 1]} : vector<8x256xf32> to vector<8x32xf32>
    %322 = vector.extract_strided_slice %317 {offsets = [0, 96], sizes = [8, 32], strides = [1, 1]} : vector<8x256xf32> to vector<8x32xf32>
    %323 = vector.extract_strided_slice %309 {offsets = [0, 0], sizes = [8, 32], strides = [1, 1]} : vector<8x64xf32> to vector<8x32xf32>
    %324 = arith.mulf %320, %323 : vector<8x32xf32>
    %325 = arith.mulf %319, %321 : vector<8x32xf32>
    %326 = arith.addf %324, %325 : vector<8x32xf32>
    %327 = vector.extract_strided_slice %317 {offsets = [0, 128], sizes = [8, 32], strides = [1, 1]} : vector<8x256xf32> to vector<8x32xf32>
    %328 = vector.extract_strided_slice %317 {offsets = [0, 160], sizes = [8, 32], strides = [1, 1]} : vector<8x256xf32> to vector<8x32xf32>
    %329 = vector.extract_strided_slice %318 {offsets = [0, 192], sizes = [8, 32], strides = [1, 1]} : vector<8x256xf32> to vector<8x32xf32>
    %330 = vector.extract_strided_slice %317 {offsets = [0, 224], sizes = [8, 32], strides = [1, 1]} : vector<8x256xf32> to vector<8x32xf32>
    %331 = vector.extract_strided_slice %309 {offsets = [0, 32], sizes = [8, 32], strides = [1, 1]} : vector<8x64xf32> to vector<8x32xf32>
    %332 = arith.mulf %328, %331 : vector<8x32xf32>
    %333 = arith.mulf %327, %329 : vector<8x32xf32>
    %334 = arith.addf %332, %333 : vector<8x32xf32>
    %335 = tpu.concatenate %326, %334 in 1 : vector<8x32xf32>, vector<8x32xf32> -> vector<8x64xf32>
    %336 = tpu.concatenate %322, %330 in 1 : vector<8x32xf32>, vector<8x32xf32> -> vector<8x64xf32>
    %337 = math.tanh %335 : vector<8x64xf32>
    %338 = arith.mulf %336, %337 : vector<8x64xf32>
    %339 = vector.extract_strided_slice %338 {offsets = [0, 32], sizes = [8, 32], strides = [1, 1]} : vector<8x64xf32> to vector<8x32xf32>
    %340 = vector.extract_strided_slice %306 {offsets = [8, 0], sizes = [8, 128], strides = [1, 1]} : vector<64x256xf32> to vector<8x128xf32>
    %341 = vector.extract_strided_slice %306 {offsets = [48, 128], sizes = [8, 128], strides = [1, 1]} : vector<64x256xf32> to vector<8x128xf32>
    %342 = tpu.concatenate %340, %341 in 1 : vector<8x128xf32>, vector<8x128xf32> -> vector<8x256xf32>
    %343 = arith.truncf %338 : vector<8x64xf32> to vector<8x64xbf16>
    %cst_60 = arith.constant dense<0.000000e+00> : vector<8x256xf32>
    %344 = tpu.matmul %343, %308, %cst_60 {dimension_numbers = #tpu.dot_dimension_numbers<[1], [0], [0], [1], [0, 0, 1, 1], [], []>} : vector<8x64xbf16>, vector<64x256xbf16>, vector<8x256xf32> -> vector<8x256xf32>
    %345 = arith.addf %342, %344 : vector<8x256xf32>
    %346 = arith.negf %345 : vector<8x256xf32>
    %347 = math.exp %346 : vector<8x256xf32>
    %cst_61 = arith.constant 1.000000e+00 : f32
    %348 = vector.broadcast %cst_61 : f32 to vector<8x256xf32>
    %349 = arith.addf %348, %347 : vector<8x256xf32>
    %350 = arith.divf %348, %349 : vector<8x256xf32>
    %351 = math.tanh %345 : vector<8x256xf32>
    %352 = vector.extract_strided_slice %350 {offsets = [0, 0], sizes = [8, 32], strides = [1, 1]} : vector<8x256xf32> to vector<8x32xf32>
    %353 = vector.extract_strided_slice %350 {offsets = [0, 32], sizes = [8, 32], strides = [1, 1]} : vector<8x256xf32> to vector<8x32xf32>
    %354 = vector.extract_strided_slice %351 {offsets = [0, 64], sizes = [8, 32], strides = [1, 1]} : vector<8x256xf32> to vector<8x32xf32>
    %355 = vector.extract_strided_slice %350 {offsets = [0, 96], sizes = [8, 32], strides = [1, 1]} : vector<8x256xf32> to vector<8x32xf32>
    %356 = vector.extract_strided_slice %335 {offsets = [0, 0], sizes = [8, 32], strides = [1, 1]} : vector<8x64xf32> to vector<8x32xf32>
    %357 = arith.mulf %353, %356 : vector<8x32xf32>
    %358 = arith.mulf %352, %354 : vector<8x32xf32>
    %359 = arith.addf %357, %358 : vector<8x32xf32>
    %360 = vector.extract_strided_slice %350 {offsets = [0, 128], sizes = [8, 32], strides = [1, 1]} : vector<8x256xf32> to vector<8x32xf32>
    %361 = vector.extract_strided_slice %350 {offsets = [0, 160], sizes = [8, 32], strides = [1, 1]} : vector<8x256xf32> to vector<8x32xf32>
    %362 = vector.extract_strided_slice %351 {offsets = [0, 192], sizes = [8, 32], strides = [1, 1]} : vector<8x256xf32> to vector<8x32xf32>
    %363 = vector.extract_strided_slice %350 {offsets = [0, 224], sizes = [8, 32], strides = [1, 1]} : vector<8x256xf32> to vector<8x32xf32>
    %364 = vector.extract_strided_slice %335 {offsets = [0, 32], sizes = [8, 32], strides = [1, 1]} : vector<8x64xf32> to vector<8x32xf32>
    %365 = arith.mulf %361, %364 : vector<8x32xf32>
    %366 = arith.mulf %360, %362 : vector<8x32xf32>
    %367 = arith.addf %365, %366 : vector<8x32xf32>
    %368 = tpu.concatenate %359, %367 in 1 : vector<8x32xf32>, vector<8x32xf32> -> vector<8x64xf32>
    %369 = tpu.concatenate %355, %363 in 1 : vector<8x32xf32>, vector<8x32xf32> -> vector<8x64xf32>
    %370 = math.tanh %368 : vector<8x64xf32>
    %371 = arith.mulf %369, %370 : vector<8x64xf32>
    %372 = vector.extract_strided_slice %306 {offsets = [16, 0], sizes = [8, 128], strides = [1, 1]} : vector<64x256xf32> to vector<8x128xf32>
    %373 = vector.extract_strided_slice %306 {offsets = [40, 128], sizes = [8, 128], strides = [1, 1]} : vector<64x256xf32> to vector<8x128xf32>
    %374 = tpu.concatenate %372, %373 in 1 : vector<8x128xf32>, vector<8x128xf32> -> vector<8x256xf32>
    %375 = arith.truncf %371 : vector<8x64xf32> to vector<8x64xbf16>
    %cst_62 = arith.constant dense<0.000000e+00> : vector<8x256xf32>
    %376 = tpu.matmul %375, %308, %cst_62 {dimension_numbers = #tpu.dot_dimension_numbers<[1], [0], [0], [1], [0, 0, 1, 1], [], []>} : vector<8x64xbf16>, vector<64x256xbf16>, vector<8x256xf32> -> vector<8x256xf32>
    %377 = arith.addf %374, %376 : vector<8x256xf32>
    %378 = arith.negf %377 : vector<8x256xf32>
    %379 = math.exp %378 : vector<8x256xf32>
    %cst_63 = arith.constant 1.000000e+00 : f32
    %380 = vector.broadcast %cst_63 : f32 to vector<8x256xf32>
    %381 = arith.addf %380, %379 : vector<8x256xf32>
    %382 = arith.divf %380, %381 : vector<8x256xf32>
    %383 = math.tanh %377 : vector<8x256xf32>
    %384 = vector.extract_strided_slice %382 {offsets = [0, 0], sizes = [8, 32], strides = [1, 1]} : vector<8x256xf32> to vector<8x32xf32>
    %385 = vector.extract_strided_slice %382 {offsets = [0, 32], sizes = [8, 32], strides = [1, 1]} : vector<8x256xf32> to vector<8x32xf32>
    %386 = vector.extract_strided_slice %383 {offsets = [0, 64], sizes = [8, 32], strides = [1, 1]} : vector<8x256xf32> to vector<8x32xf32>
    %387 = vector.extract_strided_slice %382 {offsets = [0, 96], sizes = [8, 32], strides = [1, 1]} : vector<8x256xf32> to vector<8x32xf32>
    %388 = vector.extract_strided_slice %368 {offsets = [0, 0], sizes = [8, 32], strides = [1, 1]} : vector<8x64xf32> to vector<8x32xf32>
    %389 = arith.mulf %385, %388 : vector<8x32xf32>
    %390 = arith.mulf %384, %386 : vector<8x32xf32>
    %391 = arith.addf %389, %390 : vector<8x32xf32>
    %392 = vector.extract_strided_slice %382 {offsets = [0, 128], sizes = [8, 32], strides = [1, 1]} : vector<8x256xf32> to vector<8x32xf32>
    %393 = vector.extract_strided_slice %382 {offsets = [0, 160], sizes = [8, 32], strides = [1, 1]} : vector<8x256xf32> to vector<8x32xf32>
    %394 = vector.extract_strided_slice %383 {offsets = [0, 192], sizes = [8, 32], strides = [1, 1]} : vector<8x256xf32> to vector<8x32xf32>
    %395 = vector.extract_strided_slice %382 {offsets = [0, 224], sizes = [8, 32], strides = [1, 1]} : vector<8x256xf32> to vector<8x32xf32>
    %396 = vector.extract_strided_slice %368 {offsets = [0, 32], sizes = [8, 32], strides = [1, 1]} : vector<8x64xf32> to vector<8x32xf32>
    %397 = arith.mulf %393, %396 : vector<8x32xf32>
    %398 = arith.mulf %392, %394 : vector<8x32xf32>
    %399 = arith.addf %397, %398 : vector<8x32xf32>
    %400 = tpu.concatenate %391, %399 in 1 : vector<8x32xf32>, vector<8x32xf32> -> vector<8x64xf32>
    %401 = tpu.concatenate %387, %395 in 1 : vector<8x32xf32>, vector<8x32xf32> -> vector<8x64xf32>
    %402 = math.tanh %400 : vector<8x64xf32>
    %403 = arith.mulf %401, %402 : vector<8x64xf32>
    %404 = vector.extract_strided_slice %306 {offsets = [24, 0], sizes = [8, 128], strides = [1, 1]} : vector<64x256xf32> to vector<8x128xf32>
    %405 = vector.extract_strided_slice %306 {offsets = [32, 128], sizes = [8, 128], strides = [1, 1]} : vector<64x256xf32> to vector<8x128xf32>
    %406 = tpu.concatenate %404, %405 in 1 : vector<8x128xf32>, vector<8x128xf32> -> vector<8x256xf32>
    %407 = arith.truncf %403 : vector<8x64xf32> to vector<8x64xbf16>
    %cst_64 = arith.constant dense<0.000000e+00> : vector<8x256xf32>
    %408 = tpu.matmul %407, %308, %cst_64 {dimension_numbers = #tpu.dot_dimension_numbers<[1], [0], [0], [1], [0, 0, 1, 1], [], []>} : vector<8x64xbf16>, vector<64x256xbf16>, vector<8x256xf32> -> vector<8x256xf32>
    %409 = arith.addf %406, %408 : vector<8x256xf32>
    %410 = arith.negf %409 : vector<8x256xf32>
    %411 = math.exp %410 : vector<8x256xf32>
    %cst_65 = arith.constant 1.000000e+00 : f32
    %412 = vector.broadcast %cst_65 : f32 to vector<8x256xf32>
    %413 = arith.addf %412, %411 : vector<8x256xf32>
    %414 = arith.divf %412, %413 : vector<8x256xf32>
    %415 = math.tanh %409 : vector<8x256xf32>
    %416 = vector.extract_strided_slice %414 {offsets = [0, 0], sizes = [8, 32], strides = [1, 1]} : vector<8x256xf32> to vector<8x32xf32>
    %417 = vector.extract_strided_slice %414 {offsets = [0, 32], sizes = [8, 32], strides = [1, 1]} : vector<8x256xf32> to vector<8x32xf32>
    %418 = vector.extract_strided_slice %415 {offsets = [0, 64], sizes = [8, 32], strides = [1, 1]} : vector<8x256xf32> to vector<8x32xf32>
    %419 = vector.extract_strided_slice %414 {offsets = [0, 96], sizes = [8, 32], strides = [1, 1]} : vector<8x256xf32> to vector<8x32xf32>
    %420 = vector.extract_strided_slice %400 {offsets = [0, 0], sizes = [8, 32], strides = [1, 1]} : vector<8x64xf32> to vector<8x32xf32>
    %421 = arith.mulf %417, %420 : vector<8x32xf32>
    %422 = arith.mulf %416, %418 : vector<8x32xf32>
    %423 = arith.addf %421, %422 : vector<8x32xf32>
    %424 = vector.extract_strided_slice %414 {offsets = [0, 128], sizes = [8, 32], strides = [1, 1]} : vector<8x256xf32> to vector<8x32xf32>
    %425 = vector.extract_strided_slice %414 {offsets = [0, 160], sizes = [8, 32], strides = [1, 1]} : vector<8x256xf32> to vector<8x32xf32>
    %426 = vector.extract_strided_slice %415 {offsets = [0, 192], sizes = [8, 32], strides = [1, 1]} : vector<8x256xf32> to vector<8x32xf32>
    %427 = vector.extract_strided_slice %414 {offsets = [0, 224], sizes = [8, 32], strides = [1, 1]} : vector<8x256xf32> to vector<8x32xf32>
    %428 = vector.extract_strided_slice %400 {offsets = [0, 32], sizes = [8, 32], strides = [1, 1]} : vector<8x64xf32> to vector<8x32xf32>
    %429 = arith.mulf %425, %428 : vector<8x32xf32>
    %430 = arith.mulf %424, %426 : vector<8x32xf32>
    %431 = arith.addf %429, %430 : vector<8x32xf32>
    %432 = tpu.concatenate %423, %431 in 1 : vector<8x32xf32>, vector<8x32xf32> -> vector<8x64xf32>
    %433 = tpu.concatenate %419, %427 in 1 : vector<8x32xf32>, vector<8x32xf32> -> vector<8x64xf32>
    %434 = math.tanh %432 : vector<8x64xf32>
    %435 = arith.mulf %433, %434 : vector<8x64xf32>
    %436 = vector.extract_strided_slice %306 {offsets = [32, 0], sizes = [8, 128], strides = [1, 1]} : vector<64x256xf32> to vector<8x128xf32>
    %437 = vector.extract_strided_slice %306 {offsets = [24, 128], sizes = [8, 128], strides = [1, 1]} : vector<64x256xf32> to vector<8x128xf32>
    %438 = tpu.concatenate %436, %437 in 1 : vector<8x128xf32>, vector<8x128xf32> -> vector<8x256xf32>
    %439 = arith.truncf %435 : vector<8x64xf32> to vector<8x64xbf16>
    %cst_66 = arith.constant dense<0.000000e+00> : vector<8x256xf32>
    %440 = tpu.matmul %439, %308, %cst_66 {dimension_numbers = #tpu.dot_dimension_numbers<[1], [0], [0], [1], [0, 0, 1, 1], [], []>} : vector<8x64xbf16>, vector<64x256xbf16>, vector<8x256xf32> -> vector<8x256xf32>
    %441 = arith.addf %438, %440 : vector<8x256xf32>
    %442 = arith.negf %441 : vector<8x256xf32>
    %443 = math.exp %442 : vector<8x256xf32>
    %cst_67 = arith.constant 1.000000e+00 : f32
    %444 = vector.broadcast %cst_67 : f32 to vector<8x256xf32>
    %445 = arith.addf %444, %443 : vector<8x256xf32>
    %446 = arith.divf %444, %445 : vector<8x256xf32>
    %447 = math.tanh %441 : vector<8x256xf32>
    %448 = vector.extract_strided_slice %446 {offsets = [0, 0], sizes = [8, 32], strides = [1, 1]} : vector<8x256xf32> to vector<8x32xf32>
    %449 = vector.extract_strided_slice %446 {offsets = [0, 32], sizes = [8, 32], strides = [1, 1]} : vector<8x256xf32> to vector<8x32xf32>
    %450 = vector.extract_strided_slice %447 {offsets = [0, 64], sizes = [8, 32], strides = [1, 1]} : vector<8x256xf32> to vector<8x32xf32>
    %451 = vector.extract_strided_slice %446 {offsets = [0, 96], sizes = [8, 32], strides = [1, 1]} : vector<8x256xf32> to vector<8x32xf32>
    %452 = vector.extract_strided_slice %432 {offsets = [0, 0], sizes = [8, 32], strides = [1, 1]} : vector<8x64xf32> to vector<8x32xf32>
    %453 = arith.mulf %449, %452 : vector<8x32xf32>
    %454 = arith.mulf %448, %450 : vector<8x32xf32>
    %455 = arith.addf %453, %454 : vector<8x32xf32>
    %456 = vector.extract_strided_slice %446 {offsets = [0, 128], sizes = [8, 32], strides = [1, 1]} : vector<8x256xf32> to vector<8x32xf32>
    %457 = vector.extract_strided_slice %446 {offsets = [0, 160], sizes = [8, 32], strides = [1, 1]} : vector<8x256xf32> to vector<8x32xf32>
    %458 = vector.extract_strided_slice %447 {offsets = [0, 192], sizes = [8, 32], strides = [1, 1]} : vector<8x256xf32> to vector<8x32xf32>
    %459 = vector.extract_strided_slice %446 {offsets = [0, 224], sizes = [8, 32], strides = [1, 1]} : vector<8x256xf32> to vector<8x32xf32>
    %460 = vector.extract_strided_slice %432 {offsets = [0, 32], sizes = [8, 32], strides = [1, 1]} : vector<8x64xf32> to vector<8x32xf32>
    %461 = arith.mulf %457, %460 : vector<8x32xf32>
    %462 = arith.mulf %456, %458 : vector<8x32xf32>
    %463 = arith.addf %461, %462 : vector<8x32xf32>
    %464 = tpu.concatenate %455, %463 in 1 : vector<8x32xf32>, vector<8x32xf32> -> vector<8x64xf32>
    %465 = tpu.concatenate %451, %459 in 1 : vector<8x32xf32>, vector<8x32xf32> -> vector<8x64xf32>
    %466 = math.tanh %464 : vector<8x64xf32>
    %467 = arith.mulf %465, %466 : vector<8x64xf32>
    %468 = vector.extract_strided_slice %306 {offsets = [40, 0], sizes = [8, 128], strides = [1, 1]} : vector<64x256xf32> to vector<8x128xf32>
    %469 = vector.extract_strided_slice %306 {offsets = [16, 128], sizes = [8, 128], strides = [1, 1]} : vector<64x256xf32> to vector<8x128xf32>
    %470 = tpu.concatenate %468, %469 in 1 : vector<8x128xf32>, vector<8x128xf32> -> vector<8x256xf32>
    %471 = arith.truncf %467 : vector<8x64xf32> to vector<8x64xbf16>
    %cst_68 = arith.constant dense<0.000000e+00> : vector<8x256xf32>
    %472 = tpu.matmul %471, %308, %cst_68 {dimension_numbers = #tpu.dot_dimension_numbers<[1], [0], [0], [1], [0, 0, 1, 1], [], []>} : vector<8x64xbf16>, vector<64x256xbf16>, vector<8x256xf32> -> vector<8x256xf32>
    %473 = arith.addf %470, %472 : vector<8x256xf32>
    %474 = arith.negf %473 : vector<8x256xf32>
    %475 = math.exp %474 : vector<8x256xf32>
    %cst_69 = arith.constant 1.000000e+00 : f32
    %476 = vector.broadcast %cst_69 : f32 to vector<8x256xf32>
    %477 = arith.addf %476, %475 : vector<8x256xf32>
    %478 = arith.divf %476, %477 : vector<8x256xf32>
    %479 = math.tanh %473 : vector<8x256xf32>
    %480 = vector.extract_strided_slice %478 {offsets = [0, 0], sizes = [8, 32], strides = [1, 1]} : vector<8x256xf32> to vector<8x32xf32>
    %481 = vector.extract_strided_slice %478 {offsets = [0, 32], sizes = [8, 32], strides = [1, 1]} : vector<8x256xf32> to vector<8x32xf32>
    %482 = vector.extract_strided_slice %479 {offsets = [0, 64], sizes = [8, 32], strides = [1, 1]} : vector<8x256xf32> to vector<8x32xf32>
    %483 = vector.extract_strided_slice %478 {offsets = [0, 96], sizes = [8, 32], strides = [1, 1]} : vector<8x256xf32> to vector<8x32xf32>
    %484 = vector.extract_strided_slice %464 {offsets = [0, 0], sizes = [8, 32], strides = [1, 1]} : vector<8x64xf32> to vector<8x32xf32>
    %485 = arith.mulf %481, %484 : vector<8x32xf32>
    %486 = arith.mulf %480, %482 : vector<8x32xf32>
    %487 = arith.addf %485, %486 : vector<8x32xf32>
    %488 = vector.extract_strided_slice %478 {offsets = [0, 128], sizes = [8, 32], strides = [1, 1]} : vector<8x256xf32> to vector<8x32xf32>
    %489 = vector.extract_strided_slice %478 {offsets = [0, 160], sizes = [8, 32], strides = [1, 1]} : vector<8x256xf32> to vector<8x32xf32>
    %490 = vector.extract_strided_slice %479 {offsets = [0, 192], sizes = [8, 32], strides = [1, 1]} : vector<8x256xf32> to vector<8x32xf32>
    %491 = vector.extract_strided_slice %478 {offsets = [0, 224], sizes = [8, 32], strides = [1, 1]} : vector<8x256xf32> to vector<8x32xf32>
    %492 = vector.extract_strided_slice %464 {offsets = [0, 32], sizes = [8, 32], strides = [1, 1]} : vector<8x64xf32> to vector<8x32xf32>
    %493 = arith.mulf %489, %492 : vector<8x32xf32>
    %494 = arith.mulf %488, %490 : vector<8x32xf32>
    %495 = arith.addf %493, %494 : vector<8x32xf32>
    %496 = tpu.concatenate %487, %495 in 1 : vector<8x32xf32>, vector<8x32xf32> -> vector<8x64xf32>
    %497 = tpu.concatenate %483, %491 in 1 : vector<8x32xf32>, vector<8x32xf32> -> vector<8x64xf32>
    %498 = math.tanh %496 : vector<8x64xf32>
    %499 = arith.mulf %497, %498 : vector<8x64xf32>
    %500 = vector.extract_strided_slice %306 {offsets = [48, 0], sizes = [8, 128], strides = [1, 1]} : vector<64x256xf32> to vector<8x128xf32>
    %501 = vector.extract_strided_slice %306 {offsets = [8, 128], sizes = [8, 128], strides = [1, 1]} : vector<64x256xf32> to vector<8x128xf32>
    %502 = tpu.concatenate %500, %501 in 1 : vector<8x128xf32>, vector<8x128xf32> -> vector<8x256xf32>
    %503 = arith.truncf %499 : vector<8x64xf32> to vector<8x64xbf16>
    %cst_70 = arith.constant dense<0.000000e+00> : vector<8x256xf32>
    %504 = tpu.matmul %503, %308, %cst_70 {dimension_numbers = #tpu.dot_dimension_numbers<[1], [0], [0], [1], [0, 0, 1, 1], [], []>} : vector<8x64xbf16>, vector<64x256xbf16>, vector<8x256xf32> -> vector<8x256xf32>
    %505 = arith.addf %502, %504 : vector<8x256xf32>
    %506 = arith.negf %505 : vector<8x256xf32>
    %507 = math.exp %506 : vector<8x256xf32>
    %cst_71 = arith.constant 1.000000e+00 : f32
    %508 = vector.broadcast %cst_71 : f32 to vector<8x256xf32>
    %509 = arith.addf %508, %507 : vector<8x256xf32>
    %510 = arith.divf %508, %509 : vector<8x256xf32>
    %511 = math.tanh %505 : vector<8x256xf32>
    %512 = vector.extract_strided_slice %510 {offsets = [0, 0], sizes = [8, 32], strides = [1, 1]} : vector<8x256xf32> to vector<8x32xf32>
    %513 = vector.extract_strided_slice %510 {offsets = [0, 32], sizes = [8, 32], strides = [1, 1]} : vector<8x256xf32> to vector<8x32xf32>
    %514 = vector.extract_strided_slice %511 {offsets = [0, 64], sizes = [8, 32], strides = [1, 1]} : vector<8x256xf32> to vector<8x32xf32>
    %515 = vector.extract_strided_slice %510 {offsets = [0, 96], sizes = [8, 32], strides = [1, 1]} : vector<8x256xf32> to vector<8x32xf32>
    %516 = vector.extract_strided_slice %496 {offsets = [0, 0], sizes = [8, 32], strides = [1, 1]} : vector<8x64xf32> to vector<8x32xf32>
    %517 = arith.mulf %513, %516 : vector<8x32xf32>
    %518 = arith.mulf %512, %514 : vector<8x32xf32>
    %519 = arith.addf %517, %518 : vector<8x32xf32>
    %520 = vector.extract_strided_slice %510 {offsets = [0, 128], sizes = [8, 32], strides = [1, 1]} : vector<8x256xf32> to vector<8x32xf32>
    %521 = vector.extract_strided_slice %510 {offsets = [0, 160], sizes = [8, 32], strides = [1, 1]} : vector<8x256xf32> to vector<8x32xf32>
    %522 = vector.extract_strided_slice %511 {offsets = [0, 192], sizes = [8, 32], strides = [1, 1]} : vector<8x256xf32> to vector<8x32xf32>
    %523 = vector.extract_strided_slice %510 {offsets = [0, 224], sizes = [8, 32], strides = [1, 1]} : vector<8x256xf32> to vector<8x32xf32>
    %524 = vector.extract_strided_slice %496 {offsets = [0, 32], sizes = [8, 32], strides = [1, 1]} : vector<8x64xf32> to vector<8x32xf32>
    %525 = arith.mulf %521, %524 : vector<8x32xf32>
    %526 = arith.mulf %520, %522 : vector<8x32xf32>
    %527 = arith.addf %525, %526 : vector<8x32xf32>
    %528 = tpu.concatenate %519, %527 in 1 : vector<8x32xf32>, vector<8x32xf32> -> vector<8x64xf32>
    %529 = tpu.concatenate %515, %523 in 1 : vector<8x32xf32>, vector<8x32xf32> -> vector<8x64xf32>
    %530 = math.tanh %528 : vector<8x64xf32>
    %531 = arith.mulf %529, %530 : vector<8x64xf32>
    %532 = vector.extract_strided_slice %306 {offsets = [56, 0], sizes = [8, 128], strides = [1, 1]} : vector<64x256xf32> to vector<8x128xf32>
    %533 = vector.extract_strided_slice %306 {offsets = [0, 128], sizes = [8, 128], strides = [1, 1]} : vector<64x256xf32> to vector<8x128xf32>
    %534 = tpu.concatenate %532, %533 in 1 : vector<8x128xf32>, vector<8x128xf32> -> vector<8x256xf32>
    %535 = arith.truncf %531 : vector<8x64xf32> to vector<8x64xbf16>
    %cst_72 = arith.constant dense<0.000000e+00> : vector<8x256xf32>
    %536 = tpu.matmul %535, %308, %cst_72 {dimension_numbers = #tpu.dot_dimension_numbers<[1], [0], [0], [1], [0, 0, 1, 1], [], []>} : vector<8x64xbf16>, vector<64x256xbf16>, vector<8x256xf32> -> vector<8x256xf32>
    %537 = arith.addf %534, %536 : vector<8x256xf32>
    %538 = arith.negf %537 : vector<8x256xf32>
    %539 = math.exp %538 : vector<8x256xf32>
    %cst_73 = arith.constant 1.000000e+00 : f32
    %540 = vector.broadcast %cst_73 : f32 to vector<8x256xf32>
    %541 = arith.addf %540, %539 : vector<8x256xf32>
    %542 = arith.divf %540, %541 : vector<8x256xf32>
    %543 = math.tanh %537 : vector<8x256xf32>
    %544 = vector.extract_strided_slice %542 {offsets = [0, 0], sizes = [8, 32], strides = [1, 1]} : vector<8x256xf32> to vector<8x32xf32>
    %545 = vector.extract_strided_slice %542 {offsets = [0, 32], sizes = [8, 32], strides = [1, 1]} : vector<8x256xf32> to vector<8x32xf32>
    %546 = vector.extract_strided_slice %543 {offsets = [0, 64], sizes = [8, 32], strides = [1, 1]} : vector<8x256xf32> to vector<8x32xf32>
    %547 = vector.extract_strided_slice %542 {offsets = [0, 96], sizes = [8, 32], strides = [1, 1]} : vector<8x256xf32> to vector<8x32xf32>
    %548 = vector.extract_strided_slice %528 {offsets = [0, 0], sizes = [8, 32], strides = [1, 1]} : vector<8x64xf32> to vector<8x32xf32>
    %549 = arith.mulf %545, %548 : vector<8x32xf32>
    %550 = arith.mulf %544, %546 : vector<8x32xf32>
    %551 = arith.addf %549, %550 : vector<8x32xf32>
    %552 = vector.extract_strided_slice %542 {offsets = [0, 128], sizes = [8, 32], strides = [1, 1]} : vector<8x256xf32> to vector<8x32xf32>
    %553 = vector.extract_strided_slice %542 {offsets = [0, 160], sizes = [8, 32], strides = [1, 1]} : vector<8x256xf32> to vector<8x32xf32>
    %554 = vector.extract_strided_slice %543 {offsets = [0, 192], sizes = [8, 32], strides = [1, 1]} : vector<8x256xf32> to vector<8x32xf32>
    %555 = vector.extract_strided_slice %542 {offsets = [0, 224], sizes = [8, 32], strides = [1, 1]} : vector<8x256xf32> to vector<8x32xf32>
    %556 = vector.extract_strided_slice %528 {offsets = [0, 32], sizes = [8, 32], strides = [1, 1]} : vector<8x64xf32> to vector<8x32xf32>
    %557 = arith.mulf %553, %556 : vector<8x32xf32>
    %558 = arith.mulf %552, %554 : vector<8x32xf32>
    %559 = arith.addf %557, %558 : vector<8x32xf32>
    %560 = tpu.concatenate %551, %559 in 1 : vector<8x32xf32>, vector<8x32xf32> -> vector<8x64xf32>
    %561 = tpu.concatenate %547, %555 in 1 : vector<8x32xf32>, vector<8x32xf32> -> vector<8x64xf32>
    %562 = math.tanh %560 : vector<8x64xf32>
    %563 = arith.mulf %561, %562 : vector<8x64xf32>
    %564 = vector.extract_strided_slice %563 {offsets = [0, 0], sizes = [8, 32], strides = [1, 1]} : vector<8x64xf32> to vector<8x32xf32>
    %565 = tpu.concatenate %564, %339 in 1 : vector<8x32xf32>, vector<8x32xf32> -> vector<8x64xf32>
    %566 = arith.truncf %565 : vector<8x64xf32> to vector<8x64xbf16>
    %c0_74 = arith.constant 0 : index
    %c0_75 = arith.constant 0 : index
    %567 = vector.load %arg6[%c0_74, %c0_75] : memref<64x128xbf16, #tpu.memory_space<vmem>>, vector<64x128xbf16>
    %cst_76 = arith.constant dense<0.000000e+00> : vector<8x128xf32>
    %568 = tpu.matmul %566, %567, %cst_76 {dimension_numbers = #tpu.dot_dimension_numbers<[1], [0], [0], [1], [0, 0, 1, 1], [], []>} : vector<8x64xbf16>, vector<64x128xbf16>, vector<8x128xf32> -> vector<8x128xf32>
    %c0_77 = arith.constant 0 : index
    %c0_78 = arith.constant 0 : index
    %569 = vector.load %arg7[%c0_77, %c0_78] : memref<1x128xf32, #tpu.memory_space<vmem>>, vector<1x128xf32>
    %570 = vector.broadcast %569 : vector<1x128xf32> to vector<8x128xf32>
    %571 = arith.addf %568, %570 : vector<8x128xf32>
    %c0_79 = arith.constant 0 : index
    %c0_80 = arith.constant 0 : index
    %572 = vector.load %arg8[%c0_79, %c0_80] : memref<8x128xf32, #tpu.memory_space<vmem>>, vector<8x128xf32>
    tpu.vector_store %arg8[%c0_79, %c0_80], %571 {strides = array<i32>} : memref<8x128xf32, #tpu.memory_space<vmem>>, vector<8x128xf32>,
    return
  }
}

</mosaic_0001>

<bundles_post_ra>
// kernel: textrnn_forward.1
= control target key start
LH: loop header
LB: loop body
LE: loop exit
PB: predicated region body
PF: predicated region fallthrough
CT: control target
= control target key end

     0   :  { %13 = vsyncpa [#allocation4], 0  ;;  %s3629_s0 = inlined_call_operand.vmem [shape: s32[64,1], index: 0, kind: input, shape index: {}]   ;;  %s3630_s1 = inlined_call_operand.hbm [shape: bf16[128,256], index: 1, kind: input, shape index: {}]   ;;  %s3631_s2 = inlined_call_operand.vmem [shape: f32[1,256], index: 2, kind: input, shape index: {}]   ;;  %s3632_s3 = inlined_call_operand.vmem [shape: bf16[64,256], index: 3, kind: input, shape index: {}]   ;;  %s3633_s4 = inlined_call_operand.vmem [shape: f32[1,256], index: 4, kind: input, shape index: {}]   ;;  %s3634_s5 = inlined_call_operand.hbm [shape: bf16[2,64,256], index: 5, kind: input, shape index: {}]   ;;  %s3635_s6 = inlined_call_operand.vmem [shape: bf16[64,128], index: 6, kind: input, shape index: {}]   ;;  %s3636_s7 = inlined_call_operand.vmem [shape: f32[1,128], index: 7, kind: input, shape index: {}]   ;;  %s3637_s8 = inlined_call_operand.vmem [shape: f32[8,128], index: 8, kind: output, shape index: {}]  }
   0x1   :  { %s21_s29 = sshll.u32 %s3630_s1, 4  ;;  %s22_s29 = int_to_ptr.hbm [resolvable:$true] %s21_s29 }
   0x2   :  { %14 = vsyncpa [#allocation6], 0  ;;  %s2951_s30 = smov [#allocation3]   ;;  %s40_s12 = sshll.u32 %s3634_s5, 4  ;;  %s41_s12 = int_to_ptr.hbm [resolvable:$true] %s40_s12 }
   0x3   :  { %s23_s9 = sshll.u32 %s2951_s30, 4  ;;  %s2952_s13 = smov 128   ;;  %s24_s9 = int_to_ptr.vmem [resolvable:$true] %s23_s9 }
   0x4   :  { %s2953_s14 = smov 8   ;;  %s2954_s15 = smov [#allocation5]  }
   0x5   :  { %29 = dma.hbm_to_vmem [thread:$0]  %s22_s29, 2048, %s24_s9, [#allocation4], %s2952_s13, %s2952_s13, %s2953_s14  }
   0x6   :  { %s42_s16 = sshll.u32 %s2954_s15, 4  ;;  %s43_s16 = int_to_ptr.vmem [resolvable:$true] %s42_s16 }
   0x7   :  { %48 = dma.hbm_to_vmem [thread:$0]  %s41_s12, 2048, %s43_s16, [#allocation6], %s2952_s13, %s2952_s13, %s2953_s14  }
   0x8   :  { %2947 = dma.done.wait [#allocation4], 2048  }
   0x9   :  { %2948 = vsyncadd [#allocation4], 4294965248 }
   0xa   :  { %2949 = dma.done.wait [#allocation6], 2048  }
   0xb   :  { %2950 = vsyncadd [#allocation6], 4294965248  ;;  %v2955_v0 = vmov 0   ;;  %v64_v1 = vld [vmem:[%s3629_s0 + $0x10] sm:$0xff]  ;;  %v62_v2 = vld [vmem:[%s3629_s0] sm:$0xff]  ;;  %v70_v58 = vlaneseq  ;;  %s2957_s10 = smov 64  }
   0xc   :  { %2672 = vset.pattern.permute.xlu1 %v2955_v0  ;;  %2671 = vset.pattern.permute.xlu0 %v2955_v0  ;;  %v66_v3 = vld [vmem:[%s3629_s0 + $0x20] sm:$0xff]  ;;  %v2415_v4 = vld [vmem:[#allocation3 + $0x70] sm:$0xf]  ;;  %v2633_v5 = vld [vmem:[#allocation3 + $0x74] sm:$0xf0]  ;;  %s2959_s11 = smov 96  }
   0xd   :  { %2673 = vset.pattern.permute.xlu2 %v2955_v0  ;;  %79 = vperm.xlu1 %2672, %v64_v1   ;;  %v2632_v6 = vld [vmem:[#allocation3 + $0x74] sm:$0xf]  ;;  %v2417_v7 = vld [vmem:[#allocation3 + $0x78] sm:$0xf0]  ;;  %v2416_v8 = vor.u32 %v2633_v5, %v2415_v4  ;;  %v2407_v10 = vld [vmem:[#allocation3 + $0x60] sm:$0xf] }
   0xe   :  { %73 = vperm.xlu0 %2671, %v62_v2   ;;  %85 = vperm.xlu2 %2673, %v66_v3   ;;  %v2420_v9 = vor.u32 %v2632_v6, %v2417_v7  ;;  %v2631_v11 = vld [vmem:[#allocation3 + $0x64] sm:$0xf0]  ;;  %v2630_v12 = vld [vmem:[#allocation3 + $0x64] sm:$0xf]  ;;  %v2409_v13 = vld [vmem:[#allocation3 + $0x68] sm:$0xf0] }
   0xf   :  { %v65_v14 = vld [vmem:[%s3629_s0 + $0x18] sm:$0xff]  ;;  %v63_v15 = vld [vmem:[%s3629_s0 + $0x8] sm:$0xff]  ;;  %226 = vmatpush.bf16.msra.mxu0 %v2416_v8  ;;  %v2408_v16 = vor.u32 %v2631_v11, %v2407_v10  ;;  %v2412_v17 = vor.u32 %v2630_v12, %v2409_v13  ;;  %v2399_v18 = vld [vmem:[#allocation3 + $0x50] sm:$0xf]  ;;  %v71_v59 = vand.u32 127, %v70_v58 }
  0x10   :  { %255 = vmatpush.bf16.msra.mxu1 %v2420_v9  ;;  %v2629_v19 = vld [vmem:[#allocation3 + $0x54] sm:$0xf0]  ;;  %v2628_v20 = vld [vmem:[#allocation3 + $0x54] sm:$0xf]  ;;  %v2401_v21 = vld [vmem:[#allocation3 + $0x58] sm:$0xf0] }
  0x11   :  { %v67_v22 = vld [vmem:[%s3629_s0 + $0x28] sm:$0xff]  ;;  %v2400_v23 = vor.u32 %v2629_v19, %v2399_v18  ;;  %v2404_v24 = vor.u32 %v2628_v20, %v2401_v21  ;;  %v2391_v25 = vld [vmem:[#allocation3 + $0x40] sm:$0xf]  ;;  %v2626_v27 = vld [vmem:[#allocation3 + $0x44] sm:$0xf] }
  0x12   :  { %v2627_v26 = vld [vmem:[#allocation3 + $0x44] sm:$0xf0]  ;;  %v2393_v28 = vld [vmem:[#allocation3 + $0x48] sm:$0xf0]  ;;  %v69_v29 = vld [vmem:[%s3629_s0 + $0x38] sm:$0xff] }
  0x13   :  { %227 = vmatpush.bf16.msra.mxu0 %v2408_v16  ;;  %v68_v30 = vld [vmem:[%s3629_s0 + $0x30] sm:$0xff]  ;;  %v2392_v31 = vor.u32 %v2627_v26, %v2391_v25  ;;  %v2396_v32 = vor.u32 %v2626_v27, %v2393_v28  ;;  %v2625_v34 = vld [vmem:[#allocation3 + $0x34] sm:$0xf0]  ;;  %v2385_v36 = vld [vmem:[#allocation3 + $0x38] sm:$0xf0] }
  0x14   :  { %256 = vmatpush.bf16.msra.mxu1 %v2412_v17  ;;  %v2383_v33 = vld [vmem:[#allocation3 + $0x30] sm:$0xf]  ;;  %v2624_v35 = vld [vmem:[#allocation3 + $0x34] sm:$0xf]  ;;  %v2375_v39 = vld [vmem:[#allocation3 + $0x20] sm:$0xf] }
  0x15   :  { %82 = vperm.xlu1 %2672, %v65_v14   ;;  %v2384_v37 = vor.u32 %v2625_v34, %v2383_v33  ;;  %v2388_v38 = vor.u32 %v2624_v35, %v2385_v36  ;;  %v2623_v40 = vld [vmem:[#allocation3 + $0x24] sm:$0xf0]  ;;  %v2622_v41 = vld [vmem:[#allocation3 + $0x24] sm:$0xf]  ;;  %v2377_v42 = vld [vmem:[#allocation3 + $0x28] sm:$0xf0] }
  0x16   :  { %76 = vperm.xlu0 %2671, %v63_v15   ;;  %88 = vperm.xlu2 %2673, %v67_v22   ;;  %v2376_v43 = vor.u32 %v2623_v40, %v2375_v39  ;;  %v2380_v44 = vor.u32 %v2622_v41, %v2377_v42  ;;  %v2367_v45 = vld [vmem:[#allocation3 + $0x10] sm:$0xf]  ;;  %v2621_v46 = vld [vmem:[#allocation3 + $0x14] sm:$0xf0]  ;;  %v2620_v47 = vld [vmem:[#allocation3 + $0x14] sm:$0xf] }
  0x17   :  { %228 = vmatpush.bf16.msra.mxu0 %v2400_v23  ;;  %v2368_v48 = vor.u32 %v2621_v46, %v2367_v45  ;;  %v2369_v49 = vld [vmem:[#allocation3 + $0x18] sm:$0xf0]  ;;  %v2359_v50 = vld [vmem:[#allocation3] sm:$0xf]  ;;  %v2619_v51 = vld [vmem:[#allocation3 + $0x4] sm:$0xf0] }
  0x18   :  { %257 = vmatpush.bf16.msra.mxu1 %v2404_v24  ;;  %v2372_v52 = vor.u32 %v2620_v47, %v2369_v49  ;;  %v2618_v53 = vld [vmem:[#allocation3 + $0x4] sm:$0xf]  ;;  %v2361_v54 = vld [vmem:[#allocation3 + $0x8] sm:$0xf0]  ;;  %v2360_v55 = vor.u32 %v2619_v51, %v2359_v50  ;;  %v2956_v62 = vmov 1.0|1.0  }
  0x19   :  { %v2364_v56 = vor.u32 %v2618_v53, %v2361_v54  ;;  %v140_v4 = vld [vmem:[%s3631_s2] sm:$0x3]  ;;  %s2958_s2 = smov 32  }
  0x1a   :  { %v3038_v5 = vperm.slane %v140_v4, 0  ;;  %v143_v6 = vperm.slane %v140_v4, 1  ;;  %v2638_v4 = vld [vmem:[#allocation5 + $0x24] sm:$0xf] }
  0x1b   :  { %229 = vmatpush.bf16.msra.mxu0 %v2392_v31 }
  0x1c   :  { %258 = vmatpush.bf16.msra.mxu1 %v2396_v32 }
  0x1d   :  { %94 = vperm.xlu1 %2672, %v69_v29  }
  0x1e   :  { %91 = vperm.xlu0 %2671, %v68_v30  }
  0x1f   :  { %230 = vmatpush.bf16.msra.mxu0 %v2384_v37 }
  0x20   :  { %259 = vmatpush.bf16.msra.mxu1 %v2388_v38 }
  0x23   :  { %231 = vmatpush.bf16.msra.mxu0 %v2376_v43 }
  0x24   :  { %260 = vmatpush.bf16.msra.mxu1 %v2380_v44 }
  0x27   :  { %232 = vmatpush.bf16.msra.mxu0 %v2368_v48 }
  0x28   :  { %261 = vmatpush.bf16.msra.mxu1 %v2372_v52 }
  0x2b   :  { %233 = vmatpush.bf16.msra.mxu0 %v2360_v55 }
  0x2c   :  { %262 = vmatpush.bf16.msra.mxu1 %v2364_v56 }
  0x68   :  { %v86_v0 = vpop.permute.xlu2 %85 }
  0x69   :  { %vm100_vm6 = vcmp.eq.s32.totalorder %v71_v59, %v86_v0  ;;  %v2467_v0 = vld [vmem:[#allocation5 + $0x38] sm:$0xf0] }
  0x70   :  { %v89_v1 = vpop.permute.xlu2 %88 }
  0x71   :  { %vm101_vm7 = vcmp.eq.s32.totalorder %v71_v59, %v89_v1 }
  0x72   :  { %vm2425_vm8 = vmpackc.low %vm101_vm7, %vm100_vm6  ;;  %vm415_vm6 = vcmask 523264  }
  0x7f   :  { %v80_v61 = vpop.permute.xlu1 %79 }
  0x80   :  { %v74_v57 = vpop.permute.xlu0 %73  ;;  %vm98_vm3 = vcmp.eq.s32.totalorder %v71_v59, %v80_v61  ;;  %v2641_v61 = vld [vmem:[#allocation5 + $0x34] sm:$0xf0] }
  0x81   :  { %vm96_vm1 = vcmp.eq.s32.totalorder %v71_v59, %v74_v57 }
  0x87   :  { %v83_v63 = vpop.permute.xlu1 %82 }
  0x88   :  { %v77_v60 = vpop.permute.xlu0 %76  ;;  %vm99_vm4 = vcmp.eq.s32.totalorder %v71_v59, %v83_v63 }
  0x89   :  { %vm97_vm0 = vcmp.eq.s32.totalorder %v71_v59, %v77_v60  ;;  %vm2423_vm5 = vmpackc.low %vm99_vm4, %vm98_vm3  ;;  %v2465_v60 = vld [vmem:[#allocation5 + $0x30] sm:$0xf]  ;;  %vm358_vm4 = vcmask 261120  }
  0x8a   :  { %vm2421_vm2 = vmpackc.low %vm97_vm0, %vm96_vm1  ;;  %v3062_v63 = vor.u32 %v2641_v61, %v2465_v60 }
  0x8b   :  { %2422 = vmatmul.msk.bf16.vlgmr.msra.gmra.mxu0 %vm2421_vm2, %v2956_v62  ;;  %2430 = vmatmul.msk.bf16.vlgmr.msra.gmra.mxu1 %vm2421_vm2, %v2956_v62 }
  0x8c   :  { %423 = vmatpush.bf16.msra.mxu2 %v3062_v63  ;;  %1003 = vmatpush.bf16.msrb.mxu0 %v3062_v63 }
  0x8f   :  { %v95_v2 = vpop.permute.xlu1 %94 }
  0x90   :  { %v92_v3 = vpop.permute.xlu0 %91  ;;  %vm103_vm9 = vcmp.eq.s32.totalorder %v71_v59, %v95_v2  ;;  %v2457_v2 = vld [vmem:[#allocation5 + $0x20] sm:$0xf] }
  0x91   :  { %vm102_vm10 = vcmp.eq.s32.totalorder %v71_v59, %v92_v3  ;;  %v2639_v3 = vld [vmem:[#allocation5 + $0x24] sm:$0xf0] }
  0x92   :  { %vm2427_vm11 = vmpackc.low %vm103_vm9, %vm102_vm10 }
  0x9b   :  { %2424 = vmatmul.msk.bf16.gmra.mxu0 %vm2423_vm5, %v2956_v62  ;;  %2432 = vmatmul.msk.bf16.gmra.mxu1 %vm2423_vm5, %v2956_v62  ;;  %vm372_vm5 = vcmask 523520  }
  0xab   :  { %2426 = vmatmul.msk.bf16.gmra.mxu0 %vm2425_vm8, %v2956_v62  ;;  %2434 = vmatmul.msk.bf16.gmra.mxu1 %vm2425_vm8, %v2956_v62 }
  0xbb   :  { %2428 = vmatmul.msk.bf16.gmra.mxu0 %vm2427_vm11, %v2956_v62  ;;  %2436 = vmatmul.msk.bf16.gmra.mxu1 %vm2427_vm11, %v2956_v62  ;;  %v2640_v62 = vld [vmem:[#allocation5 + $0x34] sm:$0xf] }
  0xbc   :  { %v3064_v1 = vor.u32 %v2640_v62, %v2467_v0 }
  0xbe   :  { %436 = vmatpush.bf16.msra.mxu3 %v3064_v1  ;;  %1016 = vmatpush.bf16.msrb.mxu1 %v3064_v1 }
 0x108   :  { %v235_v7 = vpop.f32.mrf.mxu0  ;;  %v264_v8 = vpop.f32.mrf.mxu1 }
 0x109   :  { %v236_v9 = vadd.f32 %v235_v7, %v3038_v5  ;;  %v3041_v10 = vadd.f32 %v264_v8, %v143_v6  ;;  %v2459_v7 = vld [vmem:[#allocation5 + $0x28] sm:$0xf0] }
 0x10a   :  { %v3072_v8 = vor.u32 %v2638_v4, %v2459_v7 }
 0x10b   :  { %2675 = vtanh.f32 %v236_v9  ;;  %v2437_v24 = vmul.f32 -1.442695, %v236_v9  ;;  %v2449_v9 = vld [vmem:[#allocation5 + $0x10] sm:$0xf] }
 0x10c   :  { %437 = vmatpush.bf16.msra.mxu3 %v3072_v8  ;;  %1017 = vmatpush.bf16.msrb.mxu1 %v3072_v8 }
 0x10d   :  { %2677 = vpow2.f32 %v2437_v24  ;;  %v2634_v24 = vld [vmem:[#allocation5 + $0x4] sm:$0xf] }
 0x110   :  { %v266_v11 = vpop.f32.mrf.mxu1 }
 0x111   :  { %v2676_v12 = vpop.eup %2675  ;;  %v3043_v13 = vadd.f32 %v266_v11, %v143_v6  ;;  %v2637_v11 = vld [vmem:[#allocation5 + $0x14] sm:$0xf0] }
 0x112   :  { %334 = vrot.lane.b32.xlu2 %v2676_v12, %s2957_s10  ;;  %v2636_v12 = vld [vmem:[#allocation5 + $0x14] sm:$0xf] }
 0x113   :  { %v2678_v27 = vpop.eup %2677 }
 0x114   :  { %v298_v29 = vadd.f32 1.0, %v2678_v27 }
 0x116   :  { %v311_v35 = vand.u32 2147483648, %v298_v29  ;;  %vm305_vm13 = vweird.f32 %v298_v29  ;;  %v309_v36 = vand.u32 2147483647, %v298_v29 }
 0x118   :  { %v269_v14 = vpop.f32.mrf.mxu1  ;;  %v312_v38 = vor.u32 1.1754944e-38, %v311_v35  ;;  %vm310_vm15 = vcmp.eq.f32.partialorder %v309_v36, 8.507059e+37 }
 0x119   :  { %v3046_v15 = vadd.f32 %v269_v14, %v143_v6  ;;  %v3077_v14 = vor.u32 %v2637_v11, %v2449_v9 }
 0x120   :  { %v271_v16 = vpop.f32.mrf.mxu1 }
 0x121   :  { %v3048_v17 = vadd.f32 %v271_v16, %v143_v6  ;;  %v2451_v16 = vld [vmem:[#allocation5 + $0x18] sm:$0xf0] }
 0x128   :  { %v274_v18 = vpop.f32.mrf.mxu1 }
 0x129   :  { %v3050_v19 = vadd.f32 %v274_v18, %v143_v6  ;;  %v2441_v18 = vld [vmem:[#allocation5] sm:$0xf] }
 0x130   :  { %v276_v20 = vpop.f32.mrf.mxu1 }
 0x131   :  { %v3052_v21 = vadd.f32 %v276_v20, %v143_v6  ;;  %v2635_v20 = vld [vmem:[#allocation5 + $0x4] sm:$0xf0] }
 0x138   :  { %v279_v22 = vpop.f32.mrf.mxu1 }
 0x139   :  { %v3054_v23 = vadd.f32 %v279_v22, %v143_v6  ;;  %v3080_v22 = vor.u32 %v2636_v12, %v2451_v16 }
 0x13b   :  { %438 = vmatpush.bf16.msra.mxu3 %v3080_v22  ;;  %1018 = vmatpush.bf16.msrb.mxu1 %v3080_v22 }
 0x140   :  { %v281_v25 = vpop.f32.mrf.mxu1 }
 0x141   :  { %v282_v26 = vadd.f32 %v281_v25, %v143_v6  ;;  %v3070_v6 = vor.u32 %v2639_v3, %v2457_v2  ;;  %v2443_v25 = vld [vmem:[#allocation5 + $0x8] sm:$0xf0] }
 0x142   :  { %v3087_v27 = vor.u32 %v2634_v24, %v2443_v25 }
 0x143   :  { %2679 = vtanh.f32 %v282_v26  ;;  %v2438_v42 = vmul.f32 -1.442695, %v282_v26  ;;  %424 = vmatpush.bf16.msra.mxu2 %v3070_v6  ;;  %1004 = vmatpush.bf16.msrb.mxu0 %v3070_v6  ;;  %v3083_v26 = vor.u32 %v2635_v20, %v2441_v18 }
 0x144   :  { %2681 = vrcp.f32 %v298_v29  ;;  %439 = vmatpush.bf16.msra.mxu3 %v3087_v27  ;;  %1019 = vmatpush.bf16.msrb.mxu1 %v3087_v27 }
 0x145   :  { %2683 = vpow2.f32 %v2438_v42 }
 0x147   :  { %425 = vmatpush.bf16.msra.mxu2 %v3077_v14  ;;  %1005 = vmatpush.bf16.msrb.mxu0 %v3077_v14 }
 0x148   :  { %552 = vmatpush.bf16.msrb.mxu3 %v3064_v1 }
 0x149   :  { %v2680_v28 = vpop.eup %2679 }
 0x14a   :  { %345 = vrot.lane.b32.xlu0 %v2680_v28, %s2957_s10  ;;  %v2682_v30 = vpop.eup %2681 }
 0x14b   :  { %v301_v31 = vmul.f32 %v2682_v30, %v298_v29  ;;  %vm306_vm12 = vweird.f32 %v2682_v30  ;;  %v2684_v43 = vpop.eup %2683  ;;  %426 = vmatpush.bf16.msra.mxu2 %v3083_v26  ;;  %1006 = vmatpush.bf16.msrb.mxu0 %v3083_v26 }
 0x14c   :  { %vm307_vm14 = vmor %vm305_vm13, %vm306_vm12  ;;  %v299_v44 = vadd.f32 1.0, %v2684_v43  ;;  %553 = vmatpush.bf16.msrb.mxu3 %v3072_v8 }
 0x14d   :  { %v302_v32 = vsub.f32 1.0, %v301_v31 }
 0x14e   :  { %2685 = vrcp.f32 %v299_v44  ;;  %v326_v50 = vand.u32 2147483648, %v299_v44  ;;  %vm320_vm1 = vweird.f32 %v299_v44  ;;  %v324_v51 = vand.u32 2147483647, %v299_v44 }
 0x14f   :  { %v303_v33 = vmul.f32 %v2682_v30, %v302_v32  ;;  %539 = vmatpush.bf16.msrb.mxu2 %v3062_v63 }
 0x150   :  { %v327_v53 = vor.u32 1.1754944e-38, %v326_v50  ;;  %vm325_vm3 = vcmp.eq.f32.partialorder %v324_v51, 8.507059e+37  ;;  %554 = vmatpush.bf16.msrb.mxu3 %v3080_v22 }
 0x151   :  { %v304_v34 = vadd.f32 %v2682_v30, %v303_v33 }
 0x153   :  { %v308_v37 = vsel %vm307_vm14, %v2682_v30, %v304_v34  ;;  %540 = vmatpush.bf16.msrb.mxu2 %v3070_v6 }
 0x154   :  { %v313_v40 = vsel %vm310_vm15, %v312_v38, %v308_v37  ;;  %v2686_v45 = vpop.eup %2685  ;;  %555 = vmatpush.bf16.msrb.mxu3 %v3087_v27 }
 0x155   :  { %v316_v46 = vmul.f32 %v2686_v45, %v299_v44  ;;  %vm321_vm0 = vweird.f32 %v2686_v45  ;;  %v332_v57 = vmul.f32 0.0, %v313_v40 }
 0x156   :  { %vm322_vm2 = vmor %vm320_vm1, %vm321_vm0 }
 0x157   :  { %v317_v47 = vsub.f32 1.0, %v316_v46  ;;  %541 = vmatpush.bf16.msrb.mxu2 %v3077_v14 }
 0x159   :  { %v318_v48 = vmul.f32 %v2686_v45, %v317_v47 }
 0x15b   :  { %v319_v49 = vadd.f32 %v2686_v45, %v318_v48  ;;  %542 = vmatpush.bf16.msrb.mxu2 %v3083_v26 }
 0x15d   :  { %v323_v52 = vsel %vm322_vm2, %v2686_v45, %v319_v49 }
 0x15e   :  { %v328_v55 = vsel %vm325_vm3, %v327_v53, %v323_v52 }
 0x15f   :  { %v343_v29 = vmul.f32 0.0, %v328_v55 }
 0x16c   :  { %v335_v39 = vpop.permute.xlu2 %334 }
 0x16d   :  { %v337_v41 = vmul.f32 %v335_v39, %v313_v40  ;;  %v237_v39 = vpop.f32.mrf.mxu0 }
 0x16f   :  { %339 = vrot.lane.b32.xlu1 %v337_v41, %s2958_s2 }
 0x177   :  { %361 = vrot.lane.b32.xlu1 %v313_v40, %s2958_s2  ;;  %v238_v40 = vadd.f32 %v237_v39, %v3038_v5 }
 0x1bc   :  { %v346_v54 = vpop.permute.xlu0 %345 }
 0x1bd   :  { %v348_v56 = vmul.f32 %v346_v54, %v328_v55 }
 0x1bf   :  { %350 = vrot.lane.b32.xlu2 %v348_v56, %s2958_s2 }
 0x1c7   :  { %365 = vrot.lane.b32.xlu2 %v328_v55, %s2957_s10 }
 0x1e1   :  { %v340_v58 = vpop.permute.xlu1 %339 }
 0x1e2   :  { %v342_v59 = vadd.f32 %v340_v58, %v332_v57 }
 0x1e4   :  { %355 = vrot.lane.b32.xlu0 %v342_v59, %s2959_s11 }
 0x1e9   :  { %v362_v34 = vpop.permute.xlu1 %361 }
 0x219   :  { %v351_v28 = vpop.permute.xlu2 %350 }
 0x21a   :  { %v353_v30 = vadd.f32 %v351_v28, %v343_v29 }
 0x221   :  { %v366_v33 = vpop.permute.xlu2 %365 }
 0x222   :  { %v368_v36 = vsel %vm358_vm4, %v362_v34, %v366_v33 }
 0x256   :  { %v356_v31 = vpop.permute.xlu0 %355 }
 0x257   :  { %v3103_v32 = vsel %vm358_vm4, %v356_v31, %v353_v30 }
 0x258   :  { %488 = vrot.lane.b32.xlu1 %v3103_v32, %s2958_s2  ;;  %2687 = vtanh.f32 %v3103_v32 }
 0x25e   :  { %v2688_v35 = vpop.eup %2687 }
 0x25f   :  { %v370_v37 = vmul.f32 %v2688_v35, %v368_v36 }
 0x261   :  { %371 = vst.msk [vmem:[#allocation2] sm:$0xff] %vm358_vm4, %v370_v37  ;;  %v374_v38 = vpack.c.bf16 %v370_v37, %v370_v37 }
 0x262   :  { %373 = vst.msk [vmem:[#allocation2 + $0x38] sm:$0xff] %vm372_vm5, %v370_v37 }
 0x263   :  { %2471 = vmatmul.msk.bf16.vlgmr.msra.gmra.mxu2 %vm415_vm6, %v374_v38  ;;  %2472 = vmatmul.msk.bf16.vlgmr.msra.gmra.mxu3 %vm415_vm6, %v374_v38 }
 0x264   :  { %655 = vmatpush.bf16.msra.mxu2 %v3062_v63  ;;  %668 = vmatpush.bf16.msra.mxu3 %v3064_v1 }
 0x268   :  { %656 = vmatpush.bf16.msra.mxu2 %v3070_v6  ;;  %669 = vmatpush.bf16.msra.mxu3 %v3072_v8 }
 0x26c   :  { %657 = vmatpush.bf16.msra.mxu2 %v3077_v14  ;;  %670 = vmatpush.bf16.msra.mxu3 %v3080_v22 }
 0x270   :  { %658 = vmatpush.bf16.msra.mxu2 %v3083_v26  ;;  %671 = vmatpush.bf16.msra.mxu3 %v3087_v27 }
 0x2ca   :  { %v489_v30 = vpop.permute.xlu1 %488 }
 0x2e6   :  { %v428_v41 = vpop.f32.mrf.mxu2  ;;  %v441_v42 = vpop.f32.mrf.mxu3 }
 0x2e7   :  { %v445_v43 = vadd.f32 %v428_v41, %v238_v40  ;;  %v446_v44 = vadd.f32 %v441_v42, %v3054_v23 }
 0x2e9   :  { %2689 = vtanh.f32 %v445_v43  ;;  %v2474_v49 = vmul.f32 -1.442695, %v446_v44  ;;  %v2473_v53 = vmul.f32 -1.442695, %v445_v43 }
 0x2ea   :  { %2691 = vtanh.f32 %v446_v44 }
 0x2eb   :  { %2693 = vpow2.f32 %v2474_v49 }
 0x2ee   :  { %v430_v45 = vpop.f32.mrf.mxu2  ;;  %v443_v46 = vpop.f32.mrf.mxu3 }
 0x2ef   :  { %v2690_v47 = vpop.eup %2689 }
 0x2f0   :  { %v2692_v48 = vpop.eup %2691  ;;  %493 = vrot.lane.b32.xlu0 %v2690_v47, %s2957_s10 }
 0x2f1   :  { %504 = vrot.lane.b32.xlu2 %v2692_v48, %s2957_s10  ;;  %v2694_v50 = vpop.eup %2693 }
 0x2f2   :  { %v454_v51 = vadd.f32 1.0, %v2694_v50 }
 0x2f4   :  { %2695 = vrcp.f32 %v454_v51  ;;  %v481_v59 = vand.u32 2147483648, %v454_v51  ;;  %vm475_vm8 = vweird.f32 %v454_v51  ;;  %v479_v60 = vand.u32 2147483647, %v454_v51 }
 0x2f5   :  { %2697 = vpow2.f32 %v2473_v53 }
 0x2f6   :  { %v482_v62 = vor.u32 1.1754944e-38, %v481_v59  ;;  %vm480_vm10 = vcmp.eq.f32.partialorder %v479_v60, 8.507059e+37 }
 0x2fa   :  { %v2696_v52 = vpop.eup %2695 }
 0x2fb   :  { %v471_v54 = vmul.f32 %v2696_v52, %v454_v51  ;;  %v2698_v55 = vpop.eup %2697  ;;  %vm476_vm7 = vweird.f32 %v2696_v52 }
 0x2fc   :  { %v453_v57 = vadd.f32 1.0, %v2698_v55  ;;  %vm477_vm9 = vmor %vm475_vm8, %vm476_vm7 }
 0x2fd   :  { %v472_v23 = vsub.f32 1.0, %v471_v54 }
 0x2fe   :  { %2699 = vrcp.f32 %v453_v57  ;;  %v466_v16 = vand.u32 2147483648, %v453_v57  ;;  %vm460_vm12 = vweird.f32 %v453_v57  ;;  %v464_v18 = vand.u32 2147483647, %v453_v57 }
 0x2ff   :  { %v473_v56 = vmul.f32 %v2696_v52, %v472_v23 }
 0x300   :  { %v467_v24 = vor.u32 1.1754944e-38, %v466_v16  ;;  %vm465_vm14 = vcmp.eq.f32.partialorder %v464_v18, 8.507059e+37 }
 0x301   :  { %v474_v58 = vadd.f32 %v2696_v52, %v473_v56 }
 0x303   :  { %v478_v61 = vsel %vm477_vm9, %v2696_v52, %v474_v58 }
 0x304   :  { %v483_v2 = vsel %vm480_vm10, %v482_v62, %v478_v61  ;;  %v2700_v3 = vpop.eup %2699 }
 0x305   :  { %v456_v7 = vmul.f32 %v2700_v3, %v453_v57  ;;  %vm461_vm11 = vweird.f32 %v2700_v3  ;;  %v502_v36 = vmul.f32 %v483_v2, %v3103_v32  ;;  %v240_v32 = vpop.f32.mrf.mxu0 }
 0x306   :  { %vm462_vm13 = vmor %vm460_vm12, %vm461_vm11  ;;  %v241_v46 = vadd.f32 %v240_v32, %v3038_v5 }
 0x307   :  { %v457_v9 = vsub.f32 1.0, %v456_v7 }
 0x309   :  { %v458_v11 = vmul.f32 %v2700_v3, %v457_v9 }
 0x30b   :  { %v459_v12 = vadd.f32 %v2700_v3, %v458_v11 }
 0x30d   :  { %v463_v20 = vsel %vm462_vm13, %v2700_v3, %v459_v12 }
 0x30e   :  { %v468_v28 = vsel %vm465_vm14, %v467_v24, %v463_v20 }
 0x30f   :  { %v491_v31 = vmul.f32 %v489_v30, %v468_v28 }
 0x34b   :  { %v505_v0 = vpop.permute.xlu2 %504 }
 0x34c   :  { %v507_v4 = vmul.f32 %v505_v0, %v483_v2 }
 0x34e   :  { %509 = vrot.lane.b32.xlu1 %v507_v4, %s2958_s2 }
 0x356   :  { %523 = vrot.lane.b32.xlu1 %v483_v2, %s2957_s10 }
 0x362   :  { %v494_v25 = vpop.permute.xlu0 %493 }
 0x363   :  { %v496_v29 = vmul.f32 %v494_v25, %v468_v28 }
 0x365   :  { %498 = vrot.lane.b32.xlu0 %v496_v29, %s2958_s2 }
 0x36d   :  { %519 = vrot.lane.b32.xlu0 %v468_v28, %s2958_s2 }
 0x3c0   :  { %v510_v35 = vpop.permute.xlu1 %509 }
 0x3c1   :  { %v512_v37 = vadd.f32 %v510_v35, %v502_v36 }
 0x3c8   :  { %v524_v41 = vpop.permute.xlu1 %523 }
 0x3d7   :  { %v499_v33 = vpop.permute.xlu0 %498 }
 0x3d8   :  { %v501_v34 = vadd.f32 %v499_v33, %v491_v31 }
 0x3da   :  { %514 = vrot.lane.b32.xlu2 %v501_v34, %s2959_s11 }
 0x3df   :  { %v520_v40 = vpop.permute.xlu0 %519 }
 0x3e0   :  { %v526_v43 = vsel %vm358_vm4, %v520_v40, %v524_v41 }
 0x434   :  { %v515_v38 = vpop.permute.xlu2 %514 }
 0x435   :  { %v3132_v39 = vsel %vm358_vm4, %v515_v38, %v512_v37 }
 0x436   :  { %604 = vrot.lane.b32.xlu0 %v3132_v39, %s2958_s2  ;;  %2701 = vtanh.f32 %v3132_v39 }
 0x43c   :  { %v2702_v42 = vpop.eup %2701 }
 0x43d   :  { %v528_v44 = vmul.f32 %v2702_v42, %v526_v43 }
 0x43f   :  { %529 = vst.msk [vmem:[#allocation2 + $0x8] sm:$0xff] %vm358_vm4, %v528_v44  ;;  %v531_v45 = vpack.c.bf16 %v528_v44, %v528_v44 }
 0x440   :  { %530 = vst.msk [vmem:[#allocation2 + $0x30] sm:$0xff] %vm372_vm5, %v528_v44 }
 0x441   :  { %2475 = vmatmul.msk.bf16.vlgmr.msrb.gmra.mxu2 %vm415_vm6, %v531_v45  ;;  %2476 = vmatmul.msk.bf16.vlgmr.msrb.gmra.mxu3 %vm415_vm6, %v531_v45 }
 0x442   :  { %771 = vmatpush.bf16.msrb.mxu2 %v3062_v63  ;;  %784 = vmatpush.bf16.msrb.mxu3 %v3064_v1 }
 0x446   :  { %772 = vmatpush.bf16.msrb.mxu2 %v3070_v6  ;;  %785 = vmatpush.bf16.msrb.mxu3 %v3072_v8 }
 0x44a   :  { %773 = vmatpush.bf16.msrb.mxu2 %v3077_v14  ;;  %786 = vmatpush.bf16.msrb.mxu3 %v3080_v22 }
 0x44e   :  { %774 = vmatpush.bf16.msrb.mxu2 %v3083_v26  ;;  %787 = vmatpush.bf16.msrb.mxu3 %v3087_v27 }
 0x4a8   :  { %v605_v36 = vpop.permute.xlu0 %604 }
 0x4c4   :  { %v544_v47 = vpop.f32.mrf.mxu2  ;;  %v557_v48 = vpop.f32.mrf.mxu3 }
 0x4c5   :  { %v561_v49 = vadd.f32 %v544_v47, %v241_v46  ;;  %v562_v50 = vadd.f32 %v557_v48, %v3052_v21 }
 0x4c7   :  { %2703 = vtanh.f32 %v561_v49  ;;  %v2477_v23 = vmul.f32 -1.442695, %v561_v49  ;;  %v2478_v58 = vmul.f32 -1.442695, %v562_v50 }
 0x4c8   :  { %2705 = vtanh.f32 %v562_v50 }
 0x4c9   :  { %2707 = vpow2.f32 %v2477_v23 }
 0x4cc   :  { %v546_v51 = vpop.f32.mrf.mxu2  ;;  %v559_v52 = vpop.f32.mrf.mxu3 }
 0x4cd   :  { %v2704_v53 = vpop.eup %2703 }
 0x4ce   :  { %v2706_v54 = vpop.eup %2705  ;;  %609 = vrot.lane.b32.xlu2 %v2704_v53, %s2957_s10 }
 0x4cf   :  { %620 = vrot.lane.b32.xlu1 %v2706_v54, %s2957_s10  ;;  %v2708_v55 = vpop.eup %2707 }
 0x4d0   :  { %v569_v56 = vadd.f32 1.0, %v2708_v55 }
 0x4d2   :  { %2709 = vrcp.f32 %v569_v56  ;;  %v582_v2 = vand.u32 2147483648, %v569_v56  ;;  %vm576_vm0 = vweird.f32 %v569_v56  ;;  %v580_v3 = vand.u32 2147483647, %v569_v56 }
 0x4d3   :  { %2711 = vpow2.f32 %v2478_v58 }
 0x4d4   :  { %v583_v7 = vor.u32 1.1754944e-38, %v582_v2  ;;  %vm581_vm2 = vcmp.eq.f32.partialorder %v580_v3, 8.507059e+37 }
 0x4d8   :  { %v2710_v57 = vpop.eup %2709 }
 0x4d9   :  { %v572_v59 = vmul.f32 %v2710_v57, %v569_v56  ;;  %v2712_v61 = vpop.eup %2711  ;;  %vm577_vm15 = vweird.f32 %v2710_v57 }
 0x4da   :  { %v570_v62 = vadd.f32 1.0, %v2712_v61  ;;  %vm578_vm1 = vmor %vm576_vm0, %vm577_vm15 }
 0x4db   :  { %v573_v21 = vsub.f32 1.0, %v572_v59 }
 0x4dc   :  { %2713 = vrcp.f32 %v570_v62  ;;  %v597_v28 = vand.u32 2147483648, %v570_v62  ;;  %vm591_vm7 = vweird.f32 %v570_v62  ;;  %v595_v29 = vand.u32 2147483647, %v570_v62 }
 0x4dd   :  { %v574_v60 = vmul.f32 %v2710_v57, %v573_v21 }
 0x4de   :  { %v598_v31 = vor.u32 1.1754944e-38, %v597_v28  ;;  %vm596_vm9 = vcmp.eq.f32.partialorder %v595_v29, 8.507059e+37 }
 0x4df   :  { %v575_v0 = vadd.f32 %v2710_v57, %v574_v60 }
 0x4e1   :  { %v579_v4 = vsel %vm578_vm1, %v2710_v57, %v575_v0 }
 0x4e2   :  { %v584_v11 = vsel %vm581_vm2, %v583_v7, %v579_v4  ;;  %v2714_v16 = vpop.eup %2713 }
 0x4e3   :  { %v587_v18 = vmul.f32 %v2714_v16, %v570_v62  ;;  %vm592_vm3 = vweird.f32 %v2714_v16  ;;  %v607_v37 = vmul.f32 %v605_v36, %v584_v11 }
 0x4e4   :  { %vm593_vm8 = vmor %vm591_vm7, %vm592_vm3 }
 0x4e5   :  { %v588_v20 = vsub.f32 1.0, %v587_v18 }
 0x4e7   :  { %v589_v24 = vmul.f32 %v2714_v16, %v588_v20 }
 0x4e9   :  { %v590_v25 = vadd.f32 %v2714_v16, %v589_v24 }
 0x4eb   :  { %v594_v30 = vsel %vm593_vm8, %v2714_v16, %v590_v25 }
 0x4ec   :  { %v599_v34 = vsel %vm596_vm9, %v598_v31, %v594_v30 }
 0x4ed   :  { %v618_v42 = vmul.f32 %v599_v34, %v3132_v39  ;;  %v242_v39 = vpop.f32.mrf.mxu0 }
 0x4ee   :  { %v243_v51 = vadd.f32 %v242_v39, %v3038_v5 }
 0x528   :  { %v610_v9 = vpop.permute.xlu2 %609 }
 0x529   :  { %v612_v12 = vmul.f32 %v610_v9, %v584_v11 }
 0x52b   :  { %614 = vrot.lane.b32.xlu2 %v612_v12, %s2958_s2 }
 0x533   :  { %635 = vrot.lane.b32.xlu2 %v584_v11, %s2958_s2 }
 0x541   :  { %v621_v33 = vpop.permute.xlu1 %620 }
 0x542   :  { %v623_v35 = vmul.f32 %v621_v33, %v599_v34 }
 0x544   :  { %625 = vrot.lane.b32.xlu0 %v623_v35, %s2958_s2 }
 0x54c   :  { %639 = vrot.lane.b32.xlu0 %v599_v34, %s2957_s10 }
 0x585   :  { %v615_v38 = vpop.permute.xlu2 %614 }
 0x586   :  { %v617_v40 = vadd.f32 %v615_v38, %v607_v37 }
 0x588   :  { %630 = vrot.lane.b32.xlu1 %v617_v40, %s2959_s11 }
 0x58d   :  { %v636_v46 = vpop.permute.xlu2 %635 }
 0x5b6   :  { %v626_v41 = vpop.permute.xlu0 %625 }
 0x5b7   :  { %v628_v43 = vadd.f32 %v626_v41, %v618_v42 }
 0x5be   :  { %v640_v32 = vpop.permute.xlu0 %639 }
 0x5bf   :  { %v642_v48 = vsel %vm358_vm4, %v636_v46, %v640_v32 }
 0x5fa   :  { %v631_v44 = vpop.permute.xlu1 %630 }
 0x5fb   :  { %v3161_v45 = vsel %vm358_vm4, %v631_v44, %v628_v43 }
 0x5fc   :  { %720 = vrot.lane.b32.xlu2 %v3161_v45, %s2958_s2  ;;  %2715 = vtanh.f32 %v3161_v45 }
 0x602   :  { %v2716_v47 = vpop.eup %2715 }
 0x603   :  { %v644_v49 = vmul.f32 %v2716_v47, %v642_v48 }
 0x605   :  { %645 = vst.msk [vmem:[#allocation2 + $0x10] sm:$0xff] %vm358_vm4, %v644_v49  ;;  %v647_v50 = vpack.c.bf16 %v644_v49, %v644_v49 }
 0x606   :  { %646 = vst.msk [vmem:[#allocation2 + $0x28] sm:$0xff] %vm372_vm5, %v644_v49 }
 0x607   :  { %2479 = vmatmul.msk.bf16.vlgmr.msra.gmra.mxu2 %vm415_vm6, %v647_v50  ;;  %2480 = vmatmul.msk.bf16.vlgmr.msra.gmra.mxu3 %vm415_vm6, %v647_v50 }
 0x608   :  { %887 = vmatpush.bf16.msra.mxu2 %v3062_v63  ;;  %900 = vmatpush.bf16.msra.mxu3 %v3064_v1 }
 0x60c   :  { %888 = vmatpush.bf16.msra.mxu2 %v3070_v6  ;;  %901 = vmatpush.bf16.msra.mxu3 %v3072_v8 }
 0x610   :  { %889 = vmatpush.bf16.msra.mxu2 %v3077_v14  ;;  %902 = vmatpush.bf16.msra.mxu3 %v3080_v22 }
 0x614   :  { %890 = vmatpush.bf16.msra.mxu2 %v3083_v26  ;;  %903 = vmatpush.bf16.msra.mxu3 %v3087_v27 }
 0x656   :  { %v721_v41 = vpop.permute.xlu2 %720 }
 0x68a   :  { %v660_v52 = vpop.f32.mrf.mxu2  ;;  %v673_v53 = vpop.f32.mrf.mxu3 }
 0x68b   :  { %v677_v54 = vadd.f32 %v660_v52, %v243_v51  ;;  %v678_v23 = vadd.f32 %v673_v53, %v3050_v19 }
 0x68d   :  { %2717 = vtanh.f32 %v677_v54  ;;  %v2481_v59 = vmul.f32 -1.442695, %v677_v54  ;;  %v2482_v21 = vmul.f32 -1.442695, %v678_v23 }
 0x68e   :  { %2719 = vtanh.f32 %v678_v23 }
 0x68f   :  { %2721 = vpow2.f32 %v2481_v59 }
 0x690   :  { %2723 = vpow2.f32 %v2482_v21 }
 0x692   :  { %v662_v55 = vpop.f32.mrf.mxu2  ;;  %v675_v56 = vpop.f32.mrf.mxu3 }
 0x693   :  { %v2718_v57 = vpop.eup %2717 }
 0x694   :  { %v2720_v58 = vpop.eup %2719  ;;  %725 = vrot.lane.b32.xlu1 %v2718_v57, %s2957_s10 }
 0x695   :  { %736 = vrot.lane.b32.xlu0 %v2720_v58, %s2957_s10  ;;  %v2722_v60 = vpop.eup %2721 }
 0x696   :  { %v2724_v61 = vpop.eup %2723  ;;  %v685_v62 = vadd.f32 1.0, %v2722_v60 }
 0x697   :  { %v686_v0 = vadd.f32 1.0, %v2724_v61 }
 0x698   :  { %2725 = vrcp.f32 %v685_v62  ;;  %v698_v20 = vand.u32 2147483648, %v685_v62  ;;  %vm692_vm12 = vweird.f32 %v685_v62  ;;  %v696_v25 = vand.u32 2147483647, %v685_v62 }
 0x699   :  { %2727 = vrcp.f32 %v686_v0  ;;  %v713_v24 = vand.u32 2147483648, %v686_v0  ;;  %vm707_vm13 = vweird.f32 %v686_v0  ;;  %v711_v28 = vand.u32 2147483647, %v686_v0 }
 0x69a   :  { %v699_v31 = vor.u32 1.1754944e-38, %v698_v20  ;;  %vm697_vm0 = vcmp.eq.f32.partialorder %v696_v25, 8.507059e+37 }
 0x69b   :  { %v714_v33 = vor.u32 1.1754944e-38, %v713_v24  ;;  %vm712_vm1 = vcmp.eq.f32.partialorder %v711_v28, 8.507059e+37 }
 0x69e   :  { %v2726_v19 = vpop.eup %2725 }
 0x69f   :  { %v2728_v2 = vpop.eup %2727  ;;  %v688_v3 = vmul.f32 %v2726_v19, %v685_v62  ;;  %vm693_vm10 = vweird.f32 %v2726_v19 }
 0x6a0   :  { %v703_v4 = vmul.f32 %v2728_v2, %v686_v0  ;;  %vm708_vm11 = vweird.f32 %v2728_v2  ;;  %vm694_vm14 = vmor %vm692_vm12, %vm693_vm10 }
 0x6a1   :  { %v689_v7 = vsub.f32 1.0, %v688_v3  ;;  %vm709_vm15 = vmor %vm707_vm13, %vm708_vm11 }
 0x6a2   :  { %v704_v9 = vsub.f32 1.0, %v703_v4 }
 0x6a3   :  { %v690_v11 = vmul.f32 %v2726_v19, %v689_v7 }
 0x6a4   :  { %v705_v12 = vmul.f32 %v2728_v2, %v704_v9 }
 0x6a5   :  { %v691_v16 = vadd.f32 %v2726_v19, %v690_v11 }
 0x6a6   :  { %v706_v18 = vadd.f32 %v2728_v2, %v705_v12 }
 0x6a7   :  { %v695_v29 = vsel %vm694_vm14, %v2726_v19, %v691_v16 }
 0x6a8   :  { %v710_v30 = vsel %vm709_vm15, %v2728_v2, %v706_v18  ;;  %v700_v35 = vsel %vm697_vm0, %v699_v31, %v695_v29 }
 0x6a9   :  { %v715_v37 = vsel %vm712_vm1, %v714_v33, %v710_v30  ;;  %v723_v42 = vmul.f32 %v721_v41, %v700_v35 }
 0x6aa   :  { %v734_v46 = vmul.f32 %v715_v37, %v3161_v45  ;;  %v245_v45 = vpop.f32.mrf.mxu0 }
 0x6ab   :  { %v246_v23 = vadd.f32 %v245_v45, %v3038_v5 }
 0x706   :  { %v726_v34 = vpop.permute.xlu1 %725 }
 0x707   :  { %v737_v36 = vpop.permute.xlu0 %736  ;;  %v728_v38 = vmul.f32 %v726_v34, %v700_v35 }
 0x708   :  { %v739_v40 = vmul.f32 %v737_v36, %v715_v37 }
 0x709   :  { %730 = vrot.lane.b32.xlu1 %v728_v38, %s2958_s2 }
 0x70a   :  { %741 = vrot.lane.b32.xlu2 %v739_v40, %s2958_s2 }
 0x711   :  { %751 = vrot.lane.b32.xlu1 %v700_v35, %s2958_s2 }
 0x712   :  { %755 = vrot.lane.b32.xlu2 %v715_v37, %s2957_s10 }
 0x764   :  { %v742_v32 = vpop.permute.xlu2 %741 }
 0x765   :  { %v744_v47 = vadd.f32 %v742_v32, %v734_v46 }
 0x76c   :  { %v756_v39 = vpop.permute.xlu2 %755 }
 0x77b   :  { %v731_v43 = vpop.permute.xlu1 %730 }
 0x77c   :  { %v733_v44 = vadd.f32 %v731_v43, %v723_v42 }
 0x77e   :  { %746 = vrot.lane.b32.xlu0 %v733_v44, %s2959_s11 }
 0x783   :  { %v752_v50 = vpop.permute.xlu1 %751 }
 0x784   :  { %v758_v52 = vsel %vm358_vm4, %v752_v50, %v756_v39 }
 0x7f0   :  { %v747_v48 = vpop.permute.xlu0 %746 }
 0x7f1   :  { %v3190_v49 = vsel %vm358_vm4, %v747_v48, %v744_v47 }
 0x7f2   :  { %836 = vrot.lane.b32.xlu1 %v3190_v49, %s2958_s2  ;;  %2729 = vtanh.f32 %v3190_v49 }
 0x7f8   :  { %v2730_v51 = vpop.eup %2729 }
 0x7f9   :  { %v760_v53 = vmul.f32 %v2730_v51, %v758_v52 }
 0x7fb   :  { %761 = vst.msk [vmem:[#allocation2 + $0x18] sm:$0xff] %vm358_vm4, %v760_v53  ;;  %v763_v54 = vpack.c.bf16 %v760_v53, %v760_v53 }
 0x7fc   :  { %762 = vst.msk [vmem:[#allocation2 + $0x20] sm:$0xff] %vm372_vm5, %v760_v53 }
 0x7fd   :  { %2483 = vmatmul.msk.bf16.vlgmr.msrb.gmra.mxu2 %vm415_vm6, %v763_v54  ;;  %2484 = vmatmul.msk.bf16.vlgmr.msrb.gmra.mxu3 %vm415_vm6, %v763_v54 }
 0x7fe   :  { %1119 = vmatpush.bf16.msrb.mxu2 %v3062_v63  ;;  %1132 = vmatpush.bf16.msrb.mxu3 %v3064_v1 }
 0x802   :  { %1120 = vmatpush.bf16.msrb.mxu2 %v3070_v6  ;;  %1133 = vmatpush.bf16.msrb.mxu3 %v3072_v8 }
 0x806   :  { %1121 = vmatpush.bf16.msrb.mxu2 %v3077_v14  ;;  %1134 = vmatpush.bf16.msrb.mxu3 %v3080_v22 }
 0x80a   :  { %1122 = vmatpush.bf16.msrb.mxu2 %v3083_v26  ;;  %1135 = vmatpush.bf16.msrb.mxu3 %v3087_v27 }
 0x864   :  { %v837_v35 = vpop.permute.xlu1 %836 }
 0x880   :  { %v776_v55 = vpop.f32.mrf.mxu2  ;;  %v789_v56 = vpop.f32.mrf.mxu3 }
 0x881   :  { %v793_v63 = vadd.f32 %v776_v55, %v246_v23  ;;  %v794_v1 = vadd.f32 %v789_v56, %v3048_v17 }
 0x883   :  { %2731 = vtanh.f32 %v793_v63  ;;  %v2486_v22 = vmul.f32 -1.442695, %v794_v1  ;;  %v2485_v59 = vmul.f32 -1.442695, %v793_v63 }
 0x884   :  { %2733 = vtanh.f32 %v794_v1 }
 0x885   :  { %2735 = vpow2.f32 %v2486_v22 }
 0x888   :  { %v778_v6 = vpop.f32.mrf.mxu2  ;;  %v791_v8 = vpop.f32.mrf.mxu3 }
 0x889   :  { %v2732_v57 = vpop.eup %2731 }
 0x88a   :  { %v2734_v14 = vpop.eup %2733  ;;  %841 = vrot.lane.b32.xlu0 %v2732_v57, %s2957_s10 }
 0x88b   :  { %852 = vrot.lane.b32.xlu2 %v2734_v14, %s2957_s10  ;;  %v2736_v26 = vpop.eup %2735 }
 0x88c   :  { %v802_v27 = vadd.f32 1.0, %v2736_v26 }
 0x88e   :  { %2737 = vrcp.f32 %v802_v27  ;;  %v829_v19 = vand.u32 2147483648, %v802_v27  ;;  %vm823_vm3 = vweird.f32 %v802_v27  ;;  %v827_v2 = vand.u32 2147483647, %v802_v27 }
 0x88f   :  { %2739 = vpow2.f32 %v2485_v59 }
 0x890   :  { %v830_v4 = vor.u32 1.1754944e-38, %v829_v19  ;;  %vm828_vm8 = vcmp.eq.f32.partialorder %v827_v2, 8.507059e+37 }
 0x894   :  { %v2738_v58 = vpop.eup %2737 }
 0x895   :  { %v819_v21 = vmul.f32 %v2738_v58, %v802_v27  ;;  %v2740_v60 = vpop.eup %2739  ;;  %vm824_vm2 = vweird.f32 %v2738_v58 }
 0x896   :  { %v801_v62 = vadd.f32 1.0, %v2740_v60  ;;  %vm825_vm7 = vmor %vm823_vm3, %vm824_vm2 }
 0x897   :  { %v820_v17 = vsub.f32 1.0, %v819_v21 }
 0x898   :  { %2741 = vrcp.f32 %v801_v62  ;;  %v814_v25 = vand.u32 2147483648, %v801_v62  ;;  %vm808_vm10 = vweird.f32 %v801_v62  ;;  %v812_v28 = vand.u32 2147483647, %v801_v62 }
 0x899   :  { %v821_v61 = vmul.f32 %v2738_v58, %v820_v17 }
 0x89a   :  { %v815_v30 = vor.u32 1.1754944e-38, %v814_v25  ;;  %vm813_vm12 = vcmp.eq.f32.partialorder %v812_v28, 8.507059e+37 }
 0x89b   :  { %v822_v0 = vadd.f32 %v2738_v58, %v821_v61 }
 0x89d   :  { %v826_v3 = vsel %vm825_vm7, %v2738_v58, %v822_v0 }
 0x89e   :  { %v831_v9 = vsel %vm828_vm8, %v830_v4, %v826_v3  ;;  %v2742_v11 = vpop.eup %2741 }
 0x89f   :  { %v804_v16 = vmul.f32 %v2742_v11, %v801_v62  ;;  %vm809_vm9 = vweird.f32 %v2742_v11  ;;  %v850_v41 = vmul.f32 %v831_v9, %v3190_v49  ;;  %v247_v49 = vpop.f32.mrf.mxu0 }
 0x8a0   :  { %vm810_vm11 = vmor %vm808_vm10, %vm809_vm9  ;;  %v248_v51 = vadd.f32 %v247_v49, %v3038_v5 }
 0x8a1   :  { %v805_v18 = vsub.f32 1.0, %v804_v16 }
 0x8a3   :  { %v806_v20 = vmul.f32 %v2742_v11, %v805_v18 }
 0x8a5   :  { %v807_v24 = vadd.f32 %v2742_v11, %v806_v20 }
 0x8a7   :  { %v811_v29 = vsel %vm810_vm11, %v2742_v11, %v807_v24 }
 0x8a8   :  { %v816_v33 = vsel %vm813_vm12, %v815_v30, %v811_v29 }
 0x8a9   :  { %v839_v36 = vmul.f32 %v837_v35, %v816_v33 }
 0x8e5   :  { %v853_v7 = vpop.permute.xlu2 %852 }
 0x8e6   :  { %v855_v12 = vmul.f32 %v853_v7, %v831_v9 }
 0x8e8   :  { %857 = vrot.lane.b32.xlu1 %v855_v12, %s2958_s2 }
 0x8f0   :  { %871 = vrot.lane.b32.xlu1 %v831_v9, %s2957_s10 }
 0x8fc   :  { %v842_v31 = vpop.permute.xlu0 %841 }
 0x8fd   :  { %v844_v34 = vmul.f32 %v842_v31, %v816_v33 }
 0x8ff   :  { %846 = vrot.lane.b32.xlu0 %v844_v34, %s2958_s2 }
 0x907   :  { %867 = vrot.lane.b32.xlu0 %v816_v33, %s2958_s2 }
 0x95a   :  { %v858_v40 = vpop.permute.xlu1 %857 }
 0x95b   :  { %v860_v42 = vadd.f32 %v858_v40, %v850_v41 }
 0x962   :  { %v872_v46 = vpop.permute.xlu1 %871 }
 0x971   :  { %v847_v37 = vpop.permute.xlu0 %846 }
 0x972   :  { %v849_v38 = vadd.f32 %v847_v37, %v839_v36 }
 0x974   :  { %862 = vrot.lane.b32.xlu2 %v849_v38, %s2959_s11 }
 0x979   :  { %v868_v32 = vpop.permute.xlu0 %867 }
 0x97a   :  { %v874_v48 = vsel %vm358_vm4, %v868_v32, %v872_v46 }
 0x9ce   :  { %v863_v43 = vpop.permute.xlu2 %862 }
 0x9cf   :  { %v3219_v44 = vsel %vm358_vm4, %v863_v43, %v860_v42 }
 0x9d0   :  { %952 = vrot.lane.b32.xlu0 %v3219_v44, %s2958_s2  ;;  %2743 = vtanh.f32 %v3219_v44 }
 0x9d6   :  { %v2744_v47 = vpop.eup %2743 }
 0x9d7   :  { %v876_v50 = vmul.f32 %v2744_v47, %v874_v48 }
 0x9d9   :  { %877 = vst.msk [vmem:[#allocation2 + $0x20] sm:$0xff] %vm358_vm4, %v876_v50  ;;  %v879_v39 = vpack.c.bf16 %v876_v50, %v876_v50 }
 0x9da   :  { %878 = vst.msk [vmem:[#allocation2 + $0x18] sm:$0xff] %vm372_vm5, %v876_v50 }
 0x9db   :  { %2487 = vmatmul.msk.bf16.vlgmr.msra.gmra.mxu2 %vm415_vm6, %v879_v39  ;;  %2488 = vmatmul.msk.bf16.vlgmr.msra.gmra.mxu3 %vm415_vm6, %v879_v39 }
 0xa42   :  { %v953_v28 = vpop.permute.xlu0 %952 }
 0xa5e   :  { %v892_v52 = vpop.f32.mrf.mxu2  ;;  %v905_v53 = vpop.f32.mrf.mxu3 }
 0xa5f   :  { %v909_v54 = vadd.f32 %v892_v52, %v248_v51  ;;  %v910_v45 = vadd.f32 %v905_v53, %v3046_v15 }
 0xa61   :  { %2745 = vtanh.f32 %v909_v54  ;;  %v2489_v1 = vmul.f32 -1.442695, %v909_v54  ;;  %v2490_v14 = vmul.f32 -1.442695, %v910_v45 }
 0xa62   :  { %2747 = vtanh.f32 %v910_v45 }
 0xa63   :  { %2749 = vpow2.f32 %v2489_v1 }
 0xa66   :  { %v894_v23 = vpop.f32.mrf.mxu2  ;;  %v907_v55 = vpop.f32.mrf.mxu3 }
 0xa67   :  { %v2746_v56 = vpop.eup %2745 }
 0xa68   :  { %v2748_v63 = vpop.eup %2747  ;;  %957 = vrot.lane.b32.xlu2 %v2746_v56, %s2957_s10 }
 0xa69   :  { %968 = vrot.lane.b32.xlu1 %v2748_v63, %s2957_s10  ;;  %v2750_v6 = vpop.eup %2749 }
 0xa6a   :  { %v917_v8 = vadd.f32 1.0, %v2750_v6 }
 0xa6c   :  { %2751 = vrcp.f32 %v917_v8  ;;  %v930_v21 = vand.u32 2147483648, %v917_v8  ;;  %vm924_vm14 = vweird.f32 %v917_v8  ;;  %v928_v17 = vand.u32 2147483647, %v917_v8 }
 0xa6d   :  { %2753 = vpow2.f32 %v2490_v14 }
 0xa6e   :  { %v931_v61 = vor.u32 1.1754944e-38, %v930_v21  ;;  %vm929_vm0 = vcmp.eq.f32.partialorder %v928_v17, 8.507059e+37 }
 0xa72   :  { %v2752_v57 = vpop.eup %2751 }
 0xa73   :  { %v920_v22 = vmul.f32 %v2752_v57, %v917_v8  ;;  %v2754_v27 = vpop.eup %2753  ;;  %vm925_vm13 = vweird.f32 %v2752_v57 }
 0xa74   :  { %v918_v58 = vadd.f32 1.0, %v2754_v27  ;;  %vm926_vm15 = vmor %vm924_vm14, %vm925_vm13 }
 0xa75   :  { %v921_v15 = vsub.f32 1.0, %v920_v22 }
 0xa76   :  { %2755 = vrcp.f32 %v918_v58  ;;  %v945_v11 = vand.u32 2147483648, %v918_v58  ;;  %vm939_vm2 = vweird.f32 %v918_v58  ;;  %v943_v12 = vand.u32 2147483647, %v918_v58 }
 0xa77   :  { %v922_v26 = vmul.f32 %v2752_v57, %v921_v15 }
 0xa78   :  { %v946_v18 = vor.u32 1.1754944e-38, %v945_v11  ;;  %vm944_vm7 = vcmp.eq.f32.partialorder %v943_v12, 8.507059e+37 }
 0xa79   :  { %v923_v59 = vadd.f32 %v2752_v57, %v922_v26 }
 0xa7b   :  { %v927_v60 = vsel %vm926_vm15, %v2752_v57, %v923_v59 }
 0xa7c   :  { %v932_v0 = vsel %vm929_vm0, %v931_v61, %v927_v60  ;;  %v2756_v2 = vpop.eup %2755 }
 0xa7d   :  { %v935_v3 = vmul.f32 %v2756_v2, %v918_v58  ;;  %vm940_vm1 = vweird.f32 %v2756_v2  ;;  %v955_v29 = vmul.f32 %v953_v28, %v932_v0 }
 0xa7e   :  { %vm941_vm3 = vmor %vm939_vm2, %vm940_vm1 }
 0xa7f   :  { %v936_v4 = vsub.f32 1.0, %v935_v3 }
 0xa81   :  { %v937_v7 = vmul.f32 %v2756_v2, %v936_v4 }
 0xa83   :  { %v938_v9 = vadd.f32 %v2756_v2, %v937_v7 }
 0xa85   :  { %v942_v16 = vsel %vm941_vm3, %v2756_v2, %v938_v9 }
 0xa86   :  { %v947_v24 = vsel %vm944_vm7, %v946_v18, %v942_v16 }
 0xa87   :  { %v966_v34 = vmul.f32 %v947_v24, %v3219_v44  ;;  %v250_v44 = vpop.f32.mrf.mxu0 }
 0xa88   :  { %v251_v47 = vadd.f32 %v250_v44, %v3038_v5 }
 0xa8f   :  { %v3250_v46 = vpop.f32.mrf.mxu0 }
 0xac2   :  { %v958_v62 = vpop.permute.xlu2 %957 }
 0xac3   :  { %v960_v19 = vmul.f32 %v958_v62, %v932_v0 }
 0xac5   :  { %962 = vrot.lane.b32.xlu2 %v960_v19, %s2958_s2 }
 0xacd   :  { %983 = vrot.lane.b32.xlu2 %v932_v0, %s2958_s2 }
 0xadb   :  { %v969_v20 = vpop.permute.xlu1 %968 }
 0xadc   :  { %v971_v25 = vmul.f32 %v969_v20, %v947_v24 }
 0xade   :  { %973 = vrot.lane.b32.xlu0 %v971_v25, %s2958_s2 }
 0xae6   :  { %987 = vrot.lane.b32.xlu0 %v947_v24, %s2957_s10 }
 0xb1f   :  { %v963_v30 = vpop.permute.xlu2 %962 }
 0xb20   :  { %v965_v31 = vadd.f32 %v963_v30, %v955_v29 }
 0xb22   :  { %978 = vrot.lane.b32.xlu1 %v965_v31, %s2959_s11 }
 0xb27   :  { %v984_v40 = vpop.permute.xlu2 %983 }
 0xb50   :  { %v974_v33 = vpop.permute.xlu0 %973 }
 0xb51   :  { %v976_v35 = vadd.f32 %v974_v33, %v966_v34 }
 0xb58   :  { %v988_v38 = vpop.permute.xlu0 %987 }
 0xb59   :  { %v990_v42 = vsel %vm358_vm4, %v984_v40, %v988_v38 }
 0xb94   :  { %v979_v36 = vpop.permute.xlu1 %978 }
 0xb95   :  { %v3240_v37 = vsel %vm358_vm4, %v979_v36, %v976_v35 }
 0xb96   :  { %1068 = vrot.lane.b32.xlu2 %v3240_v37, %s2958_s2  ;;  %2757 = vtanh.f32 %v3240_v37 }
 0xb9c   :  { %v2758_v41 = vpop.eup %2757 }
 0xb9d   :  { %v992_v43 = vmul.f32 %v2758_v41, %v990_v42 }
 0xb9f   :  { %993 = vst.msk [vmem:[#allocation2 + $0x28] sm:$0xff] %vm358_vm4, %v992_v43  ;;  %v995_v32 = vpack.c.bf16 %v992_v43, %v992_v43 }
 0xba0   :  { %994 = vst.msk [vmem:[#allocation2 + $0x10] sm:$0xff] %vm372_vm5, %v992_v43 }
 0xba1   :  { %2491 = vmatmul.msk.bf16.vlgmr.msrb.gmra.mxu0 %vm415_vm6, %v995_v32  ;;  %2492 = vmatmul.msk.bf16.vlgmr.msrb.gmra.mxu1 %vm415_vm6, %v995_v32 }
 0xbf0   :  { %v1069_v12 = vpop.permute.xlu2 %1068 }
 0xc1e   :  { %v1008_v48 = vpop.f32.mrf.mxu0  ;;  %v1021_v50 = vpop.f32.mrf.mxu1 }
 0xc1f   :  { %v1025_v39 = vadd.f32 %v1008_v48, %v251_v47  ;;  %v1026_v49 = vadd.f32 %v1021_v50, %v3043_v13 }
 0xc21   :  { %2759 = vtanh.f32 %v1025_v39  ;;  %v2493_v45 = vmul.f32 -1.442695, %v1025_v39  ;;  %v2494_v23 = vmul.f32 -1.442695, %v1026_v49 }
 0xc22   :  { %2761 = vtanh.f32 %v1026_v49 }
 0xc23   :  { %2763 = vpow2.f32 %v2493_v45 }
 0xc24   :  { %2765 = vpow2.f32 %v2494_v23 }
 0xc26   :  { %v1010_v51 = vpop.f32.mrf.mxu0  ;;  %v1023_v52 = vpop.f32.mrf.mxu1 }
 0xc27   :  { %v2760_v53 = vpop.eup %2759 }
 0xc28   :  { %v2762_v54 = vpop.eup %2761  ;;  %1073 = vrot.lane.b32.xlu1 %v2760_v53, %s2957_s10 }
 0xc29   :  { %1084 = vrot.lane.b32.xlu0 %v2762_v54, %s2957_s10  ;;  %v2764_v55 = vpop.eup %2763 }
 0xc2a   :  { %v2766_v56 = vpop.eup %2765  ;;  %v1033_v63 = vadd.f32 1.0, %v2764_v55 }
 0xc2b   :  { %v1034_v1 = vadd.f32 1.0, %v2766_v56 }
 0xc2c   :  { %2767 = vrcp.f32 %v1033_v63  ;;  %v1046_v59 = vand.u32 2147483648, %v1033_v63  ;;  %vm1040_vm10 = vweird.f32 %v1033_v63  ;;  %v1044_v17 = vand.u32 2147483647, %v1033_v63 }
 0xc2d   :  { %2769 = vrcp.f32 %v1034_v1  ;;  %v1061_v21 = vand.u32 2147483648, %v1034_v1  ;;  %vm1055_vm11 = vweird.f32 %v1034_v1  ;;  %v1059_v60 = vand.u32 2147483647, %v1034_v1 }
 0xc2e   :  { %v1047_v0 = vor.u32 1.1754944e-38, %v1046_v59  ;;  %vm1045_vm14 = vcmp.eq.f32.partialorder %v1044_v17, 8.507059e+37 }
 0xc2f   :  { %v1062_v19 = vor.u32 1.1754944e-38, %v1061_v21  ;;  %vm1060_vm15 = vcmp.eq.f32.partialorder %v1059_v60, 8.507059e+37 }
 0xc32   :  { %v2768_v13 = vpop.eup %2767 }
 0xc33   :  { %v2770_v6 = vpop.eup %2769  ;;  %v1036_v8 = vmul.f32 %v2768_v13, %v1033_v63  ;;  %vm1041_vm8 = vweird.f32 %v2768_v13 }
 0xc34   :  { %v1051_v57 = vmul.f32 %v2770_v6, %v1034_v1  ;;  %vm1056_vm9 = vweird.f32 %v2770_v6  ;;  %vm1042_vm12 = vmor %vm1040_vm10, %vm1041_vm8 }
 0xc35   :  { %v1037_v14 = vsub.f32 1.0, %v1036_v8  ;;  %vm1057_vm13 = vmor %vm1055_vm11, %vm1056_vm9 }
 0xc36   :  { %v1052_v22 = vsub.f32 1.0, %v1051_v57 }
 0xc37   :  { %v1038_v15 = vmul.f32 %v2768_v13, %v1037_v14 }
 0xc38   :  { %v1053_v26 = vmul.f32 %v2770_v6, %v1052_v22 }
 0xc39   :  { %v1039_v27 = vadd.f32 %v2768_v13, %v1038_v15 }
 0xc3a   :  { %v1054_v58 = vadd.f32 %v2770_v6, %v1053_v26 }
 0xc3b   :  { %v1043_v61 = vsel %vm1042_vm12, %v2768_v13, %v1039_v27 }
 0xc3c   :  { %v1058_v62 = vsel %vm1057_vm13, %v2770_v6, %v1054_v58  ;;  %v1048_v3 = vsel %vm1045_vm14, %v1047_v0, %v1043_v61 }
 0xc3d   :  { %v1063_v7 = vsel %vm1060_vm15, %v1062_v19, %v1058_v62  ;;  %v1071_v16 = vmul.f32 %v1069_v12, %v1048_v3  ;;  %v2517_v12 = vld [vmem:[%s3632_s3 + $0x20] sm:$0xf] }
 0xc3e   :  { %v1082_v25 = vmul.f32 %v1063_v7, %v3240_v37  ;;  %v253_v37 = vadd.f32 %v3250_v46, %v3038_v5 }
 0xc9a   :  { %v1074_v2 = vpop.permute.xlu1 %1073 }
 0xc9b   :  { %v1085_v4 = vpop.permute.xlu0 %1084  ;;  %v1076_v9 = vmul.f32 %v1074_v2, %v1048_v3  ;;  %v2525_v2 = vld [vmem:[%s3632_s3 + $0x30] sm:$0xf] }
 0xc9c   :  { %v1087_v11 = vmul.f32 %v1085_v4, %v1063_v7  ;;  %v2648_v4 = vld [vmem:[%s3632_s3 + $0x34] sm:$0xf] }
 0xc9d   :  { %1078 = vrot.lane.b32.xlu1 %v1076_v9, %s2958_s2  ;;  %v2527_v9 = vld [vmem:[%s3632_s3 + $0x38] sm:$0xf0] }
 0xc9e   :  { %1089 = vrot.lane.b32.xlu2 %v1087_v11, %s2958_s2  ;;  %v2530_v11 = vor.u32 %v2648_v4, %v2527_v9 }
 0xca0   :  { %1338 = vmatpush.bf16.msra.mxu1 %v2530_v11 }
 0xca5   :  { %1099 = vrot.lane.b32.xlu1 %v1048_v3, %s2958_s2  ;;  %v2649_v3 = vld [vmem:[%s3632_s3 + $0x34] sm:$0xf0] }
 0xca6   :  { %1103 = vrot.lane.b32.xlu2 %v1063_v7, %s2957_s10  ;;  %v2526_v7 = vor.u32 %v2649_v3, %v2525_v2 }
 0xca8   :  { %1309 = vmatpush.bf16.msra.mxu0 %v2526_v7 }
 0xcf8   :  { %v1090_v24 = vpop.permute.xlu2 %1089 }
 0xcf9   :  { %v1092_v28 = vadd.f32 %v1090_v24, %v1082_v25  ;;  %v2519_v24 = vld [vmem:[%s3632_s3 + $0x28] sm:$0xf0] }
 0xd00   :  { %v1104_v33 = vpop.permute.xlu2 %1103 }
 0xd0f   :  { %v1079_v18 = vpop.permute.xlu1 %1078 }
 0xd10   :  { %v1081_v20 = vadd.f32 %v1079_v18, %v1071_v16  ;;  %v2647_v16 = vld [vmem:[%s3632_s3 + $0x24] sm:$0xf0]  ;;  %v2646_v18 = vld [vmem:[%s3632_s3 + $0x24] sm:$0xf] }
 0xd11   :  { %v2522_v25 = vor.u32 %v2646_v18, %v2519_v24 }
 0xd12   :  { %1094 = vrot.lane.b32.xlu0 %v1081_v20, %s2959_s11  ;;  %v2518_v20 = vor.u32 %v2647_v16, %v2517_v12 }
 0xd13   :  { %1339 = vmatpush.bf16.msra.mxu1 %v2522_v25 }
 0xd14   :  { %1310 = vmatpush.bf16.msra.mxu0 %v2518_v20 }
 0xd17   :  { %v1100_v31 = vpop.permute.xlu1 %1099 }
 0xd18   :  { %v1106_v35 = vsel %vm358_vm4, %v1100_v31, %v1104_v33  ;;  %v2644_v31 = vld [vmem:[%s3632_s3 + $0x14] sm:$0xf] }
 0xd84   :  { %v1095_v29 = vpop.permute.xlu0 %1094 }
 0xd85   :  { %v3263_v30 = vsel %vm358_vm4, %v1095_v29, %v1092_v28  ;;  %v2509_v28 = vld [vmem:[%s3632_s3 + $0x10] sm:$0xf]  ;;  %v2645_v29 = vld [vmem:[%s3632_s3 + $0x14] sm:$0xf0] }
 0xd86   :  { %1184 = vrot.lane.b32.xlu1 %v3263_v30, %s2958_s2  ;;  %2771 = vtanh.f32 %v3263_v30  ;;  %v2510_v33 = vor.u32 %v2645_v29, %v2509_v28 }
 0xd88   :  { %1311 = vmatpush.bf16.msra.mxu0 %v2510_v33 }
 0xd8c   :  { %v2772_v34 = vpop.eup %2771 }
 0xd8d   :  { %v1108_v36 = vmul.f32 %v2772_v34, %v1106_v35  ;;  %v2511_v34 = vld [vmem:[%s3632_s3 + $0x18] sm:$0xf0]  ;;  %v2501_v35 = vld [vmem:[%s3632_s3] sm:$0xf] }
 0xd8f   :  { %1109 = vst.msk [vmem:[#allocation2 + $0x30] sm:$0xff] %vm358_vm4, %v1108_v36  ;;  %v1111_v38 = vpack.c.bf16 %v1108_v36, %v1108_v36 }
 0xd90   :  { %1110 = vst.msk [vmem:[#allocation2 + $0x8] sm:$0xff] %vm372_vm5, %v1108_v36  ;;  %v2643_v36 = vld [vmem:[%s3632_s3 + $0x4] sm:$0xf0] }
 0xd91   :  { %2495 = vmatmul.msk.bf16.vlgmr.msrb.gmra.mxu2 %vm415_vm6, %v1111_v38  ;;  %2496 = vmatmul.msk.bf16.vlgmr.msrb.gmra.mxu3 %vm415_vm6, %v1111_v38  ;;  %v2514_v38 = vor.u32 %v2644_v31, %v2511_v34 }
 0xd93   :  { %1340 = vmatpush.bf16.msra.mxu1 %v2514_v38 }
 0xdf8   :  { %v1185_v61 = vpop.permute.xlu1 %1184 }
 0xe14   :  { %v1124_v40 = vpop.f32.mrf.mxu2  ;;  %v1137_v41 = vpop.f32.mrf.mxu3 }
 0xe15   :  { %v1141_v42 = vadd.f32 %v1124_v40, %v253_v37  ;;  %v1142_v43 = vadd.f32 %v1137_v41, %v3041_v10  ;;  %v2642_v37 = vld [vmem:[%s3632_s3 + $0x4] sm:$0xf]  ;;  %v2503_v40 = vld [vmem:[%s3632_s3 + $0x8] sm:$0xf0]  ;;  %v2502_v41 = vor.u32 %v2643_v36, %v2501_v35 }
 0xe17   :  { %2773 = vtanh.f32 %v1141_v42  ;;  %v2498_v50 = vmul.f32 -1.442695, %v1142_v43  ;;  %v2497_v46 = vmul.f32 -1.442695, %v1141_v42  ;;  %v2506_v42 = vor.u32 %v2642_v37, %v2503_v40  ;;  %1312 = vmatpush.bf16.msra.mxu0 %v2502_v41 }
 0xe18   :  { %2775 = vtanh.f32 %v1142_v43 }
 0xe19   :  { %2777 = vpow2.f32 %v2498_v50  ;;  %1341 = vmatpush.bf16.msra.mxu1 %v2506_v42 }
 0xe1c   :  { %v1126_v32 = vpop.f32.mrf.mxu2  ;;  %v1139_v44 = vpop.f32.mrf.mxu3 }
 0xe1d   :  { %v2774_v47 = vpop.eup %2773 }
 0xe1e   :  { %v2776_v48 = vpop.eup %2775  ;;  %1189 = vrot.lane.b32.xlu0 %v2774_v47, %s2957_s10 }
 0xe1f   :  { %1200 = vrot.lane.b32.xlu2 %v2776_v48, %s2957_s10  ;;  %v2778_v39 = vpop.eup %2777 }
 0xe20   :  { %v1150_v49 = vadd.f32 1.0, %v2778_v39 }
 0xe22   :  { %2779 = vrcp.f32 %v1150_v49  ;;  %v1177_v23 = vand.u32 2147483648, %v1150_v49  ;;  %vm1171_vm1 = vweird.f32 %v1150_v49  ;;  %v1175_v55 = vand.u32 2147483647, %v1150_v49 }
 0xe23   :  { %2781 = vpow2.f32 %v2497_v46 }
 0xe24   :  { %v1178_v63 = vor.u32 1.1754944e-38, %v1177_v23  ;;  %vm1176_vm3 = vcmp.eq.f32.partialorder %v1175_v55, 8.507059e+37  ;;  %v1231_v23 = vld [vmem:[#allocation2 + $0x20] sm:$0xff] }
 0xe28   :  { %v2780_v5 = vpop.eup %2779 }
 0xe29   :  { %v1167_v51 = vmul.f32 %v2780_v5, %v1150_v49  ;;  %v2782_v52 = vpop.eup %2781  ;;  %vm1172_vm0 = vweird.f32 %v2780_v5 }
 0xe2a   :  { %v1149_v54 = vadd.f32 1.0, %v2782_v52  ;;  %vm1173_vm2 = vmor %vm1171_vm1, %vm1172_vm0 }
 0xe2b   :  { %v1168_v10 = vsub.f32 1.0, %v1167_v51 }
 0xe2c   :  { %2783 = vrcp.f32 %v1149_v54  ;;  %v1162_v26 = vand.u32 2147483648, %v1149_v54  ;;  %vm1156_vm8 = vweird.f32 %v1149_v54  ;;  %v1160_v27 = vand.u32 2147483647, %v1149_v54 }
 0xe2d   :  { %v1169_v53 = vmul.f32 %v2780_v5, %v1168_v10  ;;  %v1228_v10 = vld [vmem:[#allocation2 + $0x8] sm:$0xff] }
 0xe2e   :  { %v1163_v59 = vor.u32 1.1754944e-38, %v1162_v26  ;;  %vm1161_vm10 = vcmp.eq.f32.partialorder %v1160_v27, 8.507059e+37 }
 0xe2f   :  { %v1170_v45 = vadd.f32 %v2780_v5, %v1169_v53  ;;  %v1230_v53 = vld [vmem:[#allocation2 + $0x18] sm:$0xff] }
 0xe31   :  { %v1174_v56 = vsel %vm1173_vm2, %v2780_v5, %v1170_v45  ;;  %v1232_v45 = vld [vmem:[#allocation2 + $0x28] sm:$0xff] }
 0xe32   :  { %v1179_v13 = vsel %vm1176_vm3, %v1178_v63, %v1174_v56  ;;  %v2784_v6 = vpop.eup %2783  ;;  %v1237_v55 = vpack.c.bf16 %v1232_v45, %v1231_v23  ;;  %v1233_v63 = vld [vmem:[#allocation2 + $0x30] sm:$0xff] }
 0xe33   :  { %v1152_v57 = vmul.f32 %v2784_v6, %v1149_v54  ;;  %vm1157_vm7 = vweird.f32 %v2784_v6  ;;  %v1198_v32 = vmul.f32 %v1179_v13, %v3263_v30  ;;  %v1229_v30 = vld [vmem:[#allocation2 + $0x10] sm:$0xff] }
 0xe34   :  { %vm1158_vm9 = vmor %vm1156_vm8, %vm1157_vm7  ;;  %v1236_v54 = vpack.c.bf16 %v1230_v53, %v1229_v30 }
 0xe35   :  { %v1153_v14 = vsub.f32 1.0, %v1152_v57 }
 0xe37   :  { %v1154_v22 = vmul.f32 %v2784_v6, %v1153_v14 }
 0xe39   :  { %v1155_v15 = vadd.f32 %v2784_v6, %v1154_v22 }
 0xe3b   :  { %v1159_v58 = vsel %vm1158_vm9, %v2784_v6, %v1155_v15 }
 0xe3c   :  { %v1164_v17 = vsel %vm1161_vm10, %v1163_v59, %v1159_v58 }
 0xe3d   :  { %v1187_v62 = vmul.f32 %v1185_v61, %v1164_v17 }
 0xe79   :  { %v1201_v1 = vpop.permute.xlu2 %1200 }
 0xe7a   :  { %v1203_v8 = vmul.f32 %v1201_v1, %v1179_v13 }
 0xe7c   :  { %1205 = vrot.lane.b32.xlu1 %v1203_v8, %s2958_s2 }
 0xe84   :  { %1219 = vrot.lane.b32.xlu1 %v1179_v13, %s2957_s10  ;;  %v1247_v13 = vld [vmem:[%s3633_s4] sm:$0x3] }
 0xe85   :  { %v3347_v6 = vperm.slane %v1247_v13, 0  ;;  %v1250_v8 = vperm.slane %v1247_v13, 1  ;;  %v2657_v13 = vld [vmem:[#allocation5 + $0x74] sm:$0xf0] }
 0xe90   :  { %v1190_v21 = vpop.permute.xlu0 %1189 }
 0xe91   :  { %v1192_v60 = vmul.f32 %v1190_v21, %v1164_v17 }
 0xe93   :  { %1194 = vrot.lane.b32.xlu0 %v1192_v60, %s2958_s2 }
 0xe9b   :  { %1215 = vrot.lane.b32.xlu0 %v1164_v17, %s2958_s2 }
 0xeee   :  { %v1206_v43 = vpop.permute.xlu1 %1205 }
 0xeef   :  { %v1208_v44 = vadd.f32 %v1206_v43, %v1198_v32 }
 0xef6   :  { %v1220_v39 = vpop.permute.xlu1 %1219 }
 0xf05   :  { %v1195_v0 = vpop.permute.xlu0 %1194 }
 0xf06   :  { %v1197_v19 = vadd.f32 %v1195_v0, %v1187_v62 }
 0xf08   :  { %1210 = vrot.lane.b32.xlu2 %v1197_v19, %s2959_s11 }
 0xf0d   :  { %v1216_v50 = vpop.permute.xlu0 %1215 }
 0xf0e   :  { %v1222_v5 = vsel %vm358_vm4, %v1216_v50, %v1220_v39 }
 0xf62   :  { %v1211_v47 = vpop.permute.xlu2 %1210 }
 0xf63   :  { %v1213_v48 = vsel %vm358_vm4, %v1211_v47, %v1208_v44 }
 0xf64   :  { %2785 = vtanh.f32 %v1213_v48 }
 0xf6a   :  { %v2786_v49 = vpop.eup %2785 }
 0xf6b   :  { %v1224_v46 = vmul.f32 %v2786_v49, %v1222_v5 }
 0xf6d   :  { %1225 = vst.msk [vmem:[#allocation2 + $0x38] sm:$0xff] %vm358_vm4, %v1224_v46 }
 0xf6e   :  { %1226 = vst.msk [vmem:[#allocation2] sm:$0xff] %vm372_vm5, %v1224_v46 }
 0xf74   :  { %v1234_v56 = vld [vmem:[#allocation2 + $0x38] sm:$0xff] }
 0xf75   :  { %v1227_v51 = vld [vmem:[#allocation2] sm:$0xff]  ;;  %v1238_v1 = vpack.c.bf16 %v1234_v56, %v1233_v63 }
 0xf76   :  { %v1235_v52 = vpack.c.bf16 %v1228_v10, %v1227_v51 }
 0xf78   :  { %2531 = vmatmul.msk.bf16.vlgmr.msra.gmra.mxu0 %vm415_vm6, %v1235_v52  ;;  %2535 = vmatmul.msk.bf16.vlgmr.msra.gmra.mxu1 %vm415_vm6, %v1235_v52 }
 0xf88   :  { %2532 = vmatmul.msk.bf16.gmra.mxu0 %vm415_vm6, %v1236_v54  ;;  %2536 = vmatmul.msk.bf16.gmra.mxu1 %vm415_vm6, %v1236_v54 }
 0xf98   :  { %2533 = vmatmul.msk.bf16.gmra.mxu0 %vm415_vm6, %v1237_v55  ;;  %2537 = vmatmul.msk.bf16.gmra.mxu1 %vm415_vm6, %v1237_v55 }
 0xfa8   :  { %2534 = vmatmul.msk.bf16.gmra.mxu0 %vm415_vm6, %v1238_v1  ;;  %2538 = vmatmul.msk.bf16.gmra.mxu1 %vm415_vm6, %v1238_v1  ;;  %v2567_v1 = vld [vmem:[#allocation5 + $0x70] sm:$0xf] }
 0xff5   :  { %v1314_v57 = vpop.f32.mrf.mxu0  ;;  %v1343_v14 = vpop.f32.mrf.mxu1 }
 0xff6   :  { %v1315_v22 = vadd.f32 %v1314_v57, %v3347_v6  ;;  %v3350_v15 = vadd.f32 %v1343_v14, %v1250_v8  ;;  %v3388_v57 = vor.u32 %v2657_v13, %v2567_v1  ;;  %v2569_v14 = vld [vmem:[#allocation5 + $0x78] sm:$0xf0] }
 0xff8   :  { %2787 = vtanh.f32 %v1315_v22  ;;  %v2539_v20 = vmul.f32 -1.442695, %v1315_v22  ;;  %1498 = vmatpush.bf16.msra.mxu2 %v3388_v57  ;;  %1954 = vmatpush.bf16.msrb.mxu0 %v3388_v57 }
 0xffa   :  { %2789 = vpow2.f32 %v2539_v20  ;;  %v2652_v20 = vld [vmem:[#allocation5 + $0x54] sm:$0xf] }
 0xffd   :  { %v3352_v26 = vpop.f32.mrf.mxu0  ;;  %v1345_v27 = vpop.f32.mrf.mxu1 }
 0xffe   :  { %v2788_v58 = vpop.eup %2787  ;;  %v3354_v59 = vadd.f32 %v1345_v27, %v1250_v8  ;;  %v2559_v27 = vld [vmem:[#allocation5 + $0x60] sm:$0xf] }
 0xfff   :  { %1414 = vrot.lane.b32.xlu2 %v2788_v58, %s2957_s10  ;;  %v2655_v58 = vld [vmem:[#allocation5 + $0x64] sm:$0xf0] }
0x1000   :  { %v2790_v28 = vpop.eup %2789 }
0x1001   :  { %v1378_v31 = vadd.f32 1.0, %v2790_v28 }
0x1003   :  { %v1391_v37 = vand.u32 2147483648, %v1378_v31  ;;  %vm1385_vm11 = vweird.f32 %v1378_v31  ;;  %v1389_v40 = vand.u32 2147483647, %v1378_v31 }
0x1005   :  { %v3357_v21 = vpop.f32.mrf.mxu0  ;;  %v1348_v17 = vpop.f32.mrf.mxu1  ;;  %v1392_v42 = vor.u32 1.1754944e-38, %v1391_v37  ;;  %vm1390_vm13 = vcmp.eq.f32.partialorder %v1389_v40, 8.507059e+37 }
0x1006   :  { %v3359_v60 = vadd.f32 %v1348_v17, %v1250_v8  ;;  %v2654_v17 = vld [vmem:[#allocation5 + $0x64] sm:$0xf] }
0x100d   :  { %v3361_v61 = vpop.f32.mrf.mxu0  ;;  %v1350_v62 = vpop.f32.mrf.mxu1 }
0x100e   :  { %v3363_v0 = vadd.f32 %v1350_v62, %v1250_v8  ;;  %v3396_v62 = vor.u32 %v2655_v58, %v2559_v27 }
0x1010   :  { %1499 = vmatpush.bf16.msra.mxu2 %v3396_v62  ;;  %1955 = vmatpush.bf16.msrb.mxu0 %v3396_v62 }
0x1015   :  { %v3365_v19 = vpop.f32.mrf.mxu0  ;;  %v1353_v2 = vpop.f32.mrf.mxu1 }
0x1016   :  { %v3367_v3 = vadd.f32 %v1353_v2, %v1250_v8  ;;  %v2561_v2 = vld [vmem:[#allocation5 + $0x68] sm:$0xf0] }
0x101d   :  { %v3369_v4 = vpop.f32.mrf.mxu0  ;;  %v1355_v7 = vpop.f32.mrf.mxu1 }
0x101e   :  { %v3371_v9 = vadd.f32 %v1355_v7, %v1250_v8  ;;  %v3398_v7 = vor.u32 %v2654_v17, %v2561_v2 }
0x1025   :  { %v1329_v11 = vpop.f32.mrf.mxu0  ;;  %v1358_v12 = vpop.f32.mrf.mxu1 }
0x1026   :  { %v3374_v16 = vadd.f32 %v1329_v11, %v3347_v6  ;;  %v3376_v18 = vadd.f32 %v1358_v12, %v1250_v8  ;;  %v2551_v11 = vld [vmem:[#allocation5 + $0x50] sm:$0xf]  ;;  %v2653_v12 = vld [vmem:[#allocation5 + $0x54] sm:$0xf0] }
0x102d   :  { %v1360_v24 = vpop.f32.mrf.mxu1 }
0x102e   :  { %v1361_v25 = vadd.f32 %v1360_v24, %v1250_v8  ;;  %v2656_v8 = vld [vmem:[#allocation5 + $0x74] sm:$0xf]  ;;  %v3404_v24 = vor.u32 %v2653_v12, %v2551_v11 }
0x102f   :  { %v3390_v22 = vor.u32 %v2656_v8, %v2569_v14 }
0x1030   :  { %2791 = vtanh.f32 %v1361_v25  ;;  %v2540_v47 = vmul.f32 -1.442695, %v1361_v25  ;;  %v2553_v25 = vld [vmem:[#allocation5 + $0x58] sm:$0xf0]  ;;  %1500 = vmatpush.bf16.msra.mxu2 %v3404_v24  ;;  %1956 = vmatpush.bf16.msrb.mxu0 %v3404_v24 }
0x1031   :  { %2793 = vrcp.f32 %v1378_v31  ;;  %1511 = vmatpush.bf16.msra.mxu3 %v3390_v22  ;;  %1967 = vmatpush.bf16.msrb.mxu1 %v3390_v22  ;;  %v3406_v28 = vor.u32 %v2652_v20, %v2553_v25 }
0x1032   :  { %2795 = vpow2.f32 %v2540_v47 }
0x1035   :  { %1512 = vmatpush.bf16.msra.mxu3 %v3398_v7  ;;  %1968 = vmatpush.bf16.msrb.mxu1 %v3398_v7 }
0x1036   :  { %v2792_v29 = vpop.eup %2791 }
0x1037   :  { %1425 = vrot.lane.b32.xlu0 %v2792_v29, %s2957_s10  ;;  %v2794_v33 = vpop.eup %2793  ;;  %v2543_v29 = vld [vmem:[#allocation5 + $0x40] sm:$0xf] }
0x1038   :  { %v1381_v34 = vmul.f32 %v2794_v33, %v1378_v31  ;;  %vm1386_vm5 = vweird.f32 %v2794_v33  ;;  %v2796_v48 = vpop.eup %2795  ;;  %v2651_v31 = vld [vmem:[#allocation5 + $0x44] sm:$0xf0] }
0x1039   :  { %vm1387_vm12 = vmor %vm1385_vm11, %vm1386_vm5  ;;  %v1379_v50 = vadd.f32 1.0, %v2796_v48  ;;  %1513 = vmatpush.bf16.msra.mxu3 %v3406_v28  ;;  %1969 = vmatpush.bf16.msrb.mxu1 %v3406_v28 }
0x103a   :  { %v1382_v35 = vsub.f32 1.0, %v1381_v34  ;;  %v3412_v34 = vor.u32 %v2651_v31, %v2543_v29 }
0x103b   :  { %2797 = vrcp.f32 %v1379_v50  ;;  %v1406_v10 = vand.u32 2147483648, %v1379_v50  ;;  %vm1400_vm15 = vweird.f32 %v1379_v50  ;;  %v1404_v52 = vand.u32 2147483647, %v1379_v50 }
0x103c   :  { %v1383_v36 = vmul.f32 %v2794_v33, %v1382_v35  ;;  %v2545_v35 = vld [vmem:[#allocation5 + $0x48] sm:$0xf0]  ;;  %1501 = vmatpush.bf16.msra.mxu2 %v3412_v34  ;;  %1957 = vmatpush.bf16.msrb.mxu0 %v3412_v34 }
0x103d   :  { %v1407_v53 = vor.u32 1.1754944e-38, %v1406_v10  ;;  %vm1405_vm1 = vcmp.eq.f32.partialorder %v1404_v52, 8.507059e+37 }
0x103e   :  { %v1384_v38 = vadd.f32 %v2794_v33, %v1383_v36 }
0x1040   :  { %v1388_v41 = vsel %vm1387_vm12, %v2794_v33, %v1384_v38  ;;  %v2650_v33 = vld [vmem:[#allocation5 + $0x44] sm:$0xf]  ;;  %1612 = vmatpush.bf16.msrb.mxu2 %v3388_v57  ;;  %2182 = vmatpush.bf16.msra.mxu0 %v3388_v57 }
0x1041   :  { %v1393_v32 = vsel %vm1390_vm13, %v1392_v42, %v1388_v41  ;;  %v2798_v39 = vpop.eup %2797  ;;  %v3414_v36 = vor.u32 %v2650_v33, %v2545_v35 }
0x1042   :  { %v1396_v49 = vmul.f32 %v2798_v39, %v1379_v50  ;;  %vm1401_vm14 = vweird.f32 %v2798_v39  ;;  %v1412_v55 = vmul.f32 0.0, %v1393_v32 }
0x1043   :  { %vm1402_vm0 = vmor %vm1400_vm15, %vm1401_vm14  ;;  %1514 = vmatpush.bf16.msra.mxu3 %v3414_v36  ;;  %1970 = vmatpush.bf16.msrb.mxu1 %v3414_v36 }
0x1044   :  { %v1397_v5 = vsub.f32 1.0, %v1396_v49  ;;  %1613 = vmatpush.bf16.msrb.mxu2 %v3396_v62  ;;  %2183 = vmatpush.bf16.msra.mxu0 %v3396_v62 }
0x1046   :  { %v1398_v46 = vmul.f32 %v2798_v39, %v1397_v5 }
0x1047   :  { %1625 = vmatpush.bf16.msrb.mxu3 %v3390_v22  ;;  %2195 = vmatpush.bf16.msra.mxu1 %v3390_v22 }
0x1048   :  { %v1399_v51 = vadd.f32 %v2798_v39, %v1398_v46  ;;  %1614 = vmatpush.bf16.msrb.mxu2 %v3404_v24  ;;  %2184 = vmatpush.bf16.msra.mxu0 %v3404_v24 }
0x104a   :  { %v1403_v30 = vsel %vm1402_vm0, %v2798_v39, %v1399_v51  ;;  %v1317_v39 = vadd.f32 %v3352_v26, %v3347_v6 }
0x104b   :  { %v3381_v45 = vsel %vm1405_vm1, %v1407_v53, %v1403_v30  ;;  %1626 = vmatpush.bf16.msrb.mxu3 %v3398_v7  ;;  %2196 = vmatpush.bf16.msra.mxu1 %v3398_v7 }
0x104c   :  { %1615 = vmatpush.bf16.msrb.mxu2 %v3412_v34  ;;  %2185 = vmatpush.bf16.msra.mxu0 %v3412_v34  ;;  %v1423_v37 = vmul.f32 0.0, %v3381_v45 }
0x104f   :  { %1627 = vmatpush.bf16.msrb.mxu3 %v3406_v28  ;;  %2197 = vmatpush.bf16.msra.mxu1 %v3406_v28 }
0x1053   :  { %1628 = vmatpush.bf16.msrb.mxu3 %v3414_v36  ;;  %2198 = vmatpush.bf16.msra.mxu1 %v3414_v36 }
0x1059   :  { %v1415_v43 = vpop.permute.xlu2 %1414 }
0x105a   :  { %v1417_v44 = vmul.f32 %v1415_v43, %v1393_v32 }
0x105c   :  { %1419 = vrot.lane.b32.xlu1 %v1417_v44, %s2958_s2 }
0x1064   :  { %1440 = vrot.lane.b32.xlu1 %v1393_v32, %s2958_s2 }
0x10a9   :  { %v1426_v54 = vpop.permute.xlu0 %1425 }
0x10aa   :  { %v1428_v23 = vmul.f32 %v1426_v54, %v3381_v45 }
0x10ac   :  { %1430 = vrot.lane.b32.xlu2 %v1428_v23, %s2958_s2 }
0x10b4   :  { %1444 = vrot.lane.b32.xlu2 %v3381_v45, %s2957_s10 }
0x10ce   :  { %v1420_v56 = vpop.permute.xlu1 %1419 }
0x10cf   :  { %v1422_v63 = vadd.f32 %v1420_v56, %v1412_v55 }
0x10d1   :  { %1435 = vrot.lane.b32.xlu0 %v1422_v63, %s2959_s11 }
0x10d6   :  { %v1441_v32 = vpop.permute.xlu1 %1440 }
0x1106   :  { %v1431_v38 = vpop.permute.xlu2 %1430 }
0x1107   :  { %v1433_v40 = vadd.f32 %v1431_v38, %v1423_v37 }
0x110e   :  { %v1445_v43 = vpop.permute.xlu2 %1444 }
0x110f   :  { %v1447_v47 = vsel %vm358_vm4, %v1441_v32, %v1445_v43 }
0x1143   :  { %v1436_v41 = vpop.permute.xlu0 %1435 }
0x1144   :  { %v3438_v42 = vsel %vm358_vm4, %v1436_v41, %v1433_v40 }
0x1145   :  { %1563 = vrot.lane.b32.xlu1 %v3438_v42, %s2958_s2  ;;  %2799 = vtanh.f32 %v3438_v42 }
0x114b   :  { %v2800_v44 = vpop.eup %2799 }
0x114c   :  { %v3444_v48 = vmul.f32 %v2800_v44, %v1447_v47 }
0x114e   :  { %v1450_v50 = vpack.c.bf16 %v3444_v48, %v3444_v48 }
0x1150   :  { %2573 = vmatmul.msk.bf16.vlgmr.msra.gmra.mxu2 %vm415_vm6, %v1450_v50  ;;  %2574 = vmatmul.msk.bf16.vlgmr.msra.gmra.mxu3 %vm415_vm6, %v1450_v50 }
0x1151   :  { %1726 = vmatpush.bf16.msra.mxu2 %v3388_v57  ;;  %1739 = vmatpush.bf16.msra.mxu3 %v3390_v22 }
0x1155   :  { %1727 = vmatpush.bf16.msra.mxu2 %v3396_v62  ;;  %1740 = vmatpush.bf16.msra.mxu3 %v3398_v7 }
0x1159   :  { %1728 = vmatpush.bf16.msra.mxu2 %v3404_v24  ;;  %1741 = vmatpush.bf16.msra.mxu3 %v3406_v28 }
0x115d   :  { %1729 = vmatpush.bf16.msra.mxu2 %v3412_v34  ;;  %1742 = vmatpush.bf16.msra.mxu3 %v3414_v36 }
0x11b7   :  { %v1564_v44 = vpop.permute.xlu1 %1563 }
0x11d3   :  { %v1503_v49 = vpop.f32.mrf.mxu2  ;;  %v1516_v5 = vpop.f32.mrf.mxu3 }
0x11d4   :  { %v1520_v46 = vadd.f32 %v1503_v49, %v1317_v39  ;;  %v1521_v51 = vadd.f32 %v1516_v5, %v3376_v18 }
0x11d6   :  { %2801 = vtanh.f32 %v1520_v46  ;;  %v2576_v54 = vmul.f32 -1.442695, %v1521_v51  ;;  %v2575_v55 = vmul.f32 -1.442695, %v1520_v46 }
0x11d7   :  { %2803 = vtanh.f32 %v1521_v51 }
0x11d8   :  { %2805 = vpow2.f32 %v2576_v54 }
0x11db   :  { %v1505_v10 = vpop.f32.mrf.mxu2  ;;  %v1518_v52 = vpop.f32.mrf.mxu3 }
0x11dc   :  { %v2802_v30 = vpop.eup %2801 }
0x11dd   :  { %v2804_v53 = vpop.eup %2803  ;;  %1568 = vrot.lane.b32.xlu0 %v2802_v30, %s2957_s10 }
0x11de   :  { %1579 = vrot.lane.b32.xlu2 %v2804_v53, %s2957_s10  ;;  %v2806_v45 = vpop.eup %2805 }
0x11df   :  { %v1529_v23 = vadd.f32 1.0, %v2806_v45 }
0x11e1   :  { %2807 = vrcp.f32 %v1529_v23  ;;  %v1556_v14 = vand.u32 2147483648, %v1529_v23  ;;  %vm1550_vm3 = vweird.f32 %v1529_v23  ;;  %v1554_v27 = vand.u32 2147483647, %v1529_v23 }
0x11e2   :  { %2809 = vpow2.f32 %v2575_v55 }
0x11e3   :  { %v1557_v17 = vor.u32 1.1754944e-38, %v1556_v14  ;;  %vm1555_vm8 = vcmp.eq.f32.partialorder %v1554_v27, 8.507059e+37 }
0x11e7   :  { %v2808_v26 = vpop.eup %2807 }
0x11e8   :  { %v1546_v56 = vmul.f32 %v2808_v26, %v1529_v23  ;;  %v2810_v63 = vpop.eup %2809  ;;  %vm1551_vm2 = vweird.f32 %v2808_v26 }
0x11e9   :  { %v1528_v13 = vadd.f32 1.0, %v2810_v63  ;;  %vm1552_vm7 = vmor %vm1550_vm3, %vm1551_vm2 }
0x11ea   :  { %v1547_v18 = vsub.f32 1.0, %v1546_v56 }
0x11eb   :  { %2811 = vrcp.f32 %v1528_v13  ;;  %v1541_v35 = vand.u32 2147483648, %v1528_v13  ;;  %vm1535_vm10 = vweird.f32 %v1528_v13  ;;  %v1539_v38 = vand.u32 2147483647, %v1528_v13 }
0x11ec   :  { %v1548_v1 = vmul.f32 %v2808_v26, %v1547_v18 }
0x11ed   :  { %v1542_v40 = vor.u32 1.1754944e-38, %v1541_v35  ;;  %vm1540_vm11 = vcmp.eq.f32.partialorder %v1539_v38, 8.507059e+37 }
0x11ee   :  { %v1549_v8 = vadd.f32 %v2808_v26, %v1548_v1 }
0x11f0   :  { %v1553_v58 = vsel %vm1552_vm7, %v2808_v26, %v1549_v8 }
0x11f1   :  { %v1558_v11 = vsel %vm1555_vm8, %v1557_v17, %v1553_v58  ;;  %v2812_v12 = vpop.eup %2811 }
0x11f2   :  { %v1531_v25 = vmul.f32 %v2812_v12, %v1528_v13  ;;  %vm1536_vm9 = vweird.f32 %v2812_v12  ;;  %v1577_v5 = vmul.f32 %v1558_v11, %v3438_v42  ;;  %v1320_v42 = vadd.f32 %v3357_v21, %v3347_v6 }
0x11f3   :  { %vm1537_vm5 = vmor %vm1535_vm10, %vm1536_vm9 }
0x11f4   :  { %v1532_v29 = vsub.f32 1.0, %v1531_v25 }
0x11f6   :  { %v1533_v31 = vmul.f32 %v2812_v12, %v1532_v29 }
0x11f8   :  { %v1534_v33 = vadd.f32 %v2812_v12, %v1533_v31 }
0x11fa   :  { %v1538_v37 = vsel %vm1537_vm5, %v2812_v12, %v1534_v33 }
0x11fb   :  { %v1543_v43 = vsel %vm1540_vm11, %v1542_v40, %v1538_v37 }
0x11fc   :  { %v1566_v47 = vmul.f32 %v1564_v44, %v1543_v43 }
0x1238   :  { %v1580_v2 = vpop.permute.xlu2 %1579 }
0x1239   :  { %v1582_v20 = vmul.f32 %v1580_v2, %v1558_v11 }
0x123b   :  { %1584 = vrot.lane.b32.xlu1 %v1582_v20, %s2958_s2 }
0x1243   :  { %1598 = vrot.lane.b32.xlu1 %v1558_v11, %s2957_s10 }
0x124f   :  { %v1569_v41 = vpop.permute.xlu0 %1568 }
0x1250   :  { %v1571_v32 = vmul.f32 %v1569_v41, %v1543_v43 }
0x1252   :  { %1573 = vrot.lane.b32.xlu0 %v1571_v32, %s2958_s2 }
0x125a   :  { %1594 = vrot.lane.b32.xlu0 %v1543_v43, %s2958_s2 }
0x12ad   :  { %v1585_v49 = vpop.permute.xlu1 %1584 }
0x12ae   :  { %v1587_v46 = vadd.f32 %v1585_v49, %v1577_v5 }
0x12b5   :  { %v1599_v30 = vpop.permute.xlu1 %1598 }
0x12c4   :  { %v1574_v50 = vpop.permute.xlu0 %1573 }
0x12c5   :  { %v1576_v39 = vadd.f32 %v1574_v50, %v1566_v47 }
0x12c7   :  { %1589 = vrot.lane.b32.xlu2 %v1576_v39, %s2959_s11 }
0x12cc   :  { %v1595_v52 = vpop.permute.xlu0 %1594 }
0x12cd   :  { %v1601_v54 = vsel %vm358_vm4, %v1595_v52, %v1599_v30 }
0x1321   :  { %v1590_v51 = vpop.permute.xlu2 %1589 }
0x1322   :  { %v3470_v10 = vsel %vm358_vm4, %v1590_v51, %v1587_v46 }
0x1323   :  { %1677 = vrot.lane.b32.xlu0 %v3470_v10, %s2958_s2  ;;  %2813 = vtanh.f32 %v3470_v10 }
0x1329   :  { %v2814_v53 = vpop.eup %2813 }
0x132a   :  { %v1603_v45 = vmul.f32 %v2814_v53, %v1601_v54 }
0x132c   :  { %v1604_v23 = vpack.c.bf16 %v1603_v45, %v1603_v45 }
0x132e   :  { %2577 = vmatmul.msk.bf16.vlgmr.msrb.gmra.mxu2 %vm415_vm6, %v1604_v23  ;;  %2578 = vmatmul.msk.bf16.vlgmr.msrb.gmra.mxu3 %vm415_vm6, %v1604_v23 }
0x132f   :  { %1840 = vmatpush.bf16.msrb.mxu2 %v3388_v57  ;;  %1853 = vmatpush.bf16.msrb.mxu3 %v3390_v22 }
0x1333   :  { %1841 = vmatpush.bf16.msrb.mxu2 %v3396_v62  ;;  %1854 = vmatpush.bf16.msrb.mxu3 %v3398_v7 }
0x1337   :  { %1842 = vmatpush.bf16.msrb.mxu2 %v3404_v24  ;;  %1855 = vmatpush.bf16.msrb.mxu3 %v3406_v28 }
0x133b   :  { %1843 = vmatpush.bf16.msrb.mxu2 %v3412_v34  ;;  %1856 = vmatpush.bf16.msrb.mxu3 %v3414_v36 }
0x1395   :  { %v1678_v30 = vpop.permute.xlu0 %1677 }
0x13b1   :  { %v1617_v26 = vpop.f32.mrf.mxu2  ;;  %v1630_v55 = vpop.f32.mrf.mxu3 }
0x13b2   :  { %v1634_v56 = vadd.f32 %v1617_v26, %v1320_v42  ;;  %v1635_v18 = vadd.f32 %v1630_v55, %v3371_v9 }
0x13b4   :  { %2815 = vtanh.f32 %v1634_v56  ;;  %v2579_v14 = vmul.f32 -1.442695, %v1634_v56  ;;  %v2580_v17 = vmul.f32 -1.442695, %v1635_v18 }
0x13b5   :  { %2817 = vtanh.f32 %v1635_v18 }
0x13b6   :  { %2819 = vpow2.f32 %v2579_v14 }
0x13b9   :  { %v1619_v63 = vpop.f32.mrf.mxu2  ;;  %v1632_v1 = vpop.f32.mrf.mxu3 }
0x13ba   :  { %v2816_v13 = vpop.eup %2815 }
0x13bb   :  { %v2818_v8 = vpop.eup %2817  ;;  %1682 = vrot.lane.b32.xlu2 %v2816_v13, %s2957_s10 }
0x13bc   :  { %1693 = vrot.lane.b32.xlu1 %v2818_v8, %s2957_s10  ;;  %v2820_v27 = vpop.eup %2819 }
0x13bd   :  { %v1642_v58 = vadd.f32 1.0, %v2820_v27 }
0x13bf   :  { %2821 = vrcp.f32 %v1642_v58  ;;  %v1655_v29 = vand.u32 2147483648, %v1642_v58  ;;  %vm1649_vm13 = vweird.f32 %v1642_v58  ;;  %v1653_v31 = vand.u32 2147483647, %v1642_v58 }
0x13c0   :  { %2823 = vpow2.f32 %v2580_v17 }
0x13c1   :  { %v1656_v35 = vor.u32 1.1754944e-38, %v1655_v29  ;;  %vm1654_vm15 = vcmp.eq.f32.partialorder %v1653_v31, 8.507059e+37 }
0x13c5   :  { %v2822_v21 = vpop.eup %2821 }
0x13c6   :  { %v1645_v2 = vmul.f32 %v2822_v21, %v1642_v58  ;;  %v2824_v12 = vpop.eup %2823  ;;  %vm1650_vm12 = vweird.f32 %v2822_v21 }
0x13c7   :  { %v1643_v20 = vadd.f32 1.0, %v2824_v12  ;;  %vm1651_vm14 = vmor %vm1649_vm13, %vm1650_vm12 }
0x13c8   :  { %v1646_v9 = vsub.f32 1.0, %v1645_v2 }
0x13c9   :  { %2825 = vrcp.f32 %v1643_v20  ;;  %v1670_v50 = vand.u32 2147483648, %v1643_v20  ;;  %vm1664_vm1 = vweird.f32 %v1643_v20  ;;  %v1668_v39 = vand.u32 2147483647, %v1643_v20 }
0x13ca   :  { %v1647_v11 = vmul.f32 %v2822_v21, %v1646_v9 }
0x13cb   :  { %v1671_v5 = vor.u32 1.1754944e-38, %v1670_v50  ;;  %vm1669_vm3 = vcmp.eq.f32.partialorder %v1668_v39, 8.507059e+37 }
0x13cc   :  { %v1648_v25 = vadd.f32 %v2822_v21, %v1647_v11 }
0x13ce   :  { %v1652_v33 = vsel %vm1651_vm14, %v2822_v21, %v1648_v25 }
0x13cf   :  { %v1657_v37 = vsel %vm1654_vm15, %v1656_v35, %v1652_v33  ;;  %v2826_v41 = vpop.eup %2825 }
0x13d0   :  { %v1660_v43 = vmul.f32 %v2826_v41, %v1643_v20  ;;  %vm1665_vm0 = vweird.f32 %v2826_v41  ;;  %v1680_v53 = vmul.f32 %v1678_v30, %v1657_v37 }
0x13d1   :  { %vm1666_vm2 = vmor %vm1664_vm1, %vm1665_vm0 }
0x13d2   :  { %v1661_v32 = vsub.f32 1.0, %v1660_v43 }
0x13d4   :  { %v1662_v44 = vmul.f32 %v2826_v41, %v1661_v32 }
0x13d6   :  { %v1663_v47 = vadd.f32 %v2826_v41, %v1662_v44 }
0x13d8   :  { %v1667_v49 = vsel %vm1666_vm2, %v2826_v41, %v1663_v47 }
0x13d9   :  { %v1672_v51 = vsel %vm1669_vm3, %v1671_v5, %v1667_v49 }
0x13da   :  { %v1691_v42 = vmul.f32 %v1672_v51, %v3470_v10  ;;  %v1322_v10 = vadd.f32 %v3361_v61, %v3347_v6 }
0x1415   :  { %v1683_v38 = vpop.permute.xlu2 %1682 }
0x1416   :  { %v1685_v40 = vmul.f32 %v1683_v38, %v1657_v37 }
0x1418   :  { %1687 = vrot.lane.b32.xlu2 %v1685_v40, %s2958_s2 }
0x1420   :  { %1708 = vrot.lane.b32.xlu2 %v1657_v37, %s2958_s2 }
0x142e   :  { %v1694_v46 = vpop.permute.xlu1 %1693 }
0x142f   :  { %v1696_v52 = vmul.f32 %v1694_v46, %v1672_v51 }
0x1431   :  { %1698 = vrot.lane.b32.xlu0 %v1696_v52, %s2958_s2 }
0x1439   :  { %1712 = vrot.lane.b32.xlu0 %v1672_v51, %s2957_s10 }
0x1472   :  { %v1688_v54 = vpop.permute.xlu2 %1687 }
0x1473   :  { %v1690_v45 = vadd.f32 %v1688_v54, %v1680_v53 }
0x1475   :  { %1703 = vrot.lane.b32.xlu1 %v1690_v45, %s2959_s11 }
0x147a   :  { %v1709_v63 = vpop.permute.xlu2 %1708 }
0x14a3   :  { %v1699_v23 = vpop.permute.xlu0 %1698 }
0x14a4   :  { %v1701_v26 = vadd.f32 %v1699_v23, %v1691_v42 }
0x14ab   :  { %v1713_v18 = vpop.permute.xlu0 %1712 }
0x14ac   :  { %v1715_v13 = vsel %vm358_vm4, %v1709_v63, %v1713_v18 }
0x14e7   :  { %v1704_v55 = vpop.permute.xlu1 %1703 }
0x14e8   :  { %v3498_v56 = vsel %vm358_vm4, %v1704_v55, %v1701_v26 }
0x14e9   :  { %1791 = vrot.lane.b32.xlu2 %v3498_v56, %s2958_s2  ;;  %2827 = vtanh.f32 %v3498_v56 }
0x14ef   :  { %v2828_v1 = vpop.eup %2827 }
0x14f0   :  { %v1717_v8 = vmul.f32 %v2828_v1, %v1715_v13 }
0x14f2   :  { %v1718_v14 = vpack.c.bf16 %v1717_v8, %v1717_v8 }
0x14f4   :  { %2581 = vmatmul.msk.bf16.vlgmr.msra.gmra.mxu2 %vm415_vm6, %v1718_v14  ;;  %2582 = vmatmul.msk.bf16.vlgmr.msra.gmra.mxu3 %vm415_vm6, %v1718_v14 }
0x14f5   :  { %2068 = vmatpush.bf16.msra.mxu2 %v3388_v57  ;;  %2081 = vmatpush.bf16.msra.mxu3 %v3390_v22 }
0x14f9   :  { %2069 = vmatpush.bf16.msra.mxu2 %v3396_v62  ;;  %2082 = vmatpush.bf16.msra.mxu3 %v3398_v7 }
0x14fd   :  { %2070 = vmatpush.bf16.msra.mxu2 %v3404_v24  ;;  %2083 = vmatpush.bf16.msra.mxu3 %v3406_v28 }
0x1501   :  { %2071 = vmatpush.bf16.msra.mxu2 %v3412_v34  ;;  %2084 = vmatpush.bf16.msra.mxu3 %v3414_v36 }
0x1543   :  { %v1792_v52 = vpop.permute.xlu2 %1791 }
0x1577   :  { %v1731_v27 = vpop.f32.mrf.mxu2  ;;  %v1744_v58 = vpop.f32.mrf.mxu3 }
0x1578   :  { %v1748_v57 = vadd.f32 %v1731_v27, %v1322_v10  ;;  %v1749_v22 = vadd.f32 %v1744_v58, %v3367_v3 }
0x157a   :  { %2829 = vtanh.f32 %v1748_v57  ;;  %v2583_v28 = vmul.f32 -1.442695, %v1748_v57  ;;  %v2584_v34 = vmul.f32 -1.442695, %v1749_v22 }
0x157b   :  { %2831 = vtanh.f32 %v1749_v22 }
0x157c   :  { %2833 = vpow2.f32 %v2583_v28 }
0x157d   :  { %2835 = vpow2.f32 %v2584_v34 }
0x157f   :  { %v1733_v62 = vpop.f32.mrf.mxu2  ;;  %v1746_v7 = vpop.f32.mrf.mxu3 }
0x1580   :  { %v2830_v21 = vpop.eup %2829 }
0x1581   :  { %v2832_v24 = vpop.eup %2831  ;;  %1796 = vrot.lane.b32.xlu1 %v2830_v21, %s2957_s10 }
0x1582   :  { %1807 = vrot.lane.b32.xlu0 %v2832_v24, %s2957_s10  ;;  %v2834_v61 = vpop.eup %2833 }
0x1583   :  { %v2836_v36 = vpop.eup %2835  ;;  %v1756_v17 = vadd.f32 1.0, %v2834_v61 }
0x1584   :  { %v1757_v2 = vadd.f32 1.0, %v2836_v36 }
0x1585   :  { %2837 = vrcp.f32 %v1756_v17  ;;  %v1769_v38 = vand.u32 2147483648, %v1756_v17  ;;  %vm1763_vm9 = vweird.f32 %v1756_v17  ;;  %v1767_v40 = vand.u32 2147483647, %v1756_v17 }
0x1586   :  { %2839 = vrcp.f32 %v1757_v2  ;;  %v1784_v37 = vand.u32 2147483648, %v1757_v2  ;;  %vm1778_vm10 = vweird.f32 %v1757_v2  ;;  %v1782_v41 = vand.u32 2147483647, %v1757_v2 }
0x1587   :  { %v1770_v44 = vor.u32 1.1754944e-38, %v1769_v38  ;;  %vm1768_vm12 = vcmp.eq.f32.partialorder %v1767_v40, 8.507059e+37 }
0x1588   :  { %v1785_v47 = vor.u32 1.1754944e-38, %v1784_v37  ;;  %vm1783_vm13 = vcmp.eq.f32.partialorder %v1782_v41, 8.507059e+37 }
0x158b   :  { %v2838_v3 = vpop.eup %2837 }
0x158c   :  { %v2840_v9 = vpop.eup %2839  ;;  %v1759_v11 = vmul.f32 %v2838_v3, %v1756_v17  ;;  %vm1764_vm7 = vweird.f32 %v2838_v3 }
0x158d   :  { %v1774_v12 = vmul.f32 %v2840_v9, %v1757_v2  ;;  %vm1779_vm8 = vweird.f32 %v2840_v9  ;;  %vm1765_vm5 = vmor %vm1763_vm9, %vm1764_vm7 }
0x158e   :  { %v1760_v20 = vsub.f32 1.0, %v1759_v11  ;;  %vm1780_vm11 = vmor %vm1778_vm10, %vm1779_vm8 }
0x158f   :  { %v1775_v25 = vsub.f32 1.0, %v1774_v12 }
0x1590   :  { %v1761_v29 = vmul.f32 %v2838_v3, %v1760_v20 }
0x1591   :  { %v1776_v31 = vmul.f32 %v2840_v9, %v1775_v25 }
0x1592   :  { %v1762_v33 = vadd.f32 %v2838_v3, %v1761_v29 }
0x1593   :  { %v1777_v35 = vadd.f32 %v2840_v9, %v1776_v31 }
0x1594   :  { %v1766_v43 = vsel %vm1765_vm5, %v2838_v3, %v1762_v33 }
0x1595   :  { %v1781_v32 = vsel %vm1780_vm11, %v2840_v9, %v1777_v35  ;;  %v1771_v39 = vsel %vm1768_vm12, %v1770_v44, %v1766_v43 }
0x1596   :  { %v1786_v5 = vsel %vm1783_vm13, %v1785_v47, %v1781_v32  ;;  %v1794_v30 = vmul.f32 %v1792_v52, %v1771_v39 }
0x1597   :  { %v1805_v23 = vmul.f32 %v1786_v5, %v3498_v56  ;;  %v1325_v56 = vadd.f32 %v3365_v19, %v3347_v6 }
0x15f3   :  { %v1797_v50 = vpop.permute.xlu1 %1796 }
0x15f4   :  { %v1808_v49 = vpop.permute.xlu0 %1807  ;;  %v1799_v46 = vmul.f32 %v1797_v50, %v1771_v39 }
0x15f5   :  { %v1810_v51 = vmul.f32 %v1808_v49, %v1786_v5 }
0x15f6   :  { %1801 = vrot.lane.b32.xlu1 %v1799_v46, %s2958_s2 }
0x15f7   :  { %1812 = vrot.lane.b32.xlu2 %v1810_v51, %s2958_s2 }
0x15fe   :  { %1822 = vrot.lane.b32.xlu1 %v1771_v39, %s2958_s2 }
0x15ff   :  { %1826 = vrot.lane.b32.xlu2 %v1786_v5, %s2957_s10 }
0x1651   :  { %v1813_v45 = vpop.permute.xlu2 %1812 }
0x1652   :  { %v1815_v42 = vadd.f32 %v1813_v45, %v1805_v23 }
0x1659   :  { %v1827_v63 = vpop.permute.xlu2 %1826 }
0x1668   :  { %v1802_v53 = vpop.permute.xlu1 %1801 }
0x1669   :  { %v1804_v54 = vadd.f32 %v1802_v53, %v1794_v30 }
0x166b   :  { %1817 = vrot.lane.b32.xlu0 %v1804_v54, %s2959_s11 }
0x1670   :  { %v1823_v18 = vpop.permute.xlu1 %1822 }
0x1671   :  { %v1829_v13 = vsel %vm358_vm4, %v1823_v18, %v1827_v63 }
0x16dd   :  { %v1818_v26 = vpop.permute.xlu0 %1817 }
0x16de   :  { %v3526_v55 = vsel %vm358_vm4, %v1818_v26, %v1815_v42 }
0x16df   :  { %1905 = vrot.lane.b32.xlu1 %v3526_v55, %s2958_s2  ;;  %2841 = vtanh.f32 %v3526_v55 }
0x16e5   :  { %v2842_v1 = vpop.eup %2841 }
0x16e6   :  { %v1831_v8 = vmul.f32 %v2842_v1, %v1829_v13 }
0x16e8   :  { %v1832_v14 = vpack.c.bf16 %v1831_v8, %v1831_v8  ;;  %v1327_v8 = vadd.f32 %v3369_v4, %v3347_v6 }
0x16ea   :  { %2585 = vmatmul.msk.bf16.vlgmr.msrb.gmra.mxu2 %vm415_vm6, %v1832_v14  ;;  %2586 = vmatmul.msk.bf16.vlgmr.msrb.gmra.mxu3 %vm415_vm6, %v1832_v14 }
0x1751   :  { %v1906_v5 = vpop.permute.xlu1 %1905 }
0x176d   :  { %v1845_v10 = vpop.f32.mrf.mxu2  ;;  %v1858_v27 = vpop.f32.mrf.mxu3 }
0x176e   :  { %v1862_v58 = vadd.f32 %v1845_v10, %v1325_v56  ;;  %v1863_v57 = vadd.f32 %v1858_v27, %v3363_v0 }
0x1770   :  { %2843 = vtanh.f32 %v1862_v58  ;;  %v2588_v24 = vmul.f32 -1.442695, %v1863_v57  ;;  %v2587_v61 = vmul.f32 -1.442695, %v1862_v58 }
0x1771   :  { %2845 = vtanh.f32 %v1863_v57 }
0x1772   :  { %2847 = vpow2.f32 %v2588_v24 }
0x1775   :  { %v1847_v22 = vpop.f32.mrf.mxu2  ;;  %v1860_v62 = vpop.f32.mrf.mxu3 }
0x1776   :  { %v2844_v7 = vpop.eup %2843 }
0x1777   :  { %v2846_v21 = vpop.eup %2845  ;;  %1910 = vrot.lane.b32.xlu0 %v2844_v7, %s2957_s10 }
0x1778   :  { %1921 = vrot.lane.b32.xlu2 %v2846_v21, %s2957_s10  ;;  %v2848_v28 = vpop.eup %2847 }
0x1779   :  { %v1871_v34 = vadd.f32 1.0, %v2848_v28 }
0x177b   :  { %2849 = vrcp.f32 %v1871_v34  ;;  %v1898_v11 = vand.u32 2147483648, %v1871_v34  ;;  %vm1892_vm15 = vweird.f32 %v1871_v34  ;;  %v1896_v12 = vand.u32 2147483647, %v1871_v34 }
0x177c   :  { %2851 = vpow2.f32 %v2587_v61 }
0x177d   :  { %v1899_v25 = vor.u32 1.1754944e-38, %v1898_v11  ;;  %vm1897_vm1 = vcmp.eq.f32.partialorder %v1896_v12, 8.507059e+37 }
0x1781   :  { %v2850_v19 = vpop.eup %2849 }
0x1782   :  { %v1888_v36 = vmul.f32 %v2850_v19, %v1871_v34  ;;  %v2852_v17 = vpop.eup %2851  ;;  %vm1893_vm14 = vweird.f32 %v2850_v19 }
0x1783   :  { %v1870_v3 = vadd.f32 1.0, %v2852_v17  ;;  %vm1894_vm0 = vmor %vm1892_vm15, %vm1893_vm14 }
0x1784   :  { %v1889_v0 = vsub.f32 1.0, %v1888_v36 }
0x1785   :  { %2853 = vrcp.f32 %v1870_v3  ;;  %v1883_v43 = vand.u32 2147483648, %v1870_v3  ;;  %vm1877_vm3 = vweird.f32 %v1870_v3  ;;  %v1881_v32 = vand.u32 2147483647, %v1870_v3 }
0x1786   :  { %v1890_v2 = vmul.f32 %v2850_v19, %v1889_v0 }
0x1787   :  { %v1884_v47 = vor.u32 1.1754944e-38, %v1883_v43  ;;  %vm1882_vm8 = vcmp.eq.f32.partialorder %v1881_v32, 8.507059e+37 }
0x1788   :  { %v1891_v9 = vadd.f32 %v2850_v19, %v1890_v2 }
0x178a   :  { %v1895_v20 = vsel %vm1894_vm0, %v2850_v19, %v1891_v9 }
0x178b   :  { %v1900_v31 = vsel %vm1897_vm1, %v1899_v25, %v1895_v20  ;;  %v2854_v33 = vpop.eup %2853 }
0x178c   :  { %v1873_v38 = vmul.f32 %v2854_v33, %v1870_v3  ;;  %vm1878_vm2 = vweird.f32 %v2854_v33  ;;  %v1919_v53 = vmul.f32 %v1900_v31, %v3526_v55  ;;  %v3554_v55 = vpop.f32.mrf.mxu0 }
0x178d   :  { %vm1879_vm7 = vmor %vm1877_vm3, %vm1878_vm2 }
0x178e   :  { %v1874_v37 = vsub.f32 1.0, %v1873_v38 }
0x1790   :  { %v1875_v40 = vmul.f32 %v2854_v33, %v1874_v37 }
0x1792   :  { %v1876_v41 = vadd.f32 %v2854_v33, %v1875_v40 }
0x1794   :  { %v1880_v44 = vsel %vm1879_vm7, %v2854_v33, %v1876_v41 }
0x1795   :  { %v1885_v39 = vsel %vm1882_vm8, %v1884_v47, %v1880_v44 }
0x1796   :  { %v1908_v46 = vmul.f32 %v1906_v5, %v1885_v39 }
0x17d2   :  { %v1922_v29 = vpop.permute.xlu2 %1921 }
0x17d3   :  { %v1924_v35 = vmul.f32 %v1922_v29, %v1900_v31 }
0x17d5   :  { %1926 = vrot.lane.b32.xlu1 %v1924_v35, %s2958_s2 }
0x17dd   :  { %1940 = vrot.lane.b32.xlu1 %v1900_v31, %s2957_s10 }
0x17e9   :  { %v1911_v50 = vpop.permute.xlu0 %1910 }
0x17ea   :  { %v1913_v49 = vmul.f32 %v1911_v50, %v1885_v39 }
0x17ec   :  { %1915 = vrot.lane.b32.xlu0 %v1913_v49, %s2958_s2 }
0x17f4   :  { %1936 = vrot.lane.b32.xlu0 %v1885_v39, %s2958_s2 }
0x1847   :  { %v1927_v30 = vpop.permute.xlu1 %1926 }
0x1848   :  { %v1929_v54 = vadd.f32 %v1927_v30, %v1919_v53 }
0x184f   :  { %v1941_v26 = vpop.permute.xlu1 %1940 }
0x185e   :  { %v1916_v51 = vpop.permute.xlu0 %1915 }
0x185f   :  { %v1918_v52 = vadd.f32 %v1916_v51, %v1908_v46 }
0x1861   :  { %1931 = vrot.lane.b32.xlu2 %v1918_v52, %s2959_s11 }
0x1866   :  { %v1937_v42 = vpop.permute.xlu0 %1936 }
0x1867   :  { %v1943_v63 = vsel %vm358_vm4, %v1937_v42, %v1941_v26 }
0x18bb   :  { %v1932_v45 = vpop.permute.xlu2 %1931 }
0x18bc   :  { %v3546_v23 = vsel %vm358_vm4, %v1932_v45, %v1929_v54 }
0x18bd   :  { %2019 = vrot.lane.b32.xlu0 %v3546_v23, %s2958_s2  ;;  %2855 = vtanh.f32 %v3546_v23 }
0x18c3   :  { %v2856_v18 = vpop.eup %2855 }
0x18c4   :  { %v1945_v1 = vmul.f32 %v2856_v18, %v1943_v63 }
0x18c6   :  { %v1946_v13 = vpack.c.bf16 %v1945_v1, %v1945_v1 }
0x18c8   :  { %2589 = vmatmul.msk.bf16.vlgmr.msrb.gmra.mxu0 %vm415_vm6, %v1946_v13  ;;  %2590 = vmatmul.msk.bf16.vlgmr.msrb.gmra.mxu1 %vm415_vm6, %v1946_v13 }
0x192f   :  { %v2020_v47 = vpop.permute.xlu0 %2019 }
0x1945   :  { %v1959_v14 = vpop.f32.mrf.mxu0  ;;  %v1972_v56 = vpop.f32.mrf.mxu1 }
0x1946   :  { %v1976_v10 = vadd.f32 %v1959_v14, %v1327_v8  ;;  %v1977_v27 = vadd.f32 %v1972_v56, %v3359_v60 }
0x1948   :  { %2857 = vtanh.f32 %v1976_v10  ;;  %v2591_v7 = vmul.f32 -1.442695, %v1976_v10  ;;  %v2592_v28 = vmul.f32 -1.442695, %v1977_v27 }
0x1949   :  { %2859 = vtanh.f32 %v1977_v27 }
0x194a   :  { %2861 = vpow2.f32 %v2591_v7 }
0x194d   :  { %v1961_v58 = vpop.f32.mrf.mxu0  ;;  %v1974_v57 = vpop.f32.mrf.mxu1 }
0x194e   :  { %v2858_v22 = vpop.eup %2857 }
0x194f   :  { %v2860_v62 = vpop.eup %2859  ;;  %2024 = vrot.lane.b32.xlu2 %v2858_v22, %s2957_s10 }
0x1950   :  { %2035 = vrot.lane.b32.xlu1 %v2860_v62, %s2957_s10  ;;  %v2862_v21 = vpop.eup %2861 }
0x1951   :  { %v1984_v24 = vadd.f32 1.0, %v2862_v21 }
0x1953   :  { %2863 = vrcp.f32 %v1984_v24  ;;  %v1997_v17 = vand.u32 2147483648, %v1984_v24  ;;  %vm1991_vm10 = vweird.f32 %v1984_v24  ;;  %v1995_v2 = vand.u32 2147483647, %v1984_v24 }
0x1954   :  { %2865 = vpow2.f32 %v2592_v28 }
0x1955   :  { %v1998_v9 = vor.u32 1.1754944e-38, %v1997_v17  ;;  %vm1996_vm11 = vcmp.eq.f32.partialorder %v1995_v2, 8.507059e+37 }
0x1959   :  { %v2864_v4 = vpop.eup %2863 }
0x195a   :  { %v1987_v34 = vmul.f32 %v2864_v4, %v1984_v24  ;;  %v2866_v61 = vpop.eup %2865  ;;  %vm1992_vm9 = vweird.f32 %v2864_v4 }
0x195b   :  { %v1985_v36 = vadd.f32 1.0, %v2866_v61  ;;  %vm1993_vm5 = vmor %vm1991_vm10, %vm1992_vm9 }
0x195c   :  { %v1988_v60 = vsub.f32 1.0, %v1987_v34 }
0x195d   :  { %2867 = vrcp.f32 %v1985_v36  ;;  %v2012_v38 = vand.u32 2147483648, %v1985_v36  ;;  %vm2006_vm13 = vweird.f32 %v1985_v36  ;;  %v2010_v37 = vand.u32 2147483647, %v1985_v36 }
0x195e   :  { %v1989_v19 = vmul.f32 %v2864_v4, %v1988_v60 }
0x195f   :  { %v2013_v41 = vor.u32 1.1754944e-38, %v2012_v38  ;;  %vm2011_vm15 = vcmp.eq.f32.partialorder %v2010_v37, 8.507059e+37 }
0x1960   :  { %v1990_v0 = vadd.f32 %v2864_v4, %v1989_v19 }
0x1962   :  { %v1994_v3 = vsel %vm1993_vm5, %v2864_v4, %v1990_v0 }
0x1963   :  { %v1999_v12 = vsel %vm1996_vm11, %v1998_v9, %v1994_v3  ;;  %v2868_v25 = vpop.eup %2867 }
0x1964   :  { %v2002_v29 = vmul.f32 %v2868_v25, %v1985_v36  ;;  %vm2007_vm12 = vweird.f32 %v2868_v25  ;;  %v2022_v50 = vmul.f32 %v2020_v47, %v1999_v12 }
0x1965   :  { %vm2008_vm14 = vmor %vm2006_vm13, %vm2007_vm12 }
0x1966   :  { %v2003_v31 = vsub.f32 1.0, %v2002_v29 }
0x1968   :  { %v2004_v33 = vmul.f32 %v2868_v25, %v2003_v31 }
0x196a   :  { %v2005_v35 = vadd.f32 %v2868_v25, %v2004_v33 }
0x196c   :  { %v2009_v40 = vsel %vm2008_vm14, %v2868_v25, %v2005_v35 }
0x196d   :  { %v2014_v32 = vsel %vm2011_vm15, %v2013_v41, %v2009_v40 }
0x196e   :  { %v2033_v46 = vmul.f32 %v2014_v32, %v3546_v23 }
0x19a9   :  { %v2025_v11 = vpop.permute.xlu2 %2024 }
0x19aa   :  { %v2027_v20 = vmul.f32 %v2025_v11, %v1999_v12 }
0x19ac   :  { %2029 = vrot.lane.b32.xlu2 %v2027_v20, %s2958_s2 }
0x19b4   :  { %2050 = vrot.lane.b32.xlu2 %v1999_v12, %s2958_s2 }
0x19c2   :  { %v2036_v43 = vpop.permute.xlu1 %2035 }
0x19c3   :  { %v2038_v44 = vmul.f32 %v2036_v43, %v2014_v32 }
0x19c5   :  { %2040 = vrot.lane.b32.xlu0 %v2038_v44, %s2958_s2 }
0x19cd   :  { %2054 = vrot.lane.b32.xlu0 %v2014_v32, %s2957_s10 }
0x1a06   :  { %v2030_v39 = vpop.permute.xlu2 %2029 }
0x1a07   :  { %v2032_v49 = vadd.f32 %v2030_v39, %v2022_v50 }
0x1a09   :  { %2045 = vrot.lane.b32.xlu1 %v2032_v49, %s2959_s11 }
0x1a0e   :  { %v2051_v54 = vpop.permute.xlu2 %2050 }
0x1a37   :  { %v2041_v5 = vpop.permute.xlu0 %2040 }
0x1a38   :  { %v2043_v51 = vadd.f32 %v2041_v5, %v2033_v46 }
0x1a3f   :  { %v2055_v53 = vpop.permute.xlu0 %2054 }
0x1a40   :  { %v2057_v42 = vsel %vm358_vm4, %v2051_v54, %v2055_v53 }
0x1a7b   :  { %v2046_v52 = vpop.permute.xlu1 %2045 }
0x1a7c   :  { %v3568_v30 = vsel %vm358_vm4, %v2046_v52, %v2043_v51 }
0x1a7d   :  { %2133 = vrot.lane.b32.xlu2 %v3568_v30, %s2958_s2  ;;  %2869 = vtanh.f32 %v3568_v30 }
0x1a83   :  { %v2870_v45 = vpop.eup %2869 }
0x1a84   :  { %v2059_v26 = vmul.f32 %v2870_v45, %v2057_v42 }
0x1a86   :  { %v2060_v18 = vpack.c.bf16 %v2059_v26, %v2059_v26 }
0x1a88   :  { %2593 = vmatmul.msk.bf16.vlgmr.msra.gmra.mxu2 %vm415_vm6, %v2060_v18  ;;  %2594 = vmatmul.msk.bf16.vlgmr.msra.gmra.mxu3 %vm415_vm6, %v2060_v18 }
0x1ad7   :  { %v2134_v38 = vpop.permute.xlu2 %2133 }
0x1b0b   :  { %v2073_v23 = vpop.f32.mrf.mxu2  ;;  %v2086_v63 = vpop.f32.mrf.mxu3 }
0x1b0c   :  { %v2090_v1 = vadd.f32 %v2073_v23, %v3374_v16  ;;  %v2091_v13 = vadd.f32 %v2086_v63, %v3354_v59 }
0x1b0e   :  { %2871 = vtanh.f32 %v2090_v1  ;;  %v2595_v27 = vmul.f32 -1.442695, %v2090_v1  ;;  %v2596_v58 = vmul.f32 -1.442695, %v2091_v13 }
0x1b0f   :  { %2873 = vtanh.f32 %v2091_v13 }
0x1b10   :  { %2875 = vpow2.f32 %v2595_v27 }
0x1b11   :  { %2877 = vpow2.f32 %v2596_v58 }
0x1b13   :  { %v2075_v8 = vpop.f32.mrf.mxu2  ;;  %v2088_v14 = vpop.f32.mrf.mxu3 }
0x1b14   :  { %v2872_v56 = vpop.eup %2871 }
0x1b15   :  { %v2874_v10 = vpop.eup %2873  ;;  %2138 = vrot.lane.b32.xlu1 %v2872_v56, %s2957_s10 }
0x1b16   :  { %2149 = vrot.lane.b32.xlu0 %v2874_v10, %s2957_s10  ;;  %v2876_v57 = vpop.eup %2875 }
0x1b17   :  { %v2878_v22 = vpop.eup %2877  ;;  %v2098_v62 = vadd.f32 1.0, %v2876_v57 }
0x1b18   :  { %v2099_v16 = vadd.f32 1.0, %v2878_v22 }
0x1b19   :  { %2879 = vrcp.f32 %v2098_v62  ;;  %v2111_v36 = vand.u32 2147483648, %v2098_v62  ;;  %vm2105_vm2 = vweird.f32 %v2098_v62  ;;  %v2109_v17 = vand.u32 2147483647, %v2098_v62 }
0x1b1a   :  { %2881 = vrcp.f32 %v2099_v16  ;;  %v2126_v0 = vand.u32 2147483648, %v2099_v16  ;;  %vm2120_vm3 = vweird.f32 %v2099_v16  ;;  %v2124_v2 = vand.u32 2147483647, %v2099_v16 }
0x1b1b   :  { %v2112_v11 = vor.u32 1.1754944e-38, %v2111_v36  ;;  %vm2110_vm9 = vcmp.eq.f32.partialorder %v2109_v17, 8.507059e+37 }
0x1b1c   :  { %v2127_v12 = vor.u32 1.1754944e-38, %v2126_v0  ;;  %vm2125_vm10 = vcmp.eq.f32.partialorder %v2124_v2, 8.507059e+37 }
0x1b1f   :  { %v2880_v59 = vpop.eup %2879 }
0x1b20   :  { %v2882_v7 = vpop.eup %2881  ;;  %v2101_v21 = vmul.f32 %v2880_v59, %v2098_v62  ;;  %vm2106_vm0 = vweird.f32 %v2880_v59 }
0x1b21   :  { %v2116_v24 = vmul.f32 %v2882_v7, %v2099_v16  ;;  %vm2121_vm1 = vweird.f32 %v2882_v7  ;;  %vm2107_vm7 = vmor %vm2105_vm2, %vm2106_vm0 }
0x1b22   :  { %v2102_v4 = vsub.f32 1.0, %v2101_v21  ;;  %vm2122_vm8 = vmor %vm2120_vm3, %vm2121_vm1 }
0x1b23   :  { %v2117_v28 = vsub.f32 1.0, %v2116_v24 }
0x1b24   :  { %v2103_v34 = vmul.f32 %v2880_v59, %v2102_v4 }
0x1b25   :  { %v2118_v60 = vmul.f32 %v2882_v7, %v2117_v28 }
0x1b26   :  { %v2104_v19 = vadd.f32 %v2880_v59, %v2103_v34 }
0x1b27   :  { %v2119_v61 = vadd.f32 %v2882_v7, %v2118_v60 }
0x1b28   :  { %v2108_v3 = vsel %vm2107_vm7, %v2880_v59, %v2104_v19 }
0x1b29   :  { %v2123_v9 = vsel %vm2122_vm8, %v2882_v7, %v2119_v61  ;;  %v2113_v25 = vsel %vm2110_vm9, %v2112_v11, %v2108_v3 }
0x1b2a   :  { %v2128_v31 = vsel %vm2125_vm10, %v2127_v12, %v2123_v9  ;;  %v2136_v37 = vmul.f32 %v2134_v38, %v2113_v25  ;;  %v2661_v9 = vld [vmem:[%s3635_s6 + $0x18] sm:$0xff] }
0x1b2b   :  { %v2147_v32 = vmul.f32 %v2128_v31, %v3568_v30  ;;  %v1332_v30 = vadd.f32 %v3554_v55, %v3347_v6  ;;  %2333 = vmatpush.bf16.msrb.mxu2 %v2661_v9 }
0x1b87   :  { %v2139_v20 = vpop.permute.xlu1 %2138 }
0x1b88   :  { %v2150_v29 = vpop.permute.xlu0 %2149  ;;  %v2141_v33 = vmul.f32 %v2139_v20, %v2113_v25 }
0x1b89   :  { %v2152_v35 = vmul.f32 %v2150_v29, %v2128_v31  ;;  %v2660_v29 = vld [vmem:[%s3635_s6 + $0x10] sm:$0xff] }
0x1b8a   :  { %2143 = vrot.lane.b32.xlu1 %v2141_v33, %s2958_s2  ;;  %2334 = vmatpush.bf16.msrb.mxu2 %v2660_v29  ;;  %v2658_v33 = vld [vmem:[%s3635_s6] sm:$0xff] }
0x1b8b   :  { %2154 = vrot.lane.b32.xlu2 %v2152_v35, %s2958_s2 }
0x1b92   :  { %2164 = vrot.lane.b32.xlu1 %v2113_v25, %s2958_s2 }
0x1b93   :  { %2168 = vrot.lane.b32.xlu2 %v2128_v31, %s2957_s10  ;;  %v2659_v31 = vld [vmem:[%s3635_s6 + $0x8] sm:$0xff] }
0x1b94   :  { %2335 = vmatpush.bf16.msrb.mxu2 %v2659_v31 }
0x1b98   :  { %2336 = vmatpush.bf16.msrb.mxu2 %v2658_v33 }
0x1be5   :  { %v2155_v43 = vpop.permute.xlu2 %2154 }
0x1be6   :  { %v2157_v44 = vadd.f32 %v2155_v43, %v2147_v32 }
0x1bed   :  { %v2169_v49 = vpop.permute.xlu2 %2168 }
0x1bfc   :  { %v2144_v40 = vpop.permute.xlu1 %2143 }
0x1bfd   :  { %v2146_v41 = vadd.f32 %v2144_v40, %v2136_v37 }
0x1bff   :  { %2159 = vrot.lane.b32.xlu0 %v2146_v41, %s2959_s11 }
0x1c04   :  { %v2165_v39 = vpop.permute.xlu1 %2164 }
0x1c05   :  { %v2171_v46 = vsel %vm358_vm4, %v2165_v39, %v2169_v49 }
0x1c71   :  { %v2160_v47 = vpop.permute.xlu0 %2159 }
0x1c72   :  { %v3587_v50 = vsel %vm358_vm4, %v2160_v47, %v2157_v44 }
0x1c73   :  { %2247 = vrot.lane.b32.xlu1 %v3587_v50, %s2958_s2  ;;  %2883 = vtanh.f32 %v3587_v50 }
0x1c79   :  { %v2884_v5 = vpop.eup %2883 }
0x1c7a   :  { %v2173_v51 = vmul.f32 %v2884_v5, %v2171_v46 }
0x1c7c   :  { %v2174_v52 = vpack.c.bf16 %v2173_v51, %v2173_v51 }
0x1c7e   :  { %2597 = vmatmul.msk.bf16.vlgmr.msra.gmra.mxu0 %vm415_vm6, %v2174_v52  ;;  %2598 = vmatmul.msk.bf16.vlgmr.msra.gmra.mxu1 %vm415_vm6, %v2174_v52 }
0x1ce5   :  { %v2248_v11 = vpop.permute.xlu1 %2247 }
0x1cfb   :  { %v2187_v53 = vpop.f32.mrf.mxu0  ;;  %v2200_v54 = vpop.f32.mrf.mxu1 }
0x1cfc   :  { %v2204_v45 = vadd.f32 %v2187_v53, %v1332_v30  ;;  %v2205_v42 = vadd.f32 %v2200_v54, %v3350_v15 }
0x1cfe   :  { %2885 = vtanh.f32 %v2204_v45  ;;  %v2600_v1 = vmul.f32 -1.442695, %v2205_v42  ;;  %v2599_v55 = vmul.f32 -1.442695, %v2204_v45 }
0x1cff   :  { %2887 = vtanh.f32 %v2205_v42 }
0x1d00   :  { %2889 = vpow2.f32 %v2600_v1 }
0x1d03   :  { %v2189_v26 = vpop.f32.mrf.mxu0  ;;  %v2202_v18 = vpop.f32.mrf.mxu1 }
0x1d04   :  { %v2886_v23 = vpop.eup %2885 }
0x1d05   :  { %v2888_v63 = vpop.eup %2887  ;;  %2252 = vrot.lane.b32.xlu0 %v2886_v23, %s2957_s10 }
0x1d06   :  { %2263 = vrot.lane.b32.xlu2 %v2888_v63, %s2957_s10  ;;  %v2890_v13 = vpop.eup %2889 }
0x1d07   :  { %v2213_v8 = vadd.f32 1.0, %v2890_v13 }
0x1d09   :  { %2891 = vrcp.f32 %v2213_v8  ;;  %v2240_v57 = vand.u32 2147483648, %v2213_v8  ;;  %vm2234_vm11 = vweird.f32 %v2213_v8  ;;  %v2238_v22 = vand.u32 2147483647, %v2213_v8 }
0x1d0a   :  { %2893 = vpow2.f32 %v2599_v55 }
0x1d0b   :  { %v2241_v16 = vor.u32 1.1754944e-38, %v2240_v57  ;;  %vm2239_vm13 = vcmp.eq.f32.partialorder %v2238_v22, 8.507059e+37 }
0x1d0f   :  { %v2892_v6 = vpop.eup %2891 }
0x1d10   :  { %v2230_v14 = vmul.f32 %v2892_v6, %v2213_v8  ;;  %v2894_v56 = vpop.eup %2893  ;;  %vm2235_vm5 = vweird.f32 %v2892_v6 }
0x1d11   :  { %v2212_v27 = vadd.f32 1.0, %v2894_v56  ;;  %vm2236_vm12 = vmor %vm2234_vm11, %vm2235_vm5 }
0x1d12   :  { %v2231_v15 = vsub.f32 1.0, %v2230_v14 }
0x1d13   :  { %2895 = vrcp.f32 %v2212_v27  ;;  %v2225_v19 = vand.u32 2147483648, %v2212_v27  ;;  %vm2219_vm15 = vweird.f32 %v2212_v27  ;;  %v2223_v61 = vand.u32 2147483647, %v2212_v27 }
0x1d14   :  { %v2232_v10 = vmul.f32 %v2892_v6, %v2231_v15 }
0x1d15   :  { %v2226_v0 = vor.u32 1.1754944e-38, %v2225_v19  ;;  %vm2224_vm1 = vcmp.eq.f32.partialorder %v2223_v61, 8.507059e+37 }
0x1d16   :  { %v2233_v58 = vadd.f32 %v2892_v6, %v2232_v10 }
0x1d18   :  { %v2237_v62 = vsel %vm2236_vm12, %v2892_v6, %v2233_v58 }
0x1d19   :  { %v2242_v7 = vsel %vm2239_vm13, %v2241_v16, %v2237_v62  ;;  %v2896_v21 = vpop.eup %2895 }
0x1d1a   :  { %v2215_v4 = vmul.f32 %v2896_v21, %v2212_v27  ;;  %vm2220_vm14 = vweird.f32 %v2896_v21  ;;  %v2261_v38 = vmul.f32 %v2242_v7, %v3587_v50  ;;  %v2674_v50 = vld [vmem:[%s3636_s7] ss:$0 sm:$0xff] }
0x1d1b   :  { %vm2221_vm0 = vmor %vm2219_vm15, %vm2220_vm14 }
0x1d1c   :  { %v2216_v28 = vsub.f32 1.0, %v2215_v4 }
0x1d1e   :  { %v2217_v34 = vmul.f32 %v2896_v21, %v2216_v28 }
0x1d20   :  { %v2218_v60 = vadd.f32 %v2896_v21, %v2217_v34 }
0x1d22   :  { %v2222_v36 = vsel %vm2221_vm0, %v2896_v21, %v2218_v60 }
0x1d23   :  { %v2227_v2 = vsel %vm2224_vm1, %v2226_v0, %v2222_v36 }
0x1d24   :  { %v2250_v12 = vmul.f32 %v2248_v11, %v2227_v2 }
0x1d60   :  { %v2264_v59 = vpop.permute.xlu2 %2263 }
0x1d61   :  { %v2266_v24 = vmul.f32 %v2264_v59, %v2242_v7 }
0x1d63   :  { %2268 = vrot.lane.b32.xlu1 %v2266_v24, %s2958_s2 }
0x1d6b   :  { %2282 = vrot.lane.b32.xlu1 %v2242_v7, %s2957_s10 }
0x1d77   :  { %v2253_v17 = vpop.permute.xlu0 %2252 }
0x1d78   :  { %v2255_v3 = vmul.f32 %v2253_v17, %v2227_v2 }
0x1d7a   :  { %2257 = vrot.lane.b32.xlu0 %v2255_v3, %s2958_s2 }
0x1d82   :  { %2278 = vrot.lane.b32.xlu0 %v2227_v2, %s2958_s2 }
0x1dd5   :  { %v2269_v35 = vpop.permute.xlu1 %2268 }
0x1dd6   :  { %v2271_v37 = vadd.f32 %v2269_v35, %v2261_v38 }
0x1ddd   :  { %v2283_v32 = vpop.permute.xlu1 %2282 }
0x1dec   :  { %v2258_v20 = vpop.permute.xlu0 %2257 }
0x1ded   :  { %v2260_v25 = vadd.f32 %v2258_v20, %v2250_v12 }
0x1def   :  { %2273 = vrot.lane.b32.xlu2 %v2260_v25, %s2959_s11 }
0x1df4   :  { %v2279_v43 = vpop.permute.xlu0 %2278 }
0x1df5   :  { %v2285_v47 = vsel %vm358_vm4, %v2279_v43, %v2283_v32 }
0x1e49   :  { %v2274_v40 = vpop.permute.xlu2 %2273 }
0x1e4a   :  { %v2276_v41 = vsel %vm358_vm4, %v2274_v40, %v2271_v37 }
0x1e4b   :  { %2897 = vtanh.f32 %v2276_v41 }
0x1e51   :  { %v2898_v44 = vpop.eup %2897 }
0x1e52   :  { %v2287_v39 = vmul.f32 %v2898_v44, %v2285_v47 }
0x1e54   :  { %v2288_v49 = vsel %vm358_vm4, %v2287_v39, %v3444_v48 }
0x1e55   :  { %v2289_v5 = vpack.c.bf16 %v2288_v49, %v2288_v49 }
0x1e57   :  { %2617 = vmatmul.msk.bf16.vlgmr.msrb.gmra.mxu2 %vm415_vm6, %v2289_v5 }
0x1eda   :  { %v2338_v46 = vpop.f32.mrf.mxu2 }
0x1edb   :  { %v2339_v51 = vadd.f32 %v2674_v50, %v2338_v46 }
0x1edd   :  { %2342 = vst [vmem:[%s3637_s8] sm:$0xff] %v2339_v51 }
0x1ee2   :  { %v2340_v52 = vpop.f32.mrf.mxu2 }
0x1ee3   :  { %2347 = vsyncpa [#allocation4], 1 }
0x1ee4   :  { %2348 = vsyncpa [#allocation6], 1 }

</bundles_post_ra>
